<compile_context>
chip_gen: v5e
topology: v5e:2x2
jax: 0.10.0
libtpu: 0.0.40
codegen_flags: <defaults>
</compile_context>

<pallas_src>
import functools

import jax
import jax.numpy as jnp
from jax.experimental import pallas as pl
from jax.experimental.pallas import tpu as pltpu


def _round_up(x, m):
    return ((x + m - 1) // m) * m


def _lstm_recurrence_kernel(len_smem,                       # (Bp,) i32, SMEM
                            proj_ref, h0_ref, c0_ref, whh_ref, lenv_ref,
                            out_ref, hT_ref, cT_ref,
                            h_scr, c_scr,
                            *, hidden_pad, tile_t, batch_tile):
    """One (batch-tile, time-tile) grid step of the packed-LSTM recurrence.

    proj_ref : (Tt, Bb, 4*Hp)   precomputed x_t @ W_ih^T + (b_ih + b_hh)
    h0_ref   : (Bb, Hp) f32     initial hidden state
    c0_ref   : (Bb, Hp) f32     initial cell state
    whh_ref  : (Hp, 4*Hp)       W_hh^T, zero padded gate-blockwise
    lenv_ref : (Bb, 1) i32      per-row valid lengths (vector mask)
    out_ref  : (Bb, Tt, Hp) f32 batch-major hidden states (zero where padded)
    hT_ref   : (Bb, Hp) f32     final hidden state (last valid step)
    cT_ref   : (Bb, Hp) f32     final cell state
    h_scr/c_scr : (Bb, Hp) f32  state carried across time tiles
    """
    Hp = hidden_pad
    b = pl.program_id(0)
    t_tile = pl.program_id(1)
    t_base = t_tile * tile_t

    @pl.when(t_tile == 0)
    def _init():
        h_scr[...] = h0_ref[...]
        c_scr[...] = c0_ref[...]

    # input_lengths is sorted descending (enforce_sorted=True in the PyTorch
    # module), so the first row of this batch tile carries the tile's maximum
    # valid length.  Scalar SMEM read -> scalar guard.
    max_len = len_smem[b * batch_tile]

    @pl.when(t_base < max_len)
    def _compute():
        # Loop invariants hoisted out of the unrolled recurrence.
        whh = whh_ref[...]                      # (Hp, 4Hp), f32 or bf16
        lengths = lenv_ref[...]                 # (Bb, 1) int32
        h = h_scr[...]                          # f32
        c = c_scr[...]
        for i in range(tile_t):                 # fully unrolled, static indices
            t = t_base + i
            # Only the truly recurrent matmul remains inside the loop.
            gates = proj_ref[i].astype(jnp.float32) + jnp.dot(
                h.astype(whh.dtype), whh, preferred_element_type=jnp.float32)
            # Gate order matches PyTorch: i, f, g, o (128-lane aligned slabs).
            i_g = jax.nn.sigmoid(gates[:, 0 * Hp:1 * Hp])
            f_g = jax.nn.sigmoid(gates[:, 1 * Hp:2 * Hp])
            g_g = jnp.tanh(gates[:, 2 * Hp:3 * Hp])
            o_g = jax.nn.sigmoid(gates[:, 3 * Hp:4 * Hp])

            c_new = f_g * c + i_g * g_g
            h_new = o_g * jnp.tanh(c_new)

            valid = t < lengths                 # (Bb, 1) bool
            # pad_packed_sequence: padded positions are zero in the output.
            out_ref[:, pl.ds(i, 1), :] = (
                jnp.where(valid, h_new, 0.0)[:, None, :])
            # packed LSTM: states stop updating past each sequence's length.
            h = jnp.where(valid, h_new, h)
            c = jnp.where(valid, c_new, c)
        h_scr[...] = h
        c_scr[...] = c

    @pl.when(t_base >= max_len)
    def _skip():
        # Entire time tile is beyond every sequence in this batch tile:
        # no matmul / transcendentals, just the zero output block.
        out_ref[...] = jnp.zeros_like(out_ref)

    @pl.when(t_tile == pl.num_programs(1) - 1)
    def _finalize():
        hT_ref[...] = h_scr[...]
        cT_ref[...] = c_scr[...]


def encoder_rnn_forward(x_tokens, prev_state, input_lengths, params, *,
                        batch_tile=32, time_tile=8,
                        matmul_dtype=jnp.float32, proj_dtype=jnp.float32):
    """Mirrors EncoderRNN.forward.

    x_tokens     : (B, T) int32 token ids
    prev_state   : (h0, c0), each (1, B, H)
    input_lengths: (B,) int32, sorted descending (enforce_sorted=True)
    matmul_dtype : dtype of the recurrent-matmul operands (bf16 on v6e/v7x for
                   MXU peak; f32 keeps reference-level accuracy)
    proj_dtype   : storage dtype of the streamed input projection (bf16 halves
                   the dominant HBM traffic; recommended on v5e)
    returns (output (B, T, H), (h_T (1,B,H), c_T (1,B,H)))
    """
    emb_table = params["embedding"]
    w_ih, w_hh = params["w_ih"], params["w_hh"]
    b_ih, b_hh = params["b_ih"], params["b_hh"]
    h0, c0 = prev_state

    B, T = x_tokens.shape
    H = emb_table.shape[1]
    f32 = jnp.float32
    LANE, SUBLANE = 128, 8

    Hp = _round_up(H, LANE)                      # lane-dense hidden width

    # --- batch tiling: feed the MXU 32+ rows per step when the batch allows,
    # but don't inflate tiny batches; keep >= 2 tiles for v7x megacore.
    Bb = _round_up(min(batch_tile, _round_up(B, SUBLANE)), SUBLANE)
    if _round_up(B, SUBLANE) >= 2 * SUBLANE and _round_up(B, SUBLANE) // Bb < 2:
        Bb = max(SUBLANE, (_round_up(B, SUBLANE) // 2) // SUBLANE * SUBLANE)
    Bp = _round_up(B, Bb)
    nb = Bp // Bb

    # --- time tiling: Tt must be a multiple of 8 (or the full T) so the
    # batch-major output block (Bb, Tt, Hp) satisfies the (8, 128) rule.
    Tt = T if T <= time_tile else _round_up(time_tile, SUBLANE)
    Tp = _round_up(T, Tt)
    nt = Tp // Tt

    # --- gate-blockwise zero padding so each gate slab is 128-lane aligned.
    # Padded weight/bias columns are exact zeros, so the padded hidden/cell
    # lanes stay identically zero through the whole recurrence.
    def pad_gate_cols(w):                        # (..., 4H) -> (..., 4*Hp)
        parts = jnp.split(w, 4, axis=-1)
        pad = [(0, 0)] * (w.ndim - 1) + [(0, Hp - H)]
        return jnp.concatenate([jnp.pad(p, pad) for p in parts], axis=-1)

    wih_t = pad_gate_cols(jnp.transpose(w_ih).astype(f32))            # (H, 4Hp)
    whh_t = jnp.pad(pad_gate_cols(jnp.transpose(w_hh).astype(f32)),
                    ((0, Hp - H), (0, 0))).astype(matmul_dtype)       # (Hp, 4Hp)
    bias = pad_gate_cols((b_ih + b_hh).astype(f32).reshape(1, 4 * H))  # (1, 4Hp)

    # --- input projection hoisted out of the recurrence: time-major embedding
    # gather (no activation transpose) + ONE big GEMM, bias folded in.
    emb_tm = jnp.take(emb_table.astype(f32), x_tokens.T, axis=0)      # (T, B, H)
    proj = jnp.dot(emb_tm.reshape(T * B, H), wih_t,
                   preferred_element_type=f32) + bias                 # (T*B, 4Hp)
    proj = proj.reshape(T, B, 4 * Hp).astype(proj_dtype)
    proj = jnp.pad(proj, ((0, Tp - T), (0, Bp - B), (0, 0)))          # (Tp,Bp,4Hp)

    h0_p = jnp.pad(h0[0].astype(f32), ((0, Bp - B), (0, Hp - H)))     # (Bp, Hp)
    c0_p = jnp.pad(c0[0].astype(f32), ((0, Bp - B), (0, Hp - H)))
    lens_1d = jnp.pad(input_lengths.astype(jnp.int32), (0, Bp - B))   # (Bp,)
    lens_col = lens_1d.reshape(Bp, 1)                                 # (Bp, 1)

    kernel = functools.partial(_lstm_recurrence_kernel,
                               hidden_pad=Hp, tile_t=Tt, batch_tile=Bb)

    out_p, hT_p, cT_p = pl.pallas_call(
        kernel,
        out_shape=(
            jax.ShapeDtypeStruct((Bp, Tp, Hp), f32),   # batch-major output
            jax.ShapeDtypeStruct((Bp, Hp), f32),
            jax.ShapeDtypeStruct((Bp, Hp), f32),
        ),
        grid_spec=pltpu.PrefetchScalarGridSpec(
            num_scalar_prefetch=1,                      # lengths -> SMEM guard
            grid=(nb, nt),                              # (batch tiles, time tiles)
            in_specs=[
                pl.BlockSpec((Tt, Bb, 4 * Hp), lambda b, t, lens: (t, b, 0)),  # proj
                pl.BlockSpec((Bb, Hp), lambda b, t, lens: (b, 0)),             # h0
                pl.BlockSpec((Bb, Hp), lambda b, t, lens: (b, 0)),             # c0
                pl.BlockSpec((Hp, 4 * Hp), lambda b, t, lens: (0, 0)),         # W_hh^T
                pl.BlockSpec((Bb, 1), lambda b, t, lens: (b, 0)),              # lengths vec
            ],
            out_specs=(
                pl.BlockSpec((Bb, Tt, Hp), lambda b, t, lens: (b, t, 0)),      # output
                pl.BlockSpec((Bb, Hp), lambda b, t, lens: (b, 0)),             # h_T
                pl.BlockSpec((Bb, Hp), lambda b, t, lens: (b, 0)),             # c_T
            ),
            scratch_shapes=[
                pltpu.VMEM((Bb, Hp), f32),   # h carried across time tiles
                pltpu.VMEM((Bb, Hp), f32),   # c carried across time tiles
            ],
        ),
        compiler_params=pltpu.CompilerParams(
            # batch tiles are independent (v7x megacore); time is recurrent.
            dimension_semantics=("parallel", "arbitrary")),
    )(lens_1d, proj, h0_p, c0_p, whh_t, lens_col)

    output = out_p[:B, :T, :H]                                        # (B, T, H)
    return output, (hT_p[None, :B, :H], cT_p[None, :B, :H])


def _reference_forward(x_tokens, prev_state, input_lengths, params):
    """Pure-JAX reference of the same semantics, for a sanity check."""
    emb_table, w_ih, w_hh, b_ih, b_hh = (
        params["embedding"], params["w_ih"], params["w_hh"],
        params["b_ih"], params["b_hh"],
    )
    h = prev_state[0][0]
    c = prev_state[1][0]
    H = emb_table.shape[1]
    emb = jnp.take(emb_table, x_tokens, axis=0)            # (B, T, H)
    T = x_tokens.shape[1]
    outs = []
    for t in range(T):
        x_t = emb[:, t, :]
        gates = x_t @ w_ih.T + h @ w_hh.T + b_ih + b_hh
        i_g = jax.nn.sigmoid(gates[:, 0 * H:1 * H])
        f_g = jax.nn.sigmoid(gates[:, 1 * H:2 * H])
        g_g = jnp.tanh(gates[:, 2 * H:3 * H])
        o_g = jax.nn.sigmoid(gates[:, 3 * H:4 * H])
        c_new = f_g * c + i_g * g_g
        h_new = o_g * jnp.tanh(c_new)
        valid = (t < input_lengths)[:, None]
        outs.append(jnp.where(valid, h_new, 0.0))
        h = jnp.where(valid, h_new, h)
        c = jnp.where(valid, c_new, c)
    return jnp.stack(outs, axis=1), (h[None], c[None])


if __name__ == "__main__":
    input_size = 50      # vocab size
    hidden_size = 32
    batch = 2
    seq_len = 8

    key = jax.random.PRNGKey(0)
    k_emb, k_wih, k_whh, k_bih, k_bhh, k_tok = jax.random.split(key, 6)
    scale = 1.0 / jnp.sqrt(hidden_size)
    params = {
        "embedding": jax.random.normal(k_emb, (input_size, hidden_size), jnp.float32),
        "w_ih": jax.random.uniform(k_wih, (4 * hidden_size, hidden_size),
                                   jnp.float32, -scale, scale),
        "w_hh": jax.random.uniform(k_whh, (4 * hidden_size, hidden_size),
                                   jnp.float32, -scale, scale),
        "b_ih": jax.random.uniform(k_bih, (4 * hidden_size,),
                                   jnp.float32, -scale, scale),
        "b_hh": jax.random.uniform(k_bhh, (4 * hidden_size,),
                                   jnp.float32, -scale, scale),
    }

    x = jax.random.randint(k_tok, (batch, seq_len), 0, input_size, jnp.int32)
    input_lengths = jnp.array([seq_len, 5], dtype=jnp.int32)  # sorted descending
    prev_state = (
        jnp.zeros((1, batch, hidden_size), jnp.float32),  # initHidden
        jnp.zeros((1, batch, hidden_size), jnp.float32),
    )

    output, (h_t, c_t) = encoder_rnn_forward(x, prev_state, input_lengths, params)
    jax.block_until_ready((output, h_t, c_t))

    ref_out, (ref_h, ref_c) = _reference_forward(x, prev_state, input_lengths, params)
    assert jnp.allclose(output, ref_out, atol=1e-4, rtol=1e-4)
    assert jnp.allclose(h_t, ref_h, atol=1e-4, rtol=1e-4)
    assert jnp.allclose(c_t, ref_c, atol=1e-4, rtol=1e-4)

    print("KERNEL_OK")
</pallas_src>

<mosaic_0001>
module attributes {stable_mosaic.version = 11 : i64} {
  func.func @_lstm_recurrence_kernel(%arg0: i32, %arg1: i32, %arg2: memref<8xi32, #tpu.memory_space<smem>>, %arg3: memref<8x8x512xf32, #tpu.memory_space<vmem>>, %arg4: memref<8x128xf32, #tpu.memory_space<vmem>>, %arg5: memref<8x128xf32, #tpu.memory_space<vmem>>, %arg6: memref<128x512xf32, #tpu.memory_space<vmem>>, %arg7: memref<8x1xi32, #tpu.memory_space<vmem>>, %arg8: memref<8x8x128xf32, #tpu.memory_space<vmem>>, %arg9: memref<8x128xf32, #tpu.memory_space<vmem>>, %arg10: memref<8x128xf32, #tpu.memory_space<vmem>>, %arg11: memref<8x128xf32, #tpu.memory_space<vmem>>, %arg12: memref<8x128xf32, #tpu.memory_space<vmem>>) attributes {dimension_semantics = [#tpu.dimension_semantics<parallel>, #tpu.dimension_semantics<arbitrary>], iteration_bounds = array<i64: 1, 1>, scalar_prefetch = 1 : i64, scratch_operands = 2 : i64, tpu.core_type = #tpu.core_type<tc>, window_params = [{transform_indices = @transform_0, window_bounds = array<i64: 8, 8, 512>}, {transform_indices = @transform_1, window_bounds = array<i64: 8, 128>}, {transform_indices = @transform_2, window_bounds = array<i64: 8, 128>}, {pipeline_mode = #tpu.pipeline_mode<synchronous>, transform_indices = @transform_3, window_bounds = array<i64: 128, 512>}, {transform_indices = @transform_4, window_bounds = array<i64: 8, 1>}, {transform_indices = @transform_5, window_bounds = array<i64: 8, 8, 128>}, {transform_indices = @transform_6, window_bounds = array<i64: 8, 128>}, {transform_indices = @transform_7, window_bounds = array<i64: 8, 128>}]} {
    %c8_i32 = arith.constant 8 : i32
    %0 = arith.muli %arg1, %c8_i32 : i32
    %c0_i32 = arith.constant 0 : i32
    %1 = arith.cmpi eq, %arg1, %c0_i32 : i32
    %2 = arith.extui %1 : i1 to i32
    %c0_i32_0 = arith.constant 0 : i32
    %3 = arith.cmpi ne, %2, %c0_i32_0 : i32
    scf.if %3 {
      %c0 = arith.constant 0 : index
      %c0_6 = arith.constant 0 : index
      %16 = vector.load %arg4[%c0, %c0_6] : memref<8x128xf32, #tpu.memory_space<vmem>>, vector<8x128xf32>
      %c0_7 = arith.constant 0 : index
      %c0_8 = arith.constant 0 : index
      %17 = vector.load %arg11[%c0_7, %c0_8] : memref<8x128xf32, #tpu.memory_space<vmem>>, vector<8x128xf32>
      tpu.vector_store %arg11[%c0_7, %c0_8], %16 {strides = array<i32>} : memref<8x128xf32, #tpu.memory_space<vmem>>, vector<8x128xf32>,
      %c0_9 = arith.constant 0 : index
      %c0_10 = arith.constant 0 : index
      %18 = vector.load %arg5[%c0_9, %c0_10] : memref<8x128xf32, #tpu.memory_space<vmem>>, vector<8x128xf32>
      %c0_11 = arith.constant 0 : index
      %c0_12 = arith.constant 0 : index
      %19 = vector.load %arg12[%c0_11, %c0_12] : memref<8x128xf32, #tpu.memory_space<vmem>>, vector<8x128xf32>
      tpu.vector_store %arg12[%c0_11, %c0_12], %18 {strides = array<i32>} : memref<8x128xf32, #tpu.memory_space<vmem>>, vector<8x128xf32>,
    } else {
    }
    %c8_i32_1 = arith.constant 8 : i32
    %4 = arith.muli %arg0, %c8_i32_1 : i32
    %5 = arith.index_cast %4 : i32 to index
    %6 = memref.load %arg2[%5] : memref<8xi32, #tpu.memory_space<smem>>
    %7 = arith.cmpi slt, %0, %6 : i32
    %8 = arith.extui %7 : i1 to i32
    %c0_i32_2 = arith.constant 0 : i32
    %9 = arith.cmpi ne, %8, %c0_i32_2 : i32
    scf.if %9 {
      %c0 = arith.constant 0 : index
      %c0_6 = arith.constant 0 : index
      %16 = vector.load %arg6[%c0, %c0_6] : memref<128x512xf32, #tpu.memory_space<vmem>>, vector<128x512xf32>
      %c0_7 = arith.constant 0 : index
      %c0_8 = arith.constant 0 : index
      %17 = vector.load %arg7[%c0_7, %c0_8] : memref<8x1xi32, #tpu.memory_space<vmem>>, vector<8x1xi32>
      %c0_9 = arith.constant 0 : index
      %c0_10 = arith.constant 0 : index
      %18 = vector.load %arg11[%c0_9, %c0_10] : memref<8x128xf32, #tpu.memory_space<vmem>>, vector<8x128xf32>
      %c0_11 = arith.constant 0 : index
      %c0_12 = arith.constant 0 : index
      %19 = vector.load %arg12[%c0_11, %c0_12] : memref<8x128xf32, #tpu.memory_space<vmem>>, vector<8x128xf32>
      %c0_i32_13 = arith.constant 0 : i32
      %20 = arith.addi %0, %c0_i32_13 : i32
      %c0_14 = arith.constant 0 : index
      %c0_15 = arith.constant 0 : index
      %c0_16 = arith.constant 0 : index
      %21 = vector.load %arg3[%c0_14, %c0_15, %c0_16] : memref<8x8x512xf32, #tpu.memory_space<vmem>>, vector<1x8x512xf32>
      %22 = vector.shape_cast %21 : vector<1x8x512xf32> to vector<8x512xf32>
      %cst = arith.constant dense<0.000000e+00> : vector<8x512xf32>
      %23 = tpu.matmul %18, %16, %cst {dimension_numbers = #tpu.dot_dimension_numbers<[1], [0], [0], [1], [0, 0, 1, 1], [], []>} : vector<8x128xf32>, vector<128x512xf32>, vector<8x512xf32> -> vector<8x512xf32>
      %24 = arith.addf %22, %23 : vector<8x512xf32>
      %25 = vector.extract_strided_slice %24 {offsets = [0, 0], sizes = [8, 128], strides = [1, 1]} : vector<8x512xf32> to vector<8x128xf32>
      %26 = arith.negf %25 : vector<8x128xf32>
      %27 = math.exp %26 : vector<8x128xf32>
      %cst_17 = arith.constant 1.000000e+00 : f32
      %28 = vector.broadcast %cst_17 : f32 to vector<8x128xf32>
      %29 = arith.addf %28, %27 : vector<8x128xf32>
      %30 = arith.divf %28, %29 : vector<8x128xf32>
      %31 = vector.extract_strided_slice %24 {offsets = [0, 128], sizes = [8, 128], strides = [1, 1]} : vector<8x512xf32> to vector<8x128xf32>
      %32 = arith.negf %31 : vector<8x128xf32>
      %33 = math.exp %32 : vector<8x128xf32>
      %cst_18 = arith.constant 1.000000e+00 : f32
      %34 = vector.broadcast %cst_18 : f32 to vector<8x128xf32>
      %35 = arith.addf %34, %33 : vector<8x128xf32>
      %36 = arith.divf %34, %35 : vector<8x128xf32>
      %37 = vector.extract_strided_slice %24 {offsets = [0, 256], sizes = [8, 128], strides = [1, 1]} : vector<8x512xf32> to vector<8x128xf32>
      %38 = math.tanh %37 : vector<8x128xf32>
      %39 = vector.extract_strided_slice %24 {offsets = [0, 384], sizes = [8, 128], strides = [1, 1]} : vector<8x512xf32> to vector<8x128xf32>
      %40 = arith.negf %39 : vector<8x128xf32>
      %41 = math.exp %40 : vector<8x128xf32>
      %cst_19 = arith.constant 1.000000e+00 : f32
      %42 = vector.broadcast %cst_19 : f32 to vector<8x128xf32>
      %43 = arith.addf %42, %41 : vector<8x128xf32>
      %44 = arith.divf %42, %43 : vector<8x128xf32>
      %45 = arith.mulf %36, %19 : vector<8x128xf32>
      %46 = arith.mulf %30, %38 : vector<8x128xf32>
      %47 = arith.addf %45, %46 : vector<8x128xf32>
      %48 = math.tanh %47 : vector<8x128xf32>
      %49 = arith.mulf %44, %48 : vector<8x128xf32>
      %50 = vector.broadcast %20 : i32 to vector<8x1xi32>
      %51 = arith.cmpi slt, %50, %17 : vector<8x1xi32>
      %cst_20 = arith.constant 0.000000e+00 : f32
      %52 = vector.shape_cast %51 : vector<8x1xi1> to vector<8x1xi1>
      %53 = vector.broadcast %52 : vector<8x1xi1> to vector<8x128xi1>
      %54 = vector.broadcast %cst_20 : f32 to vector<8x128xf32>
      %55 = arith.select %53, %49, %54 : vector<8x128xi1>, vector<8x128xf32>
      %56 = vector.shape_cast %55 : vector<8x128xf32> to vector<8x1x128xf32>
      %c0_21 = arith.constant 0 : index
      %c0_22 = arith.constant 0 : index
      %c0_23 = arith.constant 0 : index
      %57 = vector.load %arg8[%c0_21, %c0_22, %c0_23] : memref<8x8x128xf32, #tpu.memory_space<vmem>>, vector<8x1x128xf32>
      tpu.vector_store %arg8[%c0_21, %c0_22, %c0_23], %56 {strides = array<i32>} : memref<8x8x128xf32, #tpu.memory_space<vmem>>, vector<8x1x128xf32>,
      %58 = vector.shape_cast %51 : vector<8x1xi1> to vector<8x1xi1>
      %59 = vector.broadcast %58 : vector<8x1xi1> to vector<8x128xi1>
      %60 = arith.select %59, %49, %18 : vector<8x128xi1>, vector<8x128xf32>
      %61 = vector.shape_cast %51 : vector<8x1xi1> to vector<8x1xi1>
      %62 = vector.broadcast %61 : vector<8x1xi1> to vector<8x128xi1>
      %63 = arith.select %62, %47, %19 : vector<8x128xi1>, vector<8x128xf32>
      %c1_i32 = arith.constant 1 : i32
      %64 = arith.addi %0, %c1_i32 : i32
      %c1 = arith.constant 1 : index
      %c0_24 = arith.constant 0 : index
      %c0_25 = arith.constant 0 : index
      %65 = vector.load %arg3[%c1, %c0_24, %c0_25] : memref<8x8x512xf32, #tpu.memory_space<vmem>>, vector<1x8x512xf32>
      %66 = vector.shape_cast %65 : vector<1x8x512xf32> to vector<8x512xf32>
      %cst_26 = arith.constant dense<0.000000e+00> : vector<8x512xf32>
      %67 = tpu.matmul %60, %16, %cst_26 {dimension_numbers = #tpu.dot_dimension_numbers<[1], [0], [0], [1], [0, 0, 1, 1], [], []>} : vector<8x128xf32>, vector<128x512xf32>, vector<8x512xf32> -> vector<8x512xf32>
      %68 = arith.addf %66, %67 : vector<8x512xf32>
      %69 = vector.extract_strided_slice %68 {offsets = [0, 0], sizes = [8, 128], strides = [1, 1]} : vector<8x512xf32> to vector<8x128xf32>
      %70 = arith.negf %69 : vector<8x128xf32>
      %71 = math.exp %70 : vector<8x128xf32>
      %cst_27 = arith.constant 1.000000e+00 : f32
      %72 = vector.broadcast %cst_27 : f32 to vector<8x128xf32>
      %73 = arith.addf %72, %71 : vector<8x128xf32>
      %74 = arith.divf %72, %73 : vector<8x128xf32>
      %75 = vector.extract_strided_slice %68 {offsets = [0, 128], sizes = [8, 128], strides = [1, 1]} : vector<8x512xf32> to vector<8x128xf32>
      %76 = arith.negf %75 : vector<8x128xf32>
      %77 = math.exp %76 : vector<8x128xf32>
      %cst_28 = arith.constant 1.000000e+00 : f32
      %78 = vector.broadcast %cst_28 : f32 to vector<8x128xf32>
      %79 = arith.addf %78, %77 : vector<8x128xf32>
      %80 = arith.divf %78, %79 : vector<8x128xf32>
      %81 = vector.extract_strided_slice %68 {offsets = [0, 256], sizes = [8, 128], strides = [1, 1]} : vector<8x512xf32> to vector<8x128xf32>
      %82 = math.tanh %81 : vector<8x128xf32>
      %83 = vector.extract_strided_slice %68 {offsets = [0, 384], sizes = [8, 128], strides = [1, 1]} : vector<8x512xf32> to vector<8x128xf32>
      %84 = arith.negf %83 : vector<8x128xf32>
      %85 = math.exp %84 : vector<8x128xf32>
      %cst_29 = arith.constant 1.000000e+00 : f32
      %86 = vector.broadcast %cst_29 : f32 to vector<8x128xf32>
      %87 = arith.addf %86, %85 : vector<8x128xf32>
      %88 = arith.divf %86, %87 : vector<8x128xf32>
      %89 = arith.mulf %80, %63 : vector<8x128xf32>
      %90 = arith.mulf %74, %82 : vector<8x128xf32>
      %91 = arith.addf %89, %90 : vector<8x128xf32>
      %92 = math.tanh %91 : vector<8x128xf32>
      %93 = arith.mulf %88, %92 : vector<8x128xf32>
      %94 = vector.broadcast %64 : i32 to vector<8x1xi32>
      %95 = arith.cmpi slt, %94, %17 : vector<8x1xi32>
      %cst_30 = arith.constant 0.000000e+00 : f32
      %96 = vector.shape_cast %95 : vector<8x1xi1> to vector<8x1xi1>
      %97 = vector.broadcast %96 : vector<8x1xi1> to vector<8x128xi1>
      %98 = vector.broadcast %cst_30 : f32 to vector<8x128xf32>
      %99 = arith.select %97, %93, %98 : vector<8x128xi1>, vector<8x128xf32>
      %100 = vector.shape_cast %99 : vector<8x128xf32> to vector<8x1x128xf32>
      %c0_31 = arith.constant 0 : index
      %c1_32 = arith.constant 1 : index
      %c0_33 = arith.constant 0 : index
      %101 = vector.load %arg8[%c0_31, %c1_32, %c0_33] : memref<8x8x128xf32, #tpu.memory_space<vmem>>, vector<8x1x128xf32>
      tpu.vector_store %arg8[%c0_31, %c1_32, %c0_33], %100 {strides = array<i32>} : memref<8x8x128xf32, #tpu.memory_space<vmem>>, vector<8x1x128xf32>,
      %102 = vector.shape_cast %95 : vector<8x1xi1> to vector<8x1xi1>
      %103 = vector.broadcast %102 : vector<8x1xi1> to vector<8x128xi1>
      %104 = arith.select %103, %93, %60 : vector<8x128xi1>, vector<8x128xf32>
      %105 = vector.shape_cast %95 : vector<8x1xi1> to vector<8x1xi1>
      %106 = vector.broadcast %105 : vector<8x1xi1> to vector<8x128xi1>
      %107 = arith.select %106, %91, %63 : vector<8x128xi1>, vector<8x128xf32>
      %c2_i32 = arith.constant 2 : i32
      %108 = arith.addi %0, %c2_i32 : i32
      %c2 = arith.constant 2 : index
      %c0_34 = arith.constant 0 : index
      %c0_35 = arith.constant 0 : index
      %109 = vector.load %arg3[%c2, %c0_34, %c0_35] : memref<8x8x512xf32, #tpu.memory_space<vmem>>, vector<1x8x512xf32>
      %110 = vector.shape_cast %109 : vector<1x8x512xf32> to vector<8x512xf32>
      %cst_36 = arith.constant dense<0.000000e+00> : vector<8x512xf32>
      %111 = tpu.matmul %104, %16, %cst_36 {dimension_numbers = #tpu.dot_dimension_numbers<[1], [0], [0], [1], [0, 0, 1, 1], [], []>} : vector<8x128xf32>, vector<128x512xf32>, vector<8x512xf32> -> vector<8x512xf32>
      %112 = arith.addf %110, %111 : vector<8x512xf32>
      %113 = vector.extract_strided_slice %112 {offsets = [0, 0], sizes = [8, 128], strides = [1, 1]} : vector<8x512xf32> to vector<8x128xf32>
      %114 = arith.negf %113 : vector<8x128xf32>
      %115 = math.exp %114 : vector<8x128xf32>
      %cst_37 = arith.constant 1.000000e+00 : f32
      %116 = vector.broadcast %cst_37 : f32 to vector<8x128xf32>
      %117 = arith.addf %116, %115 : vector<8x128xf32>
      %118 = arith.divf %116, %117 : vector<8x128xf32>
      %119 = vector.extract_strided_slice %112 {offsets = [0, 128], sizes = [8, 128], strides = [1, 1]} : vector<8x512xf32> to vector<8x128xf32>
      %120 = arith.negf %119 : vector<8x128xf32>
      %121 = math.exp %120 : vector<8x128xf32>
      %cst_38 = arith.constant 1.000000e+00 : f32
      %122 = vector.broadcast %cst_38 : f32 to vector<8x128xf32>
      %123 = arith.addf %122, %121 : vector<8x128xf32>
      %124 = arith.divf %122, %123 : vector<8x128xf32>
      %125 = vector.extract_strided_slice %112 {offsets = [0, 256], sizes = [8, 128], strides = [1, 1]} : vector<8x512xf32> to vector<8x128xf32>
      %126 = math.tanh %125 : vector<8x128xf32>
      %127 = vector.extract_strided_slice %112 {offsets = [0, 384], sizes = [8, 128], strides = [1, 1]} : vector<8x512xf32> to vector<8x128xf32>
      %128 = arith.negf %127 : vector<8x128xf32>
      %129 = math.exp %128 : vector<8x128xf32>
      %cst_39 = arith.constant 1.000000e+00 : f32
      %130 = vector.broadcast %cst_39 : f32 to vector<8x128xf32>
      %131 = arith.addf %130, %129 : vector<8x128xf32>
      %132 = arith.divf %130, %131 : vector<8x128xf32>
      %133 = arith.mulf %124, %107 : vector<8x128xf32>
      %134 = arith.mulf %118, %126 : vector<8x128xf32>
      %135 = arith.addf %133, %134 : vector<8x128xf32>
      %136 = math.tanh %135 : vector<8x128xf32>
      %137 = arith.mulf %132, %136 : vector<8x128xf32>
      %138 = vector.broadcast %108 : i32 to vector<8x1xi32>
      %139 = arith.cmpi slt, %138, %17 : vector<8x1xi32>
      %cst_40 = arith.constant 0.000000e+00 : f32
      %140 = vector.shape_cast %139 : vector<8x1xi1> to vector<8x1xi1>
      %141 = vector.broadcast %140 : vector<8x1xi1> to vector<8x128xi1>
      %142 = vector.broadcast %cst_40 : f32 to vector<8x128xf32>
      %143 = arith.select %141, %137, %142 : vector<8x128xi1>, vector<8x128xf32>
      %144 = vector.shape_cast %143 : vector<8x128xf32> to vector<8x1x128xf32>
      %c0_41 = arith.constant 0 : index
      %c2_42 = arith.constant 2 : index
      %c0_43 = arith.constant 0 : index
      %145 = vector.load %arg8[%c0_41, %c2_42, %c0_43] : memref<8x8x128xf32, #tpu.memory_space<vmem>>, vector<8x1x128xf32>
      tpu.vector_store %arg8[%c0_41, %c2_42, %c0_43], %144 {strides = array<i32>} : memref<8x8x128xf32, #tpu.memory_space<vmem>>, vector<8x1x128xf32>,
      %146 = vector.shape_cast %139 : vector<8x1xi1> to vector<8x1xi1>
      %147 = vector.broadcast %146 : vector<8x1xi1> to vector<8x128xi1>
      %148 = arith.select %147, %137, %104 : vector<8x128xi1>, vector<8x128xf32>
      %149 = vector.shape_cast %139 : vector<8x1xi1> to vector<8x1xi1>
      %150 = vector.broadcast %149 : vector<8x1xi1> to vector<8x128xi1>
      %151 = arith.select %150, %135, %107 : vector<8x128xi1>, vector<8x128xf32>
      %c3_i32 = arith.constant 3 : i32
      %152 = arith.addi %0, %c3_i32 : i32
      %c3 = arith.constant 3 : index
      %c0_44 = arith.constant 0 : index
      %c0_45 = arith.constant 0 : index
      %153 = vector.load %arg3[%c3, %c0_44, %c0_45] : memref<8x8x512xf32, #tpu.memory_space<vmem>>, vector<1x8x512xf32>
      %154 = vector.shape_cast %153 : vector<1x8x512xf32> to vector<8x512xf32>
      %cst_46 = arith.constant dense<0.000000e+00> : vector<8x512xf32>
      %155 = tpu.matmul %148, %16, %cst_46 {dimension_numbers = #tpu.dot_dimension_numbers<[1], [0], [0], [1], [0, 0, 1, 1], [], []>} : vector<8x128xf32>, vector<128x512xf32>, vector<8x512xf32> -> vector<8x512xf32>
      %156 = arith.addf %154, %155 : vector<8x512xf32>
      %157 = vector.extract_strided_slice %156 {offsets = [0, 0], sizes = [8, 128], strides = [1, 1]} : vector<8x512xf32> to vector<8x128xf32>
      %158 = arith.negf %157 : vector<8x128xf32>
      %159 = math.exp %158 : vector<8x128xf32>
      %cst_47 = arith.constant 1.000000e+00 : f32
      %160 = vector.broadcast %cst_47 : f32 to vector<8x128xf32>
      %161 = arith.addf %160, %159 : vector<8x128xf32>
      %162 = arith.divf %160, %161 : vector<8x128xf32>
      %163 = vector.extract_strided_slice %156 {offsets = [0, 128], sizes = [8, 128], strides = [1, 1]} : vector<8x512xf32> to vector<8x128xf32>
      %164 = arith.negf %163 : vector<8x128xf32>
      %165 = math.exp %164 : vector<8x128xf32>
      %cst_48 = arith.constant 1.000000e+00 : f32
      %166 = vector.broadcast %cst_48 : f32 to vector<8x128xf32>
      %167 = arith.addf %166, %165 : vector<8x128xf32>
      %168 = arith.divf %166, %167 : vector<8x128xf32>
      %169 = vector.extract_strided_slice %156 {offsets = [0, 256], sizes = [8, 128], strides = [1, 1]} : vector<8x512xf32> to vector<8x128xf32>
      %170 = math.tanh %169 : vector<8x128xf32>
      %171 = vector.extract_strided_slice %156 {offsets = [0, 384], sizes = [8, 128], strides = [1, 1]} : vector<8x512xf32> to vector<8x128xf32>
      %172 = arith.negf %171 : vector<8x128xf32>
      %173 = math.exp %172 : vector<8x128xf32>
      %cst_49 = arith.constant 1.000000e+00 : f32
      %174 = vector.broadcast %cst_49 : f32 to vector<8x128xf32>
      %175 = arith.addf %174, %173 : vector<8x128xf32>
      %176 = arith.divf %174, %175 : vector<8x128xf32>
      %177 = arith.mulf %168, %151 : vector<8x128xf32>
      %178 = arith.mulf %162, %170 : vector<8x128xf32>
      %179 = arith.addf %177, %178 : vector<8x128xf32>
      %180 = math.tanh %179 : vector<8x128xf32>
      %181 = arith.mulf %176, %180 : vector<8x128xf32>
      %182 = vector.broadcast %152 : i32 to vector<8x1xi32>
      %183 = arith.cmpi slt, %182, %17 : vector<8x1xi32>
      %cst_50 = arith.constant 0.000000e+00 : f32
      %184 = vector.shape_cast %183 : vector<8x1xi1> to vector<8x1xi1>
      %185 = vector.broadcast %184 : vector<8x1xi1> to vector<8x128xi1>
      %186 = vector.broadcast %cst_50 : f32 to vector<8x128xf32>
      %187 = arith.select %185, %181, %186 : vector<8x128xi1>, vector<8x128xf32>
      %188 = vector.shape_cast %187 : vector<8x128xf32> to vector<8x1x128xf32>
      %c0_51 = arith.constant 0 : index
      %c3_52 = arith.constant 3 : index
      %c0_53 = arith.constant 0 : index
      %189 = vector.load %arg8[%c0_51, %c3_52, %c0_53] : memref<8x8x128xf32, #tpu.memory_space<vmem>>, vector<8x1x128xf32>
      tpu.vector_store %arg8[%c0_51, %c3_52, %c0_53], %188 {strides = array<i32>} : memref<8x8x128xf32, #tpu.memory_space<vmem>>, vector<8x1x128xf32>,
      %190 = vector.shape_cast %183 : vector<8x1xi1> to vector<8x1xi1>
      %191 = vector.broadcast %190 : vector<8x1xi1> to vector<8x128xi1>
      %192 = arith.select %191, %181, %148 : vector<8x128xi1>, vector<8x128xf32>
      %193 = vector.shape_cast %183 : vector<8x1xi1> to vector<8x1xi1>
      %194 = vector.broadcast %193 : vector<8x1xi1> to vector<8x128xi1>
      %195 = arith.select %194, %179, %151 : vector<8x128xi1>, vector<8x128xf32>
      %c4_i32 = arith.constant 4 : i32
      %196 = arith.addi %0, %c4_i32 : i32
      %c4 = arith.constant 4 : index
      %c0_54 = arith.constant 0 : index
      %c0_55 = arith.constant 0 : index
      %197 = vector.load %arg3[%c4, %c0_54, %c0_55] : memref<8x8x512xf32, #tpu.memory_space<vmem>>, vector<1x8x512xf32>
      %198 = vector.shape_cast %197 : vector<1x8x512xf32> to vector<8x512xf32>
      %cst_56 = arith.constant dense<0.000000e+00> : vector<8x512xf32>
      %199 = tpu.matmul %192, %16, %cst_56 {dimension_numbers = #tpu.dot_dimension_numbers<[1], [0], [0], [1], [0, 0, 1, 1], [], []>} : vector<8x128xf32>, vector<128x512xf32>, vector<8x512xf32> -> vector<8x512xf32>
      %200 = arith.addf %198, %199 : vector<8x512xf32>
      %201 = vector.extract_strided_slice %200 {offsets = [0, 0], sizes = [8, 128], strides = [1, 1]} : vector<8x512xf32> to vector<8x128xf32>
      %202 = arith.negf %201 : vector<8x128xf32>
      %203 = math.exp %202 : vector<8x128xf32>
      %cst_57 = arith.constant 1.000000e+00 : f32
      %204 = vector.broadcast %cst_57 : f32 to vector<8x128xf32>
      %205 = arith.addf %204, %203 : vector<8x128xf32>
      %206 = arith.divf %204, %205 : vector<8x128xf32>
      %207 = vector.extract_strided_slice %200 {offsets = [0, 128], sizes = [8, 128], strides = [1, 1]} : vector<8x512xf32> to vector<8x128xf32>
      %208 = arith.negf %207 : vector<8x128xf32>
      %209 = math.exp %208 : vector<8x128xf32>
      %cst_58 = arith.constant 1.000000e+00 : f32
      %210 = vector.broadcast %cst_58 : f32 to vector<8x128xf32>
      %211 = arith.addf %210, %209 : vector<8x128xf32>
      %212 = arith.divf %210, %211 : vector<8x128xf32>
      %213 = vector.extract_strided_slice %200 {offsets = [0, 256], sizes = [8, 128], strides = [1, 1]} : vector<8x512xf32> to vector<8x128xf32>
      %214 = math.tanh %213 : vector<8x128xf32>
      %215 = vector.extract_strided_slice %200 {offsets = [0, 384], sizes = [8, 128], strides = [1, 1]} : vector<8x512xf32> to vector<8x128xf32>
      %216 = arith.negf %215 : vector<8x128xf32>
      %217 = math.exp %216 : vector<8x128xf32>
      %cst_59 = arith.constant 1.000000e+00 : f32
      %218 = vector.broadcast %cst_59 : f32 to vector<8x128xf32>
      %219 = arith.addf %218, %217 : vector<8x128xf32>
      %220 = arith.divf %218, %219 : vector<8x128xf32>
      %221 = arith.mulf %212, %195 : vector<8x128xf32>
      %222 = arith.mulf %206, %214 : vector<8x128xf32>
      %223 = arith.addf %221, %222 : vector<8x128xf32>
      %224 = math.tanh %223 : vector<8x128xf32>
      %225 = arith.mulf %220, %224 : vector<8x128xf32>
      %226 = vector.broadcast %196 : i32 to vector<8x1xi32>
      %227 = arith.cmpi slt, %226, %17 : vector<8x1xi32>
      %cst_60 = arith.constant 0.000000e+00 : f32
      %228 = vector.shape_cast %227 : vector<8x1xi1> to vector<8x1xi1>
      %229 = vector.broadcast %228 : vector<8x1xi1> to vector<8x128xi1>
      %230 = vector.broadcast %cst_60 : f32 to vector<8x128xf32>
      %231 = arith.select %229, %225, %230 : vector<8x128xi1>, vector<8x128xf32>
      %232 = vector.shape_cast %231 : vector<8x128xf32> to vector<8x1x128xf32>
      %c0_61 = arith.constant 0 : index
      %c4_62 = arith.constant 4 : index
      %c0_63 = arith.constant 0 : index
      %233 = vector.load %arg8[%c0_61, %c4_62, %c0_63] : memref<8x8x128xf32, #tpu.memory_space<vmem>>, vector<8x1x128xf32>
      tpu.vector_store %arg8[%c0_61, %c4_62, %c0_63], %232 {strides = array<i32>} : memref<8x8x128xf32, #tpu.memory_space<vmem>>, vector<8x1x128xf32>,
      %234 = vector.shape_cast %227 : vector<8x1xi1> to vector<8x1xi1>
      %235 = vector.broadcast %234 : vector<8x1xi1> to vector<8x128xi1>
      %236 = arith.select %235, %225, %192 : vector<8x128xi1>, vector<8x128xf32>
      %237 = vector.shape_cast %227 : vector<8x1xi1> to vector<8x1xi1>
      %238 = vector.broadcast %237 : vector<8x1xi1> to vector<8x128xi1>
      %239 = arith.select %238, %223, %195 : vector<8x128xi1>, vector<8x128xf32>
      %c5_i32 = arith.constant 5 : i32
      %240 = arith.addi %0, %c5_i32 : i32
      %c5 = arith.constant 5 : index
      %c0_64 = arith.constant 0 : index
      %c0_65 = arith.constant 0 : index
      %241 = vector.load %arg3[%c5, %c0_64, %c0_65] : memref<8x8x512xf32, #tpu.memory_space<vmem>>, vector<1x8x512xf32>
      %242 = vector.shape_cast %241 : vector<1x8x512xf32> to vector<8x512xf32>
      %cst_66 = arith.constant dense<0.000000e+00> : vector<8x512xf32>
      %243 = tpu.matmul %236, %16, %cst_66 {dimension_numbers = #tpu.dot_dimension_numbers<[1], [0], [0], [1], [0, 0, 1, 1], [], []>} : vector<8x128xf32>, vector<128x512xf32>, vector<8x512xf32> -> vector<8x512xf32>
      %244 = arith.addf %242, %243 : vector<8x512xf32>
      %245 = vector.extract_strided_slice %244 {offsets = [0, 0], sizes = [8, 128], strides = [1, 1]} : vector<8x512xf32> to vector<8x128xf32>
      %246 = arith.negf %245 : vector<8x128xf32>
      %247 = math.exp %246 : vector<8x128xf32>
      %cst_67 = arith.constant 1.000000e+00 : f32
      %248 = vector.broadcast %cst_67 : f32 to vector<8x128xf32>
      %249 = arith.addf %248, %247 : vector<8x128xf32>
      %250 = arith.divf %248, %249 : vector<8x128xf32>
      %251 = vector.extract_strided_slice %244 {offsets = [0, 128], sizes = [8, 128], strides = [1, 1]} : vector<8x512xf32> to vector<8x128xf32>
      %252 = arith.negf %251 : vector<8x128xf32>
      %253 = math.exp %252 : vector<8x128xf32>
      %cst_68 = arith.constant 1.000000e+00 : f32
      %254 = vector.broadcast %cst_68 : f32 to vector<8x128xf32>
      %255 = arith.addf %254, %253 : vector<8x128xf32>
      %256 = arith.divf %254, %255 : vector<8x128xf32>
      %257 = vector.extract_strided_slice %244 {offsets = [0, 256], sizes = [8, 128], strides = [1, 1]} : vector<8x512xf32> to vector<8x128xf32>
      %258 = math.tanh %257 : vector<8x128xf32>
      %259 = vector.extract_strided_slice %244 {offsets = [0, 384], sizes = [8, 128], strides = [1, 1]} : vector<8x512xf32> to vector<8x128xf32>
      %260 = arith.negf %259 : vector<8x128xf32>
      %261 = math.exp %260 : vector<8x128xf32>
      %cst_69 = arith.constant 1.000000e+00 : f32
      %262 = vector.broadcast %cst_69 : f32 to vector<8x128xf32>
      %263 = arith.addf %262, %261 : vector<8x128xf32>
      %264 = arith.divf %262, %263 : vector<8x128xf32>
      %265 = arith.mulf %256, %239 : vector<8x128xf32>
      %266 = arith.mulf %250, %258 : vector<8x128xf32>
      %267 = arith.addf %265, %266 : vector<8x128xf32>
      %268 = math.tanh %267 : vector<8x128xf32>
      %269 = arith.mulf %264, %268 : vector<8x128xf32>
      %270 = vector.broadcast %240 : i32 to vector<8x1xi32>
      %271 = arith.cmpi slt, %270, %17 : vector<8x1xi32>
      %cst_70 = arith.constant 0.000000e+00 : f32
      %272 = vector.shape_cast %271 : vector<8x1xi1> to vector<8x1xi1>
      %273 = vector.broadcast %272 : vector<8x1xi1> to vector<8x128xi1>
      %274 = vector.broadcast %cst_70 : f32 to vector<8x128xf32>
      %275 = arith.select %273, %269, %274 : vector<8x128xi1>, vector<8x128xf32>
      %276 = vector.shape_cast %275 : vector<8x128xf32> to vector<8x1x128xf32>
      %c0_71 = arith.constant 0 : index
      %c5_72 = arith.constant 5 : index
      %c0_73 = arith.constant 0 : index
      %277 = vector.load %arg8[%c0_71, %c5_72, %c0_73] : memref<8x8x128xf32, #tpu.memory_space<vmem>>, vector<8x1x128xf32>
      tpu.vector_store %arg8[%c0_71, %c5_72, %c0_73], %276 {strides = array<i32>} : memref<8x8x128xf32, #tpu.memory_space<vmem>>, vector<8x1x128xf32>,
      %278 = vector.shape_cast %271 : vector<8x1xi1> to vector<8x1xi1>
      %279 = vector.broadcast %278 : vector<8x1xi1> to vector<8x128xi1>
      %280 = arith.select %279, %269, %236 : vector<8x128xi1>, vector<8x128xf32>
      %281 = vector.shape_cast %271 : vector<8x1xi1> to vector<8x1xi1>
      %282 = vector.broadcast %281 : vector<8x1xi1> to vector<8x128xi1>
      %283 = arith.select %282, %267, %239 : vector<8x128xi1>, vector<8x128xf32>
      %c6_i32 = arith.constant 6 : i32
      %284 = arith.addi %0, %c6_i32 : i32
      %c6 = arith.constant 6 : index
      %c0_74 = arith.constant 0 : index
      %c0_75 = arith.constant 0 : index
      %285 = vector.load %arg3[%c6, %c0_74, %c0_75] : memref<8x8x512xf32, #tpu.memory_space<vmem>>, vector<1x8x512xf32>
      %286 = vector.shape_cast %285 : vector<1x8x512xf32> to vector<8x512xf32>
      %cst_76 = arith.constant dense<0.000000e+00> : vector<8x512xf32>
      %287 = tpu.matmul %280, %16, %cst_76 {dimension_numbers = #tpu.dot_dimension_numbers<[1], [0], [0], [1], [0, 0, 1, 1], [], []>} : vector<8x128xf32>, vector<128x512xf32>, vector<8x512xf32> -> vector<8x512xf32>
      %288 = arith.addf %286, %287 : vector<8x512xf32>
      %289 = vector.extract_strided_slice %288 {offsets = [0, 0], sizes = [8, 128], strides = [1, 1]} : vector<8x512xf32> to vector<8x128xf32>
      %290 = arith.negf %289 : vector<8x128xf32>
      %291 = math.exp %290 : vector<8x128xf32>
      %cst_77 = arith.constant 1.000000e+00 : f32
      %292 = vector.broadcast %cst_77 : f32 to vector<8x128xf32>
      %293 = arith.addf %292, %291 : vector<8x128xf32>
      %294 = arith.divf %292, %293 : vector<8x128xf32>
      %295 = vector.extract_strided_slice %288 {offsets = [0, 128], sizes = [8, 128], strides = [1, 1]} : vector<8x512xf32> to vector<8x128xf32>
      %296 = arith.negf %295 : vector<8x128xf32>
      %297 = math.exp %296 : vector<8x128xf32>
      %cst_78 = arith.constant 1.000000e+00 : f32
      %298 = vector.broadcast %cst_78 : f32 to vector<8x128xf32>
      %299 = arith.addf %298, %297 : vector<8x128xf32>
      %300 = arith.divf %298, %299 : vector<8x128xf32>
      %301 = vector.extract_strided_slice %288 {offsets = [0, 256], sizes = [8, 128], strides = [1, 1]} : vector<8x512xf32> to vector<8x128xf32>
      %302 = math.tanh %301 : vector<8x128xf32>
      %303 = vector.extract_strided_slice %288 {offsets = [0, 384], sizes = [8, 128], strides = [1, 1]} : vector<8x512xf32> to vector<8x128xf32>
      %304 = arith.negf %303 : vector<8x128xf32>
      %305 = math.exp %304 : vector<8x128xf32>
      %cst_79 = arith.constant 1.000000e+00 : f32
      %306 = vector.broadcast %cst_79 : f32 to vector<8x128xf32>
      %307 = arith.addf %306, %305 : vector<8x128xf32>
      %308 = arith.divf %306, %307 : vector<8x128xf32>
      %309 = arith.mulf %300, %283 : vector<8x128xf32>
      %310 = arith.mulf %294, %302 : vector<8x128xf32>
      %311 = arith.addf %309, %310 : vector<8x128xf32>
      %312 = math.tanh %311 : vector<8x128xf32>
      %313 = arith.mulf %308, %312 : vector<8x128xf32>
      %314 = vector.broadcast %284 : i32 to vector<8x1xi32>
      %315 = arith.cmpi slt, %314, %17 : vector<8x1xi32>
      %cst_80 = arith.constant 0.000000e+00 : f32
      %316 = vector.shape_cast %315 : vector<8x1xi1> to vector<8x1xi1>
      %317 = vector.broadcast %316 : vector<8x1xi1> to vector<8x128xi1>
      %318 = vector.broadcast %cst_80 : f32 to vector<8x128xf32>
      %319 = arith.select %317, %313, %318 : vector<8x128xi1>, vector<8x128xf32>
      %320 = vector.shape_cast %319 : vector<8x128xf32> to vector<8x1x128xf32>
      %c0_81 = arith.constant 0 : index
      %c6_82 = arith.constant 6 : index
      %c0_83 = arith.constant 0 : index
      %321 = vector.load %arg8[%c0_81, %c6_82, %c0_83] : memref<8x8x128xf32, #tpu.memory_space<vmem>>, vector<8x1x128xf32>
      tpu.vector_store %arg8[%c0_81, %c6_82, %c0_83], %320 {strides = array<i32>} : memref<8x8x128xf32, #tpu.memory_space<vmem>>, vector<8x1x128xf32>,
      %322 = vector.shape_cast %315 : vector<8x1xi1> to vector<8x1xi1>
      %323 = vector.broadcast %322 : vector<8x1xi1> to vector<8x128xi1>
      %324 = arith.select %323, %313, %280 : vector<8x128xi1>, vector<8x128xf32>
      %325 = vector.shape_cast %315 : vector<8x1xi1> to vector<8x1xi1>
      %326 = vector.broadcast %325 : vector<8x1xi1> to vector<8x128xi1>
      %327 = arith.select %326, %311, %283 : vector<8x128xi1>, vector<8x128xf32>
      %c7_i32 = arith.constant 7 : i32
      %328 = arith.addi %0, %c7_i32 : i32
      %c7 = arith.constant 7 : index
      %c0_84 = arith.constant 0 : index
      %c0_85 = arith.constant 0 : index
      %329 = vector.load %arg3[%c7, %c0_84, %c0_85] : memref<8x8x512xf32, #tpu.memory_space<vmem>>, vector<1x8x512xf32>
      %330 = vector.shape_cast %329 : vector<1x8x512xf32> to vector<8x512xf32>
      %cst_86 = arith.constant dense<0.000000e+00> : vector<8x512xf32>
      %331 = tpu.matmul %324, %16, %cst_86 {dimension_numbers = #tpu.dot_dimension_numbers<[1], [0], [0], [1], [0, 0, 1, 1], [], []>} : vector<8x128xf32>, vector<128x512xf32>, vector<8x512xf32> -> vector<8x512xf32>
      %332 = arith.addf %330, %331 : vector<8x512xf32>
      %333 = vector.extract_strided_slice %332 {offsets = [0, 0], sizes = [8, 128], strides = [1, 1]} : vector<8x512xf32> to vector<8x128xf32>
      %334 = arith.negf %333 : vector<8x128xf32>
      %335 = math.exp %334 : vector<8x128xf32>
      %cst_87 = arith.constant 1.000000e+00 : f32
      %336 = vector.broadcast %cst_87 : f32 to vector<8x128xf32>
      %337 = arith.addf %336, %335 : vector<8x128xf32>
      %338 = arith.divf %336, %337 : vector<8x128xf32>
      %339 = vector.extract_strided_slice %332 {offsets = [0, 128], sizes = [8, 128], strides = [1, 1]} : vector<8x512xf32> to vector<8x128xf32>
      %340 = arith.negf %339 : vector<8x128xf32>
      %341 = math.exp %340 : vector<8x128xf32>
      %cst_88 = arith.constant 1.000000e+00 : f32
      %342 = vector.broadcast %cst_88 : f32 to vector<8x128xf32>
      %343 = arith.addf %342, %341 : vector<8x128xf32>
      %344 = arith.divf %342, %343 : vector<8x128xf32>
      %345 = vector.extract_strided_slice %332 {offsets = [0, 256], sizes = [8, 128], strides = [1, 1]} : vector<8x512xf32> to vector<8x128xf32>
      %346 = math.tanh %345 : vector<8x128xf32>
      %347 = vector.extract_strided_slice %332 {offsets = [0, 384], sizes = [8, 128], strides = [1, 1]} : vector<8x512xf32> to vector<8x128xf32>
      %348 = arith.negf %347 : vector<8x128xf32>
      %349 = math.exp %348 : vector<8x128xf32>
      %cst_89 = arith.constant 1.000000e+00 : f32
      %350 = vector.broadcast %cst_89 : f32 to vector<8x128xf32>
      %351 = arith.addf %350, %349 : vector<8x128xf32>
      %352 = arith.divf %350, %351 : vector<8x128xf32>
      %353 = arith.mulf %344, %327 : vector<8x128xf32>
      %354 = arith.mulf %338, %346 : vector<8x128xf32>
      %355 = arith.addf %353, %354 : vector<8x128xf32>
      %356 = math.tanh %355 : vector<8x128xf32>
      %357 = arith.mulf %352, %356 : vector<8x128xf32>
      %358 = vector.broadcast %328 : i32 to vector<8x1xi32>
      %359 = arith.cmpi slt, %358, %17 : vector<8x1xi32>
      %cst_90 = arith.constant 0.000000e+00 : f32
      %360 = vector.shape_cast %359 : vector<8x1xi1> to vector<8x1xi1>
      %361 = vector.broadcast %360 : vector<8x1xi1> to vector<8x128xi1>
      %362 = vector.broadcast %cst_90 : f32 to vector<8x128xf32>
      %363 = arith.select %361, %357, %362 : vector<8x128xi1>, vector<8x128xf32>
      %364 = vector.shape_cast %363 : vector<8x128xf32> to vector<8x1x128xf32>
      %c0_91 = arith.constant 0 : index
      %c7_92 = arith.constant 7 : index
      %c0_93 = arith.constant 0 : index
      %365 = vector.load %arg8[%c0_91, %c7_92, %c0_93] : memref<8x8x128xf32, #tpu.memory_space<vmem>>, vector<8x1x128xf32>
      tpu.vector_store %arg8[%c0_91, %c7_92, %c0_93], %364 {strides = array<i32>} : memref<8x8x128xf32, #tpu.memory_space<vmem>>, vector<8x1x128xf32>,
      %366 = vector.shape_cast %359 : vector<8x1xi1> to vector<8x1xi1>
      %367 = vector.broadcast %366 : vector<8x1xi1> to vector<8x128xi1>
      %368 = arith.select %367, %357, %324 : vector<8x128xi1>, vector<8x128xf32>
      %369 = vector.shape_cast %359 : vector<8x1xi1> to vector<8x1xi1>
      %370 = vector.broadcast %369 : vector<8x1xi1> to vector<8x128xi1>
      %371 = arith.select %370, %355, %327 : vector<8x128xi1>, vector<8x128xf32>
      %c0_94 = arith.constant 0 : index
      %c0_95 = arith.constant 0 : index
      %372 = vector.load %arg11[%c0_94, %c0_95] : memref<8x128xf32, #tpu.memory_space<vmem>>, vector<8x128xf32>
      tpu.vector_store %arg11[%c0_94, %c0_95], %368 {strides = array<i32>} : memref<8x128xf32, #tpu.memory_space<vmem>>, vector<8x128xf32>,
      %c0_96 = arith.constant 0 : index
      %c0_97 = arith.constant 0 : index
      %373 = vector.load %arg12[%c0_96, %c0_97] : memref<8x128xf32, #tpu.memory_space<vmem>>, vector<8x128xf32>
      tpu.vector_store %arg12[%c0_96, %c0_97], %371 {strides = array<i32>} : memref<8x128xf32, #tpu.memory_space<vmem>>, vector<8x128xf32>,
    } else {
    }
    %10 = arith.cmpi sge, %0, %6 : i32
    %11 = arith.extui %10 : i1 to i32
    %c0_i32_3 = arith.constant 0 : i32
    %12 = arith.cmpi ne, %11, %c0_i32_3 : i32
    scf.if %12 {
      %cst = arith.constant 0.000000e+00 : f32
      %16 = vector.broadcast %cst : f32 to vector<8x8x128xf32>
      %c0 = arith.constant 0 : index
      %c0_6 = arith.constant 0 : index
      %c0_7 = arith.constant 0 : index
      %17 = vector.load %arg8[%c0, %c0_6, %c0_7] : memref<8x8x128xf32, #tpu.memory_space<vmem>>, vector<8x8x128xf32>
      tpu.vector_store %arg8[%c0, %c0_6, %c0_7], %16 {strides = array<i32>} : memref<8x8x128xf32, #tpu.memory_space<vmem>>, vector<8x8x128xf32>,
    } else {
    }
    %c0_i32_4 = arith.constant 0 : i32
    %13 = arith.cmpi eq, %arg1, %c0_i32_4 : i32
    %14 = arith.extui %13 : i1 to i32
    %c0_i32_5 = arith.constant 0 : i32
    %15 = arith.cmpi ne, %14, %c0_i32_5 : i32
    scf.if %15 {
      %c0 = arith.constant 0 : index
      %c0_6 = arith.constant 0 : index
      %16 = vector.load %arg11[%c0, %c0_6] : memref<8x128xf32, #tpu.memory_space<vmem>>, vector<8x128xf32>
      %c0_7 = arith.constant 0 : index
      %c0_8 = arith.constant 0 : index
      %17 = vector.load %arg9[%c0_7, %c0_8] : memref<8x128xf32, #tpu.memory_space<vmem>>, vector<8x128xf32>
      tpu.vector_store %arg9[%c0_7, %c0_8], %16 {strides = array<i32>} : memref<8x128xf32, #tpu.memory_space<vmem>>, vector<8x128xf32>,
      %c0_9 = arith.constant 0 : index
      %c0_10 = arith.constant 0 : index
      %18 = vector.load %arg12[%c0_9, %c0_10] : memref<8x128xf32, #tpu.memory_space<vmem>>, vector<8x128xf32>
      %c0_11 = arith.constant 0 : index
      %c0_12 = arith.constant 0 : index
      %19 = vector.load %arg10[%c0_11, %c0_12] : memref<8x128xf32, #tpu.memory_space<vmem>>, vector<8x128xf32>
      tpu.vector_store %arg10[%c0_11, %c0_12], %18 {strides = array<i32>} : memref<8x128xf32, #tpu.memory_space<vmem>>, vector<8x128xf32>,
    } else {
    }
    return
  }
  func.func @transform_0(%arg0: i32, %arg1: i32, %arg2: memref<8xi32, #tpu.memory_space<smem>>) -> (i32, i32, i32) {
    %c0_i32 = arith.constant 0 : i32
    %c0_i32_0 = arith.constant 0 : i32
    return %arg1, %arg0, %c0_i32 : i32, i32, i32
  }
  func.func @transform_1(%arg0: i32, %arg1: i32, %arg2: memref<8xi32, #tpu.memory_space<smem>>) -> (i32, i32) {
    %c0_i32 = arith.constant 0 : i32
    %c0_i32_0 = arith.constant 0 : i32
    return %arg0, %c0_i32 : i32, i32
  }
  func.func @transform_2(%arg0: i32, %arg1: i32, %arg2: memref<8xi32, #tpu.memory_space<smem>>) -> (i32, i32) {
    %c0_i32 = arith.constant 0 : i32
    %c0_i32_0 = arith.constant 0 : i32
    return %arg0, %c0_i32 : i32, i32
  }
  func.func @transform_3(%arg0: i32, %arg1: i32, %arg2: memref<8xi32, #tpu.memory_space<smem>>) -> (i32, i32) {
    %c0_i32 = arith.constant 0 : i32
    %c0_i32_0 = arith.constant 0 : i32
    %c0_i32_1 = arith.constant 0 : i32
    return %c0_i32, %c0_i32_0 : i32, i32
  }
  func.func @transform_4(%arg0: i32, %arg1: i32, %arg2: memref<8xi32, #tpu.memory_space<smem>>) -> (i32, i32) {
    %c0_i32 = arith.constant 0 : i32
    %c0_i32_0 = arith.constant 0 : i32
    return %arg0, %c0_i32 : i32, i32
  }
  func.func @transform_5(%arg0: i32, %arg1: i32, %arg2: memref<8xi32, #tpu.memory_space<smem>>) -> (i32, i32, i32) {
    %c0_i32 = arith.constant 0 : i32
    %c0_i32_0 = arith.constant 0 : i32
    return %arg0, %arg1, %c0_i32 : i32, i32, i32
  }
  func.func @transform_6(%arg0: i32, %arg1: i32, %arg2: memref<8xi32, #tpu.memory_space<smem>>) -> (i32, i32) {
    %c0_i32 = arith.constant 0 : i32
    %c0_i32_0 = arith.constant 0 : i32
    return %arg0, %c0_i32 : i32, i32
  }
  func.func @transform_7(%arg0: i32, %arg1: i32, %arg2: memref<8xi32, #tpu.memory_space<smem>>) -> (i32, i32) {
    %c0_i32 = arith.constant 0 : i32
    %c0_i32_0 = arith.constant 0 : i32
    return %arg0, %c0_i32 : i32, i32
  }
}

</mosaic_0001>

<bundles_post_ra>
// kernel: tpu_custom_call.1
= control target key start
LH: loop header
LB: loop body
LE: loop exit
PB: predicated region body
PF: predicated region fallthrough
CT: control target
= control target key end

     0   :  { %s2130_s30 = smov [#allocation5]   ;;  %s3117_s0 = inlined_call_operand.vmem [shape: s32[8], index: 0, kind: input, shape index: {}]   ;;  %s3118_s1 = inlined_call_operand.hbm [shape: f32[8,8,512], index: 1, kind: input, shape index: {}]   ;;  %s3119_s2 = inlined_call_operand.vmem [shape: f32[8,128], index: 2, kind: input, shape index: {}]   ;;  %s3120_s3 = inlined_call_operand.hbm [shape: f32[8,128], index: 3, kind: input, shape index: {}]   ;;  %s3121_s4 = inlined_call_operand.hbm [shape: f32[128,512], index: 4, kind: input, shape index: {}]   ;;  %s3122_s5 = inlined_call_operand.vmem [shape: s32[8,1], index: 5, kind: input, shape index: {}]   ;;  %s3123_s6 = inlined_call_operand.hbm [shape: f32[8,8,128], index: 6, kind: output, shape index: {0}]   ;;  %s3124_s7 = inlined_call_operand.hbm [shape: f32[8,128], index: 7, kind: output, shape index: {1}]   ;;  %s3125_s8 = inlined_call_operand.hbm [shape: f32[8,128], index: 8, kind: output, shape index: {2}]  }
   0x1   :  { %s15_s29 = sshll.u32 %s3117_s0, 4  ;;  %s16_s29 = int_to_ptr.vmem [resolvable:$true] %s15_s29 }
   0x2   :  { %18 = dma.vmem_to_smem %s16_s29, 16, %s2130_s30, [#allocation4] }
   0x3   :  { %2120 = dma.done.wait [#allocation4], 16 }
   0x4   :  { %2121 = vsyncadd [#allocation4], 4294967280 }
   0x5   :  { %21 = sfence }
   0x6   :  { %22 = vsyncpa [#allocation7], 0 }
   0x7   :  { %23 = vsyncpa [#allocation10], 0 }
   0x8   :  { %24 = vsyncpa [#allocation8], 0  ;;  %s46_s11 = sshll.u32 %s3120_s3, 4  ;;  %s47_s11 = int_to_ptr.hbm [resolvable:$true] %s46_s11 }
   0x9   :  { %25 = vsyncpa [#allocation14], 0  ;;  %s2131_s12 = smov [#allocation9]   ;;  %s30_s15 = sshll.u32 %s3118_s1, 4  ;;  %s31_s15 = int_to_ptr.hbm [resolvable:$true] %s30_s15 }
   0xa   :  { %s48_s13 = sshll.u32 %s2131_s12, 4  ;;  %s2132_s16 = smov [#allocation6]   ;;  %s49_s13 = int_to_ptr.vmem [resolvable:$true] %s48_s13 }
   0xb   :  { %51 = dma.hbm_to_vmem [thread:$0]  %s47_s11, 128, %s49_s13, [#allocation10]  }
   0xc   :  { %s32_s17 = sshll.u32 %s2132_s16, 4  ;;  %s2133_s18 = smov 512   ;;  %s33_s17 = int_to_ptr.vmem [resolvable:$true] %s32_s17 }
   0xd   :  { %s2134_s19 = smov 32   ;;  %s56_s3 = sshll.u32 %s3121_s4, 4  ;;  %s57_s3 = int_to_ptr.hbm [resolvable:$true] %s56_s3 }
   0xe   :  { %38 = dma.hbm_to_vmem [thread:$0]  %s31_s15, 4096, %s33_s17, [#allocation7], %s2133_s18, %s2133_s18, %s2134_s19  }
   0xf   :  { %s2135_s22 = smov [#allocation11]  }
  0x10   :  { %s58_s23 = sshll.u32 %s2135_s22, 4  ;;  %s59_s23 = int_to_ptr.vmem [resolvable:$true] %s58_s23 }
  0x11   :  { %64 = dma.hbm_to_vmem [thread:$0]  %s57_s3, 8192, %s59_s23, [#allocation10], %s2133_s18, %s2133_s18, %s2134_s19  }
  0x12   :  { %2122 = dma.done.wait [#allocation7], 4096  }
  0x13   :  { %2123 = vsyncadd [#allocation7], 4294963200 }
  0x14   :  { %2124 = dma.done.wait [#allocation10], 8320  }
  0x15   :  { %2125 = vsyncadd [#allocation10], 4294958976  ;;  %s2200_s1 = sld [smem:[#allocation5]]  ;;  %v84_v0 = vld [vmem:[%s3119_s2] sm:$0xff]  ;;  %v86_v1 = vld [vmem:[#allocation9] sm:$0xff] }
  0x16   :  { %85 = vst [vmem:[#allocation2] sm:$0xff] %v84_v0 }
  0x17   :  { %87 = vst [vmem:[#allocation3] sm:$0xff] %v86_v1 }
  0x1b   :  { %p1720_p0 = scmp.le.s32.totalorder %s2200_s1, 0 }
  0x1d   :  { %93 = sbr.rel (%p1720_p0) target bundleno = 1443 (0x5a3), region = 41 }
  0x22   :  { %v2206_v2 = vld [vmem:[#allocation11 + $0x1e0] sm:$0xff]  ;;  %v2208_v3 = vld [vmem:[#allocation11 + $0x1e8] sm:$0xff]  ;;  %v2210_v4 = vld [vmem:[#allocation11 + $0x1f8] sm:$0xff]  ;;  %v3132_v0 = vmov 0  }
  0x23   :  { %3237 = vst [vmem:[#allocation21_spill] sm:$0xff] %v2208_v3  ;;  %165 = vmatpush.msra.mxu0 %v2206_v2  ;;  %185 = vmatpush.msra.mxu1 %v2208_v3  ;;  %v2214_v5 = vld [vmem:[#allocation11 + $0x1c0] sm:$0xff]  ;;  %v2216_v6 = vld [vmem:[#allocation11 + $0x1c8] sm:$0xff]  ;;  %v2218_v7 = vld [vmem:[#allocation11 + $0x1d8] sm:$0xff] }
  0x24   :  { %225 = vmatpush.msra.mxu3 %v2210_v4  ;;  %v2221_v8 = vld [vmem:[#allocation11 + $0x1a0] sm:$0xff]  ;;  %v2223_v9 = vld [vmem:[#allocation11 + $0x1a8] sm:$0xff]  ;;  %v2227_v10 = vld [vmem:[#allocation11 + $0x1b8] sm:$0xff]  ;;  %1768 = vset.pattern.permute.xlu0 %v3132_v0 }
  0x25   :  { %166 = vmatpush.msra.mxu0 %v2214_v5  ;;  %186 = vmatpush.msra.mxu1 %v2216_v6  ;;  %v2230_v11 = vld [vmem:[#allocation11 + $0x180] sm:$0xff]  ;;  %v2232_v12 = vld [vmem:[#allocation11 + $0x188] sm:$0xff]  ;;  %v2236_v13 = vld [vmem:[#allocation11 + $0x198] sm:$0xff] }
  0x26   :  { %226 = vmatpush.msra.mxu3 %v2218_v7  ;;  %v2239_v14 = vld [vmem:[#allocation11 + $0x160] sm:$0xff]  ;;  %v2241_v15 = vld [vmem:[#allocation11 + $0x168] sm:$0xff]  ;;  %v2245_v16 = vld [vmem:[#allocation11 + $0x178] sm:$0xff] }
  0x27   :  { %167 = vmatpush.msra.mxu0 %v2221_v8  ;;  %187 = vmatpush.msra.mxu1 %v2223_v9  ;;  %v2248_v17 = vld [vmem:[#allocation11 + $0x140] sm:$0xff]  ;;  %v2250_v18 = vld [vmem:[#allocation11 + $0x148] sm:$0xff]  ;;  %v2252_v19 = vld [vmem:[#allocation11 + $0x1f0] sm:$0xff] }
  0x28   :  { %227 = vmatpush.msra.mxu3 %v2227_v10  ;;  %v2256_v20 = vld [vmem:[#allocation11 + $0x158] sm:$0xff]  ;;  %v2258_v21 = vld [vmem:[#allocation11 + $0x1d0] sm:$0xff]  ;;  %v2261_v22 = vld [vmem:[#allocation11 + $0x120] sm:$0xff]  ;;  %205 = vmatpush.msra.mxu2 %v2252_v19 }
  0x29   :  { %168 = vmatpush.msra.mxu0 %v2230_v11  ;;  %188 = vmatpush.msra.mxu1 %v2232_v12  ;;  %v2263_v23 = vld [vmem:[#allocation11 + $0x128] sm:$0xff]  ;;  %v2268_v24 = vld [vmem:[#allocation11 + $0x138] sm:$0xff]  ;;  %v2270_v25 = vld [vmem:[#allocation11 + $0x1b0] sm:$0xff] }
  0x2a   :  { %228 = vmatpush.msra.mxu3 %v2236_v13  ;;  %v2273_v26 = vld [vmem:[#allocation11 + $0x100] sm:$0xff]  ;;  %v2275_v27 = vld [vmem:[#allocation11 + $0x108] sm:$0xff]  ;;  %206 = vmatpush.msra.mxu2 %v2258_v21  ;;  %v2280_v28 = vld [vmem:[#allocation11 + $0x118] sm:$0xff] }
  0x2b   :  { %169 = vmatpush.msra.mxu0 %v2239_v14  ;;  %189 = vmatpush.msra.mxu1 %v2241_v15  ;;  %v2282_v29 = vld [vmem:[#allocation11 + $0x190] sm:$0xff]  ;;  %v2285_v30 = vld [vmem:[#allocation11 + $0xe0] sm:$0xff]  ;;  %v2287_v31 = vld [vmem:[#allocation11 + $0xe8] sm:$0xff] }
  0x2c   :  { %229 = vmatpush.msra.mxu3 %v2245_v16  ;;  %207 = vmatpush.msra.mxu2 %v2270_v25  ;;  %v2292_v32 = vld [vmem:[#allocation11 + $0xf8] sm:$0xff]  ;;  %v2294_v33 = vld [vmem:[#allocation11 + $0x170] sm:$0xff]  ;;  %v2297_v34 = vld [vmem:[#allocation11 + $0xc0] sm:$0xff] }
  0x2d   :  { %170 = vmatpush.msra.mxu0 %v2248_v17  ;;  %190 = vmatpush.msra.mxu1 %v2250_v18  ;;  %3238 = vst [vmem:[#allocation22_spill] sm:$0xff] %v2297_v34  ;;  %v2299_v35 = vld [vmem:[#allocation11 + $0xc8] sm:$0xff]  ;;  %v2304_v36 = vld [vmem:[#allocation11 + $0xd8] sm:$0xff]  ;;  %v2306_v37 = vld [vmem:[#allocation11 + $0x150] sm:$0xff] }
  0x2e   :  { %230 = vmatpush.msra.mxu3 %v2256_v20  ;;  %3239 = vst [vmem:[#allocation23_spill] sm:$0xff] %v2299_v35  ;;  %208 = vmatpush.msra.mxu2 %v2282_v29  ;;  %v2309_v38 = vld [vmem:[#allocation11 + $0xa0] sm:$0xff]  ;;  %v2311_v39 = vld [vmem:[#allocation11 + $0xa8] sm:$0xff]  ;;  %v2316_v40 = vld [vmem:[#allocation11 + $0xb8] sm:$0xff] }
  0x2f   :  { %171 = vmatpush.msra.mxu0 %v2261_v22  ;;  %191 = vmatpush.msra.mxu1 %v2263_v23  ;;  %3240 = vst [vmem:[#allocation24_spill] sm:$0xff] %v2304_v36  ;;  %v2318_v41 = vld [vmem:[#allocation11 + $0x130] sm:$0xff]  ;;  %v2321_v42 = vld [vmem:[#allocation11 + $0x80] sm:$0xff]  ;;  %v2323_v43 = vld [vmem:[#allocation11 + $0x88] sm:$0xff] }
  0x30   :  { %231 = vmatpush.msra.mxu3 %v2268_v24  ;;  %3241 = vst [vmem:[#allocation25_spill] sm:$0xff] %v2309_v38  ;;  %209 = vmatpush.msra.mxu2 %v2294_v33  ;;  %v2328_v44 = vld [vmem:[#allocation11 + $0x98] sm:$0xff]  ;;  %v2330_v45 = vld [vmem:[#allocation11 + $0x110] sm:$0xff]  ;;  %v2333_v46 = vld [vmem:[#allocation11 + $0x60] sm:$0xff] }
  0x31   :  { %172 = vmatpush.msra.mxu0 %v2273_v26  ;;  %192 = vmatpush.msra.mxu1 %v2275_v27  ;;  %3242 = vst [vmem:[#allocation26_spill] sm:$0xff] %v2311_v39  ;;  %v2335_v47 = vld [vmem:[#allocation11 + $0x68] sm:$0xff]  ;;  %v2340_v48 = vld [vmem:[#allocation11 + $0x78] sm:$0xff]  ;;  %v2342_v49 = vld [vmem:[#allocation11 + $0xf0] sm:$0xff] }
  0x32   :  { %232 = vmatpush.msra.mxu3 %v2280_v28  ;;  %3243 = vst [vmem:[#allocation27_spill] sm:$0xff] %v2316_v40  ;;  %210 = vmatpush.msra.mxu2 %v2306_v37  ;;  %v2345_v50 = vld [vmem:[#allocation11 + $0x40] sm:$0xff]  ;;  %v2347_v51 = vld [vmem:[#allocation11 + $0x48] sm:$0xff]  ;;  %v2352_v52 = vld [vmem:[#allocation11 + $0x58] sm:$0xff] }
  0x33   :  { %173 = vmatpush.msra.mxu0 %v2285_v30  ;;  %193 = vmatpush.msra.mxu1 %v2287_v31  ;;  %3244 = vst [vmem:[#allocation28_spill] sm:$0xff] %v2321_v42  ;;  %v2354_v53 = vld [vmem:[#allocation11 + $0xd0] sm:$0xff]  ;;  %v2357_v54 = vld [vmem:[#allocation11 + $0x20] sm:$0xff]  ;;  %v2359_v55 = vld [vmem:[#allocation11 + $0x28] sm:$0xff] }
  0x34   :  { %233 = vmatpush.msra.mxu3 %v2292_v32  ;;  %3245 = vst [vmem:[#allocation29_spill] sm:$0xff] %v2323_v43  ;;  %211 = vmatpush.msra.mxu2 %v2318_v41  ;;  %v2365_v56 = vld [vmem:[%s3122_s5] sm:$0xff]  ;;  %v2369_v57 = vld [vmem:[#allocation11 + $0x38] sm:$0xff]  ;;  %v2371_v58 = vld [vmem:[#allocation11 + $0xb0] sm:$0xff] }
  0x35   :  { %174 = vmatpush.msra.mxu0 %v2297_v34  ;;  %194 = vmatpush.msra.mxu1 %v2299_v35  ;;  %3246 = vst [vmem:[#allocation30_spill] sm:$0xff] %v2328_v44  ;;  %v2374_v59 = vld [vmem:[#allocation11] sm:$0xff]  ;;  %v2376_v60 = vld [vmem:[#allocation11 + $0x8] sm:$0xff]  ;;  %v2381_v61 = vld [vmem:[#allocation11 + $0x18] sm:$0xff]  ;;  %vm1724_vm0 = vcmp.gt.s32.totalorder %v2365_v56, 0  ;;  %vm1728_vm1 = vcmp.gt.s32.totalorder %v2365_v56, 1 }
  0x36   :  { %234 = vmatpush.msra.mxu3 %v2304_v36  ;;  %3247 = vst [vmem:[#allocation31_spill] sm:$0xff] %v2333_v46  ;;  %212 = vmatpush.msra.mxu2 %v2330_v45  ;;  %v2383_v62 = vld [vmem:[#allocation2] sm:$0xff]  ;;  %v2390_v63 = vld [vmem:[#allocation11 + $0x90] sm:$0xff]  ;;  %v314_v1 = vsel %vm1724_vm0, 1, %v3132_v0  ;;  %vm1748_vm2 = vcmp.gt.s32.totalorder %v2365_v56, 6 }
  0x37   :  { %175 = vmatpush.msra.mxu0 %v2309_v38  ;;  %195 = vmatpush.msra.mxu1 %v2311_v39  ;;  %3248 = vst [vmem:[#allocation32_spill] sm:$0xff] %v2335_v47  ;;  %v2413_v0 = vld [vmem:[#allocation11 + $0x10] sm:$0xff] }
  0x38   :  { %235 = vmatpush.msra.mxu3 %v2316_v40  ;;  %3249 = vst [vmem:[#allocation33_spill] sm:$0xff] %v2340_v48  ;;  %213 = vmatpush.msra.mxu2 %v2342_v49 }
  0x39   :  { %176 = vmatpush.msra.mxu0 %v2321_v42  ;;  %196 = vmatpush.msra.mxu1 %v2323_v43  ;;  %3250 = vst [vmem:[#allocation34_spill] sm:$0xff] %v2345_v50 }
  0x3a   :  { %236 = vmatpush.msra.mxu3 %v2328_v44  ;;  %3251 = vst [vmem:[#allocation35_spill] sm:$0xff] %v2347_v51  ;;  %214 = vmatpush.msra.mxu2 %v2354_v53 }
  0x3b   :  { %177 = vmatpush.msra.mxu0 %v2333_v46  ;;  %197 = vmatpush.msra.mxu1 %v2335_v47  ;;  %3252 = vst [vmem:[#allocation36_spill] sm:$0xff] %v2352_v52 }
  0x3c   :  { %3253 = vst [vmem:[#allocation37_spill] sm:$0xff] %v2354_v53  ;;  %237 = vmatpush.msra.mxu3 %v2340_v48  ;;  %215 = vmatpush.msra.mxu2 %v2371_v58 }
  0x3d   :  { %3254 = vst [vmem:[#allocation38_spill] sm:$0xff] %v2357_v54  ;;  %178 = vmatpush.msra.mxu0 %v2345_v50  ;;  %198 = vmatpush.msra.mxu1 %v2347_v51 }
  0x3e   :  { %3255 = vst [vmem:[#allocation39_spill] sm:$0xff] %v2359_v55  ;;  %238 = vmatpush.msra.mxu3 %v2352_v52  ;;  %216 = vmatpush.msra.mxu2 %v2390_v63 }
  0x3f   :  { %3256 = vst [vmem:[#allocation40_spill] sm:$0xff] %v2365_v56  ;;  %179 = vmatpush.msra.mxu0 %v2357_v54  ;;  %199 = vmatpush.msra.mxu1 %v2359_v55 }
  0x40   :  { %3257 = vst [vmem:[#allocation41_spill] sm:$0xff] %v2369_v57  ;;  %239 = vmatpush.msra.mxu3 %v2369_v57  ;;  %v2397_v57 = vld [vmem:[#allocation11 + $0x70] sm:$0xff]  ;;  %316 = vperm.xlu0 %1768, %v314_v1   ;;  %v3268_v1 = vmov 0  }
  0x41   :  { %3258 = vst [vmem:[#allocation42_spill] sm:$0xff] %v2371_v58  ;;  %180 = vmatpush.msra.mxu0 %v2374_v59  ;;  %200 = vmatpush.msra.mxu1 %v2376_v60 }
  0x42   :  { %3259 = vst [vmem:[#allocation43_spill] sm:$0xff] %v2374_v59  ;;  %240 = vmatpush.msra.mxu3 %v2381_v61  ;;  %181 = vmatmul.f32.vlgmr.msra.gmra.mxu0 %v2383_v62 }
  0x43   :  { %3260 = vst [vmem:[#allocation44_spill] sm:$0xff] %v2376_v60  ;;  %201 = vmatmul.f32.vlgmr.msra.gmra.mxu1 %v2383_v62  ;;  %241 = vmatmul.f32.vlgmr.msra.gmra.mxu3 %v2383_v62  ;;  %v2401_v60 = vld [vmem:[#allocation11 + $0x50] sm:$0xff] }
  0x44   :  { %3261 = vst [vmem:[#allocation45_spill] sm:$0xff] %v2381_v61  ;;  %351 = vmatpush.msrb.mxu0 %v2206_v2  ;;  %217 = vmatpush.msra.mxu2 %v2397_v57  ;;  %v2406_v61 = vld [vmem:[#allocation11 + $0x30] sm:$0xff] }
  0x45   :  { %3262 = vst [vmem:[#allocation46_spill] sm:$0xff] %v2383_v62  ;;  %371 = vmatpush.msrb.mxu1 %v2208_v3  ;;  %411 = vmatpush.msrb.mxu3 %v2210_v4  ;;  %v500_v3 = vsel %vm1728_vm1, 1, %v3268_v1 }
  0x46   :  { %3263 = vst [vmem:[#allocation47_spill] sm:$0xff] %v2390_v63  ;;  %352 = vmatpush.msrb.mxu0 %v2214_v5  ;;  %218 = vmatpush.msra.mxu2 %v2401_v60 }
  0x47   :  { %3264 = vst [vmem:[#allocation48_spill] sm:$0xff] %v2397_v57  ;;  %372 = vmatpush.msrb.mxu1 %v2216_v6  ;;  %412 = vmatpush.msrb.mxu3 %v2218_v7 }
  0x48   :  { %3265 = vst [vmem:[#allocation49_spill] sm:$0xff] %v2401_v60  ;;  %353 = vmatpush.msrb.mxu0 %v2221_v8  ;;  %219 = vmatpush.msra.mxu2 %v2406_v61 }
  0x49   :  { %3266 = vst [vmem:[#allocation50_spill] sm:$0xff] %v2406_v61  ;;  %373 = vmatpush.msrb.mxu1 %v2223_v9  ;;  %413 = vmatpush.msrb.mxu3 %v2227_v10 }
  0x4a   :  { %3267 = vst [vmem:[#allocation51_spill] sm:$0xff] %v2413_v0  ;;  %354 = vmatpush.msrb.mxu0 %v2230_v11  ;;  %220 = vmatpush.msra.mxu2 %v2413_v0  ;;  %v3270_v56 = vld [vmem:[#allocation44_spill] sm:$0xff] }
  0x4b   :  { %374 = vmatpush.msrb.mxu1 %v2232_v12  ;;  %221 = vmatmul.f32.vlgmr.msra.gmra.mxu2 %v2383_v62  ;;  %v3271_v62 = vld [vmem:[#allocation45_spill] sm:$0xff] }
  0x4c   :  { %502 = vperm.xlu0 %1768, %v500_v3   ;;  %391 = vmatpush.msrb.mxu2 %v2252_v19  ;;  %v1430_v3 = vsel %vm1748_vm2, 1, %v3268_v1  ;;  %v3272_v1 = vld [vmem:[#allocation21_spill] sm:$0xff] }
  0x4d   :  { %414 = vmatpush.msrb.mxu3 %v2236_v13  ;;  %355 = vmatpush.msrb.mxu0 %v2239_v14 }
  0x4e   :  { %375 = vmatpush.msrb.mxu1 %v2241_v15  ;;  %392 = vmatpush.msrb.mxu2 %v2258_v21 }
  0x4f   :  { %415 = vmatpush.msrb.mxu3 %v2245_v16  ;;  %356 = vmatpush.msrb.mxu0 %v2248_v17 }
  0x50   :  { %376 = vmatpush.msrb.mxu1 %v2250_v18  ;;  %393 = vmatpush.msrb.mxu2 %v2270_v25 }
  0x51   :  { %416 = vmatpush.msrb.mxu3 %v2256_v20  ;;  %357 = vmatpush.msrb.mxu0 %v2261_v22 }
  0x52   :  { %377 = vmatpush.msrb.mxu1 %v2263_v23  ;;  %394 = vmatpush.msrb.mxu2 %v2282_v29 }
  0x53   :  { %417 = vmatpush.msrb.mxu3 %v2268_v24  ;;  %358 = vmatpush.msrb.mxu0 %v2273_v26 }
  0x54   :  { %1432 = vperm.xlu0 %1768, %v1430_v3   ;;  %395 = vmatpush.msrb.mxu2 %v2294_v33  ;;  %v3269_v3 = vld [vmem:[#allocation41_spill] sm:$0xff] }
  0x55   :  { %378 = vmatpush.msrb.mxu1 %v2275_v27  ;;  %418 = vmatpush.msrb.mxu3 %v2280_v28 }
  0x56   :  { %359 = vmatpush.msrb.mxu0 %v2285_v30  ;;  %396 = vmatpush.msrb.mxu2 %v2306_v37 }
  0x57   :  { %379 = vmatpush.msrb.mxu1 %v2287_v31  ;;  %419 = vmatpush.msrb.mxu3 %v2292_v32 }
  0x58   :  { %360 = vmatpush.msrb.mxu0 %v2297_v34  ;;  %397 = vmatpush.msrb.mxu2 %v2318_v41 }
  0x59   :  { %380 = vmatpush.msrb.mxu1 %v2299_v35  ;;  %420 = vmatpush.msrb.mxu3 %v2304_v36 }
  0x5a   :  { %361 = vmatpush.msrb.mxu0 %v2309_v38  ;;  %398 = vmatpush.msrb.mxu2 %v2330_v45 }
  0x5b   :  { %381 = vmatpush.msrb.mxu1 %v2311_v39  ;;  %421 = vmatpush.msrb.mxu3 %v2316_v40 }
  0x5c   :  { %362 = vmatpush.msrb.mxu0 %v2321_v42  ;;  %399 = vmatpush.msrb.mxu2 %v2342_v49 }
  0x5d   :  { %382 = vmatpush.msrb.mxu1 %v2323_v43  ;;  %422 = vmatpush.msrb.mxu3 %v2328_v44 }
  0x5e   :  { %363 = vmatpush.msrb.mxu0 %v2333_v46  ;;  %400 = vmatpush.msrb.mxu2 %v2354_v53 }
  0x5f   :  { %383 = vmatpush.msrb.mxu1 %v2335_v47  ;;  %423 = vmatpush.msrb.mxu3 %v2340_v48 }
  0x60   :  { %364 = vmatpush.msrb.mxu0 %v2345_v50  ;;  %401 = vmatpush.msrb.mxu2 %v2371_v58 }
  0x61   :  { %384 = vmatpush.msrb.mxu1 %v2347_v51  ;;  %424 = vmatpush.msrb.mxu3 %v2352_v52 }
  0x62   :  { %365 = vmatpush.msrb.mxu0 %v2357_v54  ;;  %402 = vmatpush.msrb.mxu2 %v2390_v63 }
  0x63   :  { %385 = vmatpush.msrb.mxu1 %v2359_v55  ;;  %425 = vmatpush.msrb.mxu3 %v3269_v3 }
  0x64   :  { %366 = vmatpush.msrb.mxu0 %v2374_v59  ;;  %403 = vmatpush.msrb.mxu2 %v2397_v57 }
  0x65   :  { %386 = vmatpush.msrb.mxu1 %v3270_v56  ;;  %426 = vmatpush.msrb.mxu3 %v3271_v62 }
  0x66   :  { %537 = vmatpush.msra.mxu0 %v2206_v2  ;;  %404 = vmatpush.msrb.mxu2 %v2401_v60 }
  0x67   :  { %557 = vmatpush.msra.mxu1 %v3272_v1  ;;  %597 = vmatpush.msra.mxu3 %v2210_v4 }
  0x68   :  { %538 = vmatpush.msra.mxu0 %v2214_v5  ;;  %405 = vmatpush.msrb.mxu2 %v2406_v61 }
  0x69   :  { %558 = vmatpush.msra.mxu1 %v2216_v6  ;;  %598 = vmatpush.msra.mxu3 %v2218_v7 }
  0x6a   :  { %539 = vmatpush.msra.mxu0 %v2221_v8  ;;  %406 = vmatpush.msrb.mxu2 %v2413_v0 }
  0x6b   :  { %559 = vmatpush.msra.mxu1 %v2223_v9  ;;  %599 = vmatpush.msra.mxu3 %v2227_v10 }
  0x6c   :  { %577 = vmatpush.msra.mxu2 %v2252_v19  ;;  %540 = vmatpush.msra.mxu0 %v2230_v11 }
  0x6d   :  { %560 = vmatpush.msra.mxu1 %v2232_v12  ;;  %600 = vmatpush.msra.mxu3 %v2236_v13 }
  0x6e   :  { %578 = vmatpush.msra.mxu2 %v2258_v21  ;;  %541 = vmatpush.msra.mxu0 %v2239_v14 }
  0x6f   :  { %561 = vmatpush.msra.mxu1 %v2241_v15  ;;  %601 = vmatpush.msra.mxu3 %v2245_v16 }
  0x70   :  { %579 = vmatpush.msra.mxu2 %v2270_v25  ;;  %542 = vmatpush.msra.mxu0 %v2248_v17 }
  0x71   :  { %562 = vmatpush.msra.mxu1 %v2250_v18  ;;  %602 = vmatpush.msra.mxu3 %v2256_v20 }
  0x72   :  { %580 = vmatpush.msra.mxu2 %v2282_v29  ;;  %543 = vmatpush.msra.mxu0 %v2261_v22 }
  0x73   :  { %563 = vmatpush.msra.mxu1 %v2263_v23  ;;  %603 = vmatpush.msra.mxu3 %v2268_v24 }
  0x74   :  { %581 = vmatpush.msra.mxu2 %v2294_v33  ;;  %544 = vmatpush.msra.mxu0 %v2273_v26 }
  0x75   :  { %564 = vmatpush.msra.mxu1 %v2275_v27  ;;  %604 = vmatpush.msra.mxu3 %v2280_v28 }
  0x76   :  { %582 = vmatpush.msra.mxu2 %v2306_v37  ;;  %545 = vmatpush.msra.mxu0 %v2285_v30 }
  0x77   :  { %565 = vmatpush.msra.mxu1 %v2287_v31  ;;  %605 = vmatpush.msra.mxu3 %v2292_v32 }
  0x78   :  { %583 = vmatpush.msra.mxu2 %v2318_v41  ;;  %546 = vmatpush.msra.mxu0 %v2297_v34 }
  0x79   :  { %566 = vmatpush.msra.mxu1 %v2299_v35  ;;  %606 = vmatpush.msra.mxu3 %v2304_v36 }
  0x7a   :  { %584 = vmatpush.msra.mxu2 %v2330_v45  ;;  %547 = vmatpush.msra.mxu0 %v2309_v38 }
  0x7b   :  { %567 = vmatpush.msra.mxu1 %v2311_v39  ;;  %607 = vmatpush.msra.mxu3 %v2316_v40 }
  0x7c   :  { %585 = vmatpush.msra.mxu2 %v2342_v49  ;;  %548 = vmatpush.msra.mxu0 %v2321_v42 }
  0x7d   :  { %568 = vmatpush.msra.mxu1 %v2323_v43  ;;  %608 = vmatpush.msra.mxu3 %v2328_v44 }
  0x7e   :  { %586 = vmatpush.msra.mxu2 %v2354_v53  ;;  %549 = vmatpush.msra.mxu0 %v2333_v46 }
  0x7f   :  { %569 = vmatpush.msra.mxu1 %v2335_v47  ;;  %609 = vmatpush.msra.mxu3 %v2340_v48 }
  0x80   :  { %587 = vmatpush.msra.mxu2 %v2371_v58  ;;  %550 = vmatpush.msra.mxu0 %v2345_v50 }
  0x81   :  { %570 = vmatpush.msra.mxu1 %v2347_v51  ;;  %610 = vmatpush.msra.mxu3 %v2352_v52  ;;  %v3273_v51 = vmov 0  }
  0x82   :  { %588 = vmatpush.msra.mxu2 %v2390_v63  ;;  %551 = vmatpush.msra.mxu0 %v2357_v54  ;;  %v162_v54 = vld [vmem:[#allocation6 + $0x8] sm:$0xff] }
  0x83   :  { %571 = vmatpush.msra.mxu1 %v2359_v55  ;;  %611 = vmatpush.msra.mxu3 %v3269_v3  ;;  %v161_v55 = vld [vmem:[#allocation6] sm:$0xff] }
  0x84   :  { %589 = vmatpush.msra.mxu2 %v2397_v57  ;;  %552 = vmatpush.msra.mxu0 %v2374_v59 }
  0x85   :  { %572 = vmatpush.msra.mxu1 %v3270_v56  ;;  %612 = vmatpush.msra.mxu3 %v3271_v62 }
  0x86   :  { %590 = vmatpush.msra.mxu2 %v2401_v60  ;;  %1769 = vset.pattern.permute.xlu1 %v3273_v51  ;;  %v164_v60 = vld [vmem:[#allocation6 + $0x18] sm:$0xff] }
  0x87   :  { %1770 = vset.pattern.permute.xlu2 %v3273_v51 }
  0x88   :  { %591 = vmatpush.msra.mxu2 %v2406_v61 }
  0x8a   :  { %592 = vmatpush.msra.mxu2 %v2413_v0  ;;  %v163_v0 = vld [vmem:[#allocation6 + $0x10] sm:$0xff] }
  0xb2   :  { %v317_v53 = vpop.permute.xlu0 %316 }
  0xb3   :  { %vm318_vm11 = vcmp.eq.s32.totalorder %v317_v53, 1 }
  0xbf   :  { %v182_v52 = vpop.f32.mrf.mxu0 }
  0xc0   :  { %v245_v3 = vadd.f32 %v182_v52, %v161_v55  ;;  %v202_v50 = vpop.f32.mrf.mxu1 }
  0xc1   :  { %v246_v59 = vadd.f32 %v202_v50, %v162_v54 }
  0xc2   :  { %v1721_v48 = vmul.f32 -1.442695, %v245_v3 }
  0xc3   :  { %v1722_v56 = vmul.f32 -1.442695, %v246_v59 }
  0xc4   :  { %1771 = vpow2.f32 %v1721_v48 }
  0xc5   :  { %1773 = vpow2.f32 %v1722_v56 }
  0xc6   :  { %v242_v62 = vpop.f32.mrf.mxu3 }
  0xc7   :  { %v248_v57 = vadd.f32 %v242_v62, %v164_v60 }
  0xc9   :  { %v1723_v47 = vmul.f32 -1.442695, %v248_v57 }
  0xca   :  { %v1772_v46 = vpop.eup %1771 }
  0xcb   :  { %v1774_v51 = vpop.eup %1773  ;;  %v252_v44 = vadd.f32 1.0, %v1772_v46  ;;  %1775 = vpow2.f32 %v1723_v47 }
  0xcc   :  { %v271_v61 = vadd.f32 1.0, %v1774_v51 }
  0xcd   :  { %1777 = vrcp.f32 %v252_v44  ;;  %v264_v62 = vand.u32 2147483648, %v252_v44  ;;  %v262_v46 = vand.u32 2147483647, %v252_v44  ;;  %vm258_vm5 = vweird.f32 %v252_v44 }
  0xce   :  { %1779 = vrcp.f32 %v271_v61  ;;  %v222_v63 = vpop.f32.mrf.mxu2  ;;  %v283_v47 = vand.u32 2147483648, %v271_v61  ;;  %v281_v43 = vand.u32 2147483647, %v271_v61  ;;  %vm277_vm7 = vweird.f32 %v271_v61 }
  0xcf   :  { %v247_v55 = vadd.f32 %v222_v63, %v163_v0  ;;  %vm263_vm8 = vcmp.eq.f32.partialorder %v262_v46, 8.507059e+37 }
  0xd0   :  { %vm282_vm10 = vcmp.eq.f32.partialorder %v281_v43, 8.507059e+37 }
  0xd1   :  { %v1776_v52 = vpop.eup %1775 }
  0xd2   :  { %v291_v50 = vadd.f32 1.0, %v1776_v52  ;;  %v265_v52 = vor.u32 1.1754944e-38, %v264_v62 }
  0xd3   :  { %v1778_v54 = vpop.eup %1777 }
  0xd4   :  { %v1780_v59 = vpop.eup %1779  ;;  %v254_v48 = vmul.f32 %v1778_v54, %v252_v44  ;;  %1781 = vrcp.f32 %v291_v50  ;;  %vm259_vm3 = vweird.f32 %v1778_v54  ;;  %v303_v62 = vand.u32 2147483648, %v291_v50 }
  0xd5   :  { %v273_v56 = vmul.f32 %v1780_v59, %v271_v61  ;;  %1783 = vtanh.f32 %v247_v55  ;;  %vm278_vm4 = vweird.f32 %v1780_v59  ;;  %vm260_vm6 = vmor %vm258_vm5, %vm259_vm3  ;;  %vm297_vm13 = vweird.f32 %v291_v50 }
  0xd6   :  { %v255_v60 = vsub.f32 1.0, %v254_v48  ;;  %v160_v48 = vld [vmem:[#allocation3] sm:$0xff]  ;;  %vm279_vm9 = vmor %vm277_vm7, %vm278_vm4  ;;  %v301_v61 = vand.u32 2147483647, %v291_v50 }
  0xd7   :  { %v274_v57 = vsub.f32 1.0, %v273_v56  ;;  %v284_v56 = vor.u32 1.1754944e-38, %v283_v47 }
  0xd8   :  { %v256_v3 = vmul.f32 %v1778_v54, %v255_v60  ;;  %vm302_vm15 = vcmp.eq.f32.partialorder %v301_v61, 8.507059e+37 }
  0xd9   :  { %v275_v51 = vmul.f32 %v1780_v59, %v274_v57 }
  0xda   :  { %v1782_v42 = vpop.eup %1781  ;;  %v257_v40 = vadd.f32 %v1778_v54, %v256_v3 }
  0xdb   :  { %v1784_v63 = vpop.eup %1783  ;;  %v293_v0 = vmul.f32 %v1782_v42, %v291_v50  ;;  %v276_v58 = vadd.f32 %v1780_v59, %v275_v51  ;;  %vm298_vm12 = vweird.f32 %v1782_v42 }
  0xdc   :  { %v261_v55 = vsel %vm260_vm6, %v1778_v54, %v257_v40  ;;  %vm299_vm14 = vmor %vm297_vm13, %vm298_vm12 }
  0xdd   :  { %v294_v60 = vsub.f32 1.0, %v293_v0  ;;  %v266_v39 = vsel %vm263_vm8, %v265_v52, %v261_v55  ;;  %v280_v38 = vsel %vm279_vm9, %v1780_v59, %v276_v58  ;;  %v304_v58 = vor.u32 1.1754944e-38, %v303_v62  ;;  %v3274_v59 = vld [vmem:[#allocation46_spill] sm:$0xff] }
  0xde   :  { %v308_v57 = vmul.f32 %v1784_v63, %v266_v39  ;;  %v285_v36 = vsel %vm282_vm10, %v284_v56, %v280_v38 }
  0xdf   :  { %v295_v3 = vmul.f32 %v1782_v42, %v294_v60  ;;  %v307_v44 = vmul.f32 %v285_v36, %v160_v48 }
  0xe1   :  { %v309_v35 = vadd.f32 %v308_v57, %v307_v44  ;;  %v296_v34 = vadd.f32 %v1782_v42, %v295_v3 }
  0xe3   :  { %1785 = vtanh.f32 %v309_v35  ;;  %v2547_v40 = vsel %vm318_vm11, %v309_v35, %v160_v48  ;;  %v300_v54 = vsel %vm299_vm14, %v1782_v42, %v296_v34  ;;  %v350_v48 = vld [vmem:[#allocation6 + $0x38] sm:$0xff] }
  0xe4   :  { %v305_v38 = vsel %vm302_vm15, %v304_v58, %v300_v54  ;;  %v349_v54 = vld [vmem:[#allocation6 + $0x30] sm:$0xff] }
  0xe9   :  { %v1786_v39 = vpop.eup %1785 }
  0xea   :  { %v311_v43 = vmul.f32 %v1786_v39, %v305_v38 }
  0xec   :  { %v319_v36 = vsel %vm318_vm11, %v311_v43, 0.0  ;;  %v2552_v46 = vsel %vm318_vm11, %v311_v43, %v3274_v59 }
  0xed   :  { %v321_v47 = vrot.slane %v319_v36, 1  ;;  %v322_v51 = vrot.slane %v319_v36, 2  ;;  %v323_v63 = vrot.slane %v319_v36, 3  ;;  %335 = vst [vmem:[#allocation12] sm:$0x1] %v319_v36  ;;  %367 = vmatmul.f32.vlgmr.msrb.gmra.mxu0 %v2552_v46  ;;  %387 = vmatmul.f32.vlgmr.msrb.gmra.mxu1 %v2552_v46  ;;  %v324_v34 = vrot.slane %v319_v36, 4 }
  0xee   :  { %407 = vmatmul.f32.vlgmr.msrb.gmra.mxu2 %v2552_v46  ;;  %427 = vmatmul.f32.vlgmr.msrb.gmra.mxu3 %v2552_v46  ;;  %v325_v35 = vrot.slane %v319_v36, 5  ;;  %v326_v42 = vrot.slane %v319_v36, 6  ;;  %v327_v53 = vrot.slane %v319_v36, 7 }
  0xef   :  { %336 = vst [vmem:[#allocation12 + $0x8] sm:$0x1] %v321_v47  ;;  %723 = vmatpush.msrb.mxu0 %v2206_v2  ;;  %743 = vmatpush.msrb.mxu1 %v3272_v1  ;;  %v3275_v2 = vld [vmem:[#allocation22_spill] sm:$0xff] }
  0xf0   :  { %337 = vst [vmem:[#allocation12 + $0x10] sm:$0x1] %v322_v51  ;;  %763 = vmatpush.msrb.mxu2 %v2252_v19  ;;  %783 = vmatpush.msrb.mxu3 %v2210_v4  ;;  %v3276_v4 = vld [vmem:[#allocation23_spill] sm:$0xff]  ;;  %v3291_v19 = vld [vmem:[#allocation34_spill] sm:$0xff] }
  0xf1   :  { %338 = vst [vmem:[#allocation12 + $0x18] sm:$0x1] %v323_v63  ;;  %724 = vmatpush.msrb.mxu0 %v2214_v5  ;;  %744 = vmatpush.msrb.mxu1 %v2216_v6  ;;  %v3277_v5 = vld [vmem:[#allocation37_spill] sm:$0xff]  ;;  %v3278_v6 = vld [vmem:[#allocation24_spill] sm:$0xff] }
  0xf2   :  { %339 = vst [vmem:[#allocation12 + $0x20] sm:$0x1] %v324_v34  ;;  %764 = vmatpush.msrb.mxu2 %v2258_v21  ;;  %784 = vmatpush.msrb.mxu3 %v2218_v7  ;;  %v3279_v7 = vld [vmem:[#allocation25_spill] sm:$0xff]  ;;  %v3303_v34 = vld [vmem:[#allocation40_spill] sm:$0xff] }
  0xf3   :  { %340 = vst [vmem:[#allocation12 + $0x28] sm:$0x1] %v325_v35  ;;  %725 = vmatpush.msrb.mxu0 %v2221_v8  ;;  %745 = vmatpush.msrb.mxu1 %v2223_v9  ;;  %v3280_v8 = vld [vmem:[#allocation26_spill] sm:$0xff]  ;;  %v3293_v21 = vld [vmem:[#allocation49_spill] sm:$0xff]  ;;  %vm1732_vm0 = vcmp.gt.s32.totalorder %v3303_v34, 2  ;;  %vm1736_vm4 = vcmp.gt.s32.totalorder %v3303_v34, 3 }
  0xf4   :  { %341 = vst [vmem:[#allocation12 + $0x30] sm:$0x1] %v326_v42  ;;  %765 = vmatpush.msrb.mxu2 %v2270_v25  ;;  %785 = vmatpush.msrb.mxu3 %v2227_v10  ;;  %v3281_v9 = vld [vmem:[#allocation42_spill] sm:$0xff]  ;;  %v3282_v10 = vld [vmem:[#allocation27_spill] sm:$0xff]  ;;  %vm1752_vm12 = vcmp.gt.s32.totalorder %v3303_v34, 7 }
  0xf5   :  { %342 = vst [vmem:[#allocation12 + $0x38] sm:$0x1] %v327_v53  ;;  %726 = vmatpush.msrb.mxu0 %v2230_v11  ;;  %746 = vmatpush.msrb.mxu1 %v2232_v12  ;;  %v3283_v11 = vld [vmem:[#allocation28_spill] sm:$0xff]  ;;  %v3284_v12 = vld [vmem:[#allocation29_spill] sm:$0xff]  ;;  %v3297_v25 = vld [vmem:[#allocation50_spill] sm:$0xff] }
  0xf6   :  { %766 = vmatpush.msrb.mxu2 %v2282_v29  ;;  %786 = vmatpush.msrb.mxu3 %v2236_v13  ;;  %v3285_v13 = vld [vmem:[#allocation47_spill] sm:$0xff] }
  0xf7   :  { %727 = vmatpush.msrb.mxu0 %v2239_v14  ;;  %747 = vmatpush.msrb.mxu1 %v2241_v15  ;;  %v3286_v14 = vld [vmem:[#allocation30_spill] sm:$0xff]  ;;  %v3287_v15 = vld [vmem:[#allocation31_spill] sm:$0xff] }
  0xf8   :  { %767 = vmatpush.msrb.mxu2 %v2294_v33  ;;  %787 = vmatpush.msrb.mxu3 %v2245_v16  ;;  %v3288_v16 = vld [vmem:[#allocation32_spill] sm:$0xff]  ;;  %v3301_v29 = vld [vmem:[#allocation51_spill] sm:$0xff] }
  0xf9   :  { %728 = vmatpush.msrb.mxu0 %v2248_v17  ;;  %748 = vmatpush.msrb.mxu1 %v2250_v18  ;;  %v3289_v17 = vld [vmem:[#allocation48_spill] sm:$0xff]  ;;  %v3290_v18 = vld [vmem:[#allocation33_spill] sm:$0xff]  ;;  %v2642_v34 = vld [vmem:[#allocation11 + $0x1e0] sm:$0xff] }
  0xfa   :  { %768 = vmatpush.msrb.mxu2 %v2306_v37  ;;  %788 = vmatpush.msrb.mxu3 %v2256_v20  ;;  %v3292_v20 = vld [vmem:[#allocation35_spill] sm:$0xff] }
  0xfb   :  { %729 = vmatpush.msrb.mxu0 %v2261_v22  ;;  %749 = vmatpush.msrb.mxu1 %v2263_v23  ;;  %v3294_v22 = vld [vmem:[#allocation36_spill] sm:$0xff]  ;;  %v3295_v23 = vld [vmem:[#allocation38_spill] sm:$0xff] }
  0xfc   :  { %769 = vmatpush.msrb.mxu2 %v2318_v41  ;;  %789 = vmatpush.msrb.mxu3 %v2268_v24  ;;  %v3296_v24 = vld [vmem:[#allocation39_spill] sm:$0xff] }
  0xfd   :  { %730 = vmatpush.msrb.mxu0 %v2273_v26  ;;  %750 = vmatpush.msrb.mxu1 %v2275_v27  ;;  %v3298_v26 = vld [vmem:[#allocation41_spill] sm:$0xff]  ;;  %v3299_v27 = vld [vmem:[#allocation43_spill] sm:$0xff] }
  0xfe   :  { %770 = vmatpush.msrb.mxu2 %v2330_v45  ;;  %790 = vmatpush.msrb.mxu3 %v2280_v28  ;;  %v3300_v28 = vld [vmem:[#allocation44_spill] sm:$0xff] }
  0xff   :  { %731 = vmatpush.msrb.mxu0 %v2285_v30  ;;  %751 = vmatpush.msrb.mxu1 %v2287_v31  ;;  %v3302_v30 = vld [vmem:[#allocation45_spill] sm:$0xff]  ;;  %v347_v31 = vld [vmem:[#allocation6 + $0x20] sm:$0xff] }
 0x100   :  { %771 = vmatpush.msrb.mxu2 %v2342_v49  ;;  %791 = vmatpush.msrb.mxu3 %v2292_v32  ;;  %v348_v32 = vld [vmem:[#allocation6 + $0x28] sm:$0xff] }
 0x101   :  { %732 = vmatpush.msrb.mxu0 %v3275_v2  ;;  %752 = vmatpush.msrb.mxu1 %v3276_v4  ;;  %v3304_v2 = vmov 0  }
 0x102   :  { %772 = vmatpush.msrb.mxu2 %v3277_v5  ;;  %792 = vmatpush.msrb.mxu3 %v3278_v6  ;;  %v686_v4 = vsel %vm1732_vm0, 1, %v3304_v2 }
 0x103   :  { %733 = vmatpush.msrb.mxu0 %v3279_v7  ;;  %753 = vmatpush.msrb.mxu1 %v3280_v8 }
 0x104   :  { %773 = vmatpush.msrb.mxu2 %v3281_v9  ;;  %793 = vmatpush.msrb.mxu3 %v3282_v10 }
 0x105   :  { %734 = vmatpush.msrb.mxu0 %v3283_v11  ;;  %754 = vmatpush.msrb.mxu1 %v3284_v12 }
 0x106   :  { %774 = vmatpush.msrb.mxu2 %v3285_v13  ;;  %794 = vmatpush.msrb.mxu3 %v3286_v14 }
 0x107   :  { %735 = vmatpush.msrb.mxu0 %v3287_v15  ;;  %755 = vmatpush.msrb.mxu1 %v3288_v16 }
 0x108   :  { %775 = vmatpush.msrb.mxu2 %v3289_v17  ;;  %795 = vmatpush.msrb.mxu3 %v3290_v18 }
 0x109   :  { %736 = vmatpush.msrb.mxu0 %v3291_v19  ;;  %756 = vmatpush.msrb.mxu1 %v3292_v20 }
 0x10a   :  { %776 = vmatpush.msrb.mxu2 %v3293_v21  ;;  %796 = vmatpush.msrb.mxu3 %v3294_v22 }
 0x10b   :  { %737 = vmatpush.msrb.mxu0 %v3295_v23  ;;  %757 = vmatpush.msrb.mxu1 %v3296_v24 }
 0x10c   :  { %777 = vmatpush.msrb.mxu2 %v3297_v25  ;;  %797 = vmatpush.msrb.mxu3 %v3298_v26 }
 0x10d   :  { %738 = vmatpush.msrb.mxu0 %v3299_v27  ;;  %758 = vmatpush.msrb.mxu1 %v3300_v28 }
 0x10e   :  { %778 = vmatpush.msrb.mxu2 %v3301_v29  ;;  %798 = vmatpush.msrb.mxu3 %v3302_v30 }
 0x10f   :  { %688 = vperm.xlu1 %1769, %v686_v4  }
 0x16a   :  { %v368_v33 = vpop.f32.mrf.mxu0  ;;  %v388_v1 = vpop.f32.mrf.mxu1 }
 0x16b   :  { %v431_v50 = vadd.f32 %v368_v33, %v347_v31  ;;  %v432_v0 = vadd.f32 %v388_v1, %v348_v32  ;;  %v872_v1 = vsel %vm1736_vm4, 1, %v3304_v2 }
 0x16c   :  { %874 = vperm.xlu1 %1769, %v872_v1   ;;  %v2699_v1 = vld [vmem:[#allocation11 + $0x178] sm:$0xff] }
 0x16d   :  { %v1725_v52 = vmul.f32 -1.442695, %v431_v50  ;;  %v1726_v55 = vmul.f32 -1.442695, %v432_v0 }
 0x16f   :  { %1787 = vpow2.f32 %v1725_v52 }
 0x170   :  { %1789 = vpow2.f32 %v1726_v55 }
 0x171   :  { %v428_v56 = vpop.f32.mrf.mxu3  ;;  %v408_v58 = vpop.f32.mrf.mxu2 }
 0x172   :  { %v434_v60 = vadd.f32 %v428_v56, %v350_v48  ;;  %v433_v38 = vadd.f32 %v408_v58, %v349_v54  ;;  %v503_v48 = vpop.permute.xlu0 %502 }
 0x173   :  { %vm504_vm10 = vcmp.eq.s32.totalorder %v503_v48, 1  ;;  %v2715_v48 = vld [vmem:[#allocation11 + $0x128] sm:$0xff] }
 0x174   :  { %v1727_v57 = vmul.f32 -1.442695, %v434_v60 }
 0x175   :  { %v1788_v3 = vpop.eup %1787 }
 0x176   :  { %v1790_v44 = vpop.eup %1789  ;;  %v438_v62 = vadd.f32 1.0, %v1788_v3  ;;  %1791 = vpow2.f32 %v1727_v57 }
 0x177   :  { %v457_v61 = vadd.f32 1.0, %v1790_v44 }
 0x178   :  { %1793 = vrcp.f32 %v438_v62  ;;  %v448_v42 = vand.u32 2147483647, %v438_v62  ;;  %v450_v53 = vand.u32 2147483648, %v438_v62  ;;  %vm444_vm3 = vweird.f32 %v438_v62 }
 0x179   :  { %1795 = vrcp.f32 %v457_v61  ;;  %v469_v6 = vand.u32 2147483648, %v457_v61  ;;  %v467_v8 = vand.u32 2147483647, %v457_v61  ;;  %vm463_vm5 = vweird.f32 %v457_v61 }
 0x17a   :  { %v451_v14 = vor.u32 1.1754944e-38, %v450_v53  ;;  %vm449_vm8 = vcmp.eq.f32.partialorder %v448_v42, 8.507059e+37  ;;  %v2648_v42 = vld [vmem:[#allocation11 + $0x1f0] sm:$0xff]  ;;  %v2651_v53 = vld [vmem:[#allocation11 + $0x1f8] sm:$0xff] }
 0x17b   :  { %v470_v19 = vor.u32 1.1754944e-38, %v469_v6  ;;  %vm468_vm9 = vcmp.eq.f32.partialorder %v467_v8, 8.507059e+37  ;;  %v2654_v6 = vld [vmem:[#allocation11 + $0x1c0] sm:$0xff]  ;;  %v2660_v8 = vld [vmem:[#allocation11 + $0x1d0] sm:$0xff] }
 0x17c   :  { %v1792_v39 = vpop.eup %1791 }
 0x17d   :  { %v477_v43 = vadd.f32 1.0, %v1792_v39 }
 0x17e   :  { %v1794_v36 = vpop.eup %1793 }
 0x17f   :  { %v1796_v59 = vpop.eup %1795  ;;  %v440_v47 = vmul.f32 %v1794_v36, %v438_v62  ;;  %1797 = vrcp.f32 %v477_v43  ;;  %vm445_vm1 = vweird.f32 %v1794_v36  ;;  %v489_v57 = vand.u32 2147483648, %v477_v43 }
 0x180   :  { %v459_v51 = vmul.f32 %v1796_v59, %v457_v61  ;;  %1799 = vtanh.f32 %v433_v38  ;;  %vm464_vm2 = vweird.f32 %v1796_v59  ;;  %vm446_vm6 = vmor %vm444_vm3, %vm445_vm1  ;;  %vm483_vm13 = vweird.f32 %v477_v43 }
 0x181   :  { %v441_v63 = vsub.f32 1.0, %v440_v47  ;;  %vm465_vm7 = vmor %vm463_vm5, %vm464_vm2  ;;  %v487_v44 = vand.u32 2147483647, %v477_v43  ;;  %v1616_v62 = vsel %vm1752_vm12, 1, %v3304_v2  ;;  %v490_v54 = vor.u32 1.1754944e-38, %v489_v57  ;;  %v2729_v57 = vld [vmem:[#allocation11 + $0x118] sm:$0xff] }
 0x182   :  { %v460_v35 = vsub.f32 1.0, %v459_v51  ;;  %1618 = vperm.xlu1 %1769, %v1616_v62   ;;  %v2739_v62 = vld [vmem:[#allocation11 + $0xf8] sm:$0xff] }
 0x183   :  { %v442_v7 = vmul.f32 %v1794_v36, %v441_v63  ;;  %vm488_vm15 = vcmp.eq.f32.partialorder %v487_v44, 8.507059e+37  ;;  %v2732_v44 = vld [vmem:[#allocation11 + $0xe0] sm:$0xff] }
 0x184   :  { %v461_v10 = vmul.f32 %v1796_v59, %v460_v35 }
 0x185   :  { %v1798_v11 = vpop.eup %1797  ;;  %v443_v12 = vadd.f32 %v1794_v36, %v442_v7  ;;  %v2657_v7 = vld [vmem:[#allocation11 + $0x1c8] sm:$0xff] }
 0x186   :  { %v462_v15 = vadd.f32 %v1796_v59, %v461_v10  ;;  %v479_v16 = vmul.f32 %v1798_v11, %v477_v43  ;;  %v1800_v18 = vpop.eup %1799  ;;  %vm484_vm11 = vweird.f32 %v1798_v11  ;;  %v2663_v10 = vld [vmem:[#allocation11 + $0x1d8] sm:$0xff] }
 0x187   :  { %v447_v20 = vsel %vm446_vm6, %v1794_v36, %v443_v12  ;;  %vm485_vm14 = vmor %vm483_vm13, %vm484_vm11  ;;  %v2669_v12 = vld [vmem:[#allocation11 + $0x1a8] sm:$0xff] }
 0x188   :  { %v452_v31 = vsel %vm449_vm8, %v451_v14, %v447_v20  ;;  %v466_v32 = vsel %vm465_vm7, %v1796_v59, %v462_v15  ;;  %v480_v33 = vsub.f32 1.0, %v479_v16  ;;  %v2672_v14 = vld [vmem:[#allocation11 + $0x1b0] sm:$0xff]  ;;  %v2675_v15 = vld [vmem:[#allocation11 + $0x1b8] sm:$0xff]  ;;  %v2678_v16 = vld [vmem:[#allocation11 + $0x180] sm:$0xff] }
 0x189   :  { %v471_v50 = vsel %vm468_vm9, %v470_v19, %v466_v32  ;;  %v494_v0 = vmul.f32 %v1800_v18, %v452_v31  ;;  %v2681_v18 = vld [vmem:[#allocation11 + $0x188] sm:$0xff]  ;;  %v2684_v19 = vld [vmem:[#allocation11 + $0x190] sm:$0xff]  ;;  %v2687_v20 = vld [vmem:[#allocation11 + $0x198] sm:$0xff] }
 0x18a   :  { %v493_v52 = vmul.f32 %v471_v50, %v2547_v40  ;;  %v481_v55 = vmul.f32 %v1798_v11, %v480_v33  ;;  %v2690_v31 = vld [vmem:[#allocation11 + $0x160] sm:$0xff]  ;;  %v2693_v32 = vld [vmem:[#allocation11 + $0x168] sm:$0xff]  ;;  %v2696_v33 = vld [vmem:[#allocation11 + $0x170] sm:$0xff] }
 0x18b   :  { %v2702_v50 = vld [vmem:[#allocation11 + $0x140] sm:$0xff] }
 0x18c   :  { %v495_v56 = vadd.f32 %v494_v0, %v493_v52  ;;  %v482_v60 = vadd.f32 %v1798_v11, %v481_v55  ;;  %v2705_v0 = vld [vmem:[#allocation11 + $0x148] sm:$0xff]  ;;  %v2709_v52 = vld [vmem:[#allocation11 + $0x158] sm:$0xff]  ;;  %v2712_v55 = vld [vmem:[#allocation11 + $0x120] sm:$0xff] }
 0x18e   :  { %1801 = vtanh.f32 %v495_v56  ;;  %v2630_v3 = vsel %vm504_vm10, %v495_v56, %v2547_v40  ;;  %v486_v61 = vsel %vm485_vm14, %v1798_v11, %v482_v60  ;;  %v2666_v11 = vld [vmem:[#allocation11 + $0x1a0] sm:$0xff]  ;;  %v2719_v56 = vld [vmem:[#allocation11 + $0x138] sm:$0xff] }
 0x18f   :  { %v491_v39 = vsel %vm488_vm15, %v490_v54, %v486_v61  ;;  %v2722_v60 = vld [vmem:[#allocation11 + $0x100] sm:$0xff]  ;;  %v2749_v54 = vld [vmem:[#allocation11 + $0xd8] sm:$0xff] }
 0x190   :  { %v2742_v61 = vld [vmem:[#allocation11 + $0xc0] sm:$0xff]  ;;  %3307 = vst [vmem:[#allocation22_spill] sm:$0xff] %v2749_v54 }
 0x191   :  { %3305 = vst [vmem:[#allocation21_spill] sm:$0xff] %v2742_v61 }
 0x194   :  { %v1802_v58 = vpop.eup %1801 }
 0x195   :  { %v497_v38 = vmul.f32 %v1802_v58, %v491_v39  ;;  %v2752_v58 = vld [vmem:[#allocation11 + $0xa0] sm:$0xff]  ;;  %v2759_v39 = vld [vmem:[#allocation11 + $0xb8] sm:$0xff] }
 0x196   :  { %3308 = vst [vmem:[#allocation23_spill] sm:$0xff] %v2752_v58 }
 0x197   :  { %v505_v36 = vsel %vm504_vm10, %v497_v38, 0.0  ;;  %v2636_v59 = vsel %vm504_vm10, %v497_v38, %v2552_v46  ;;  %v2645_v46 = vld [vmem:[#allocation11 + $0x1e8] sm:$0xff]  ;;  %3310 = vst [vmem:[#allocation24_spill] sm:$0xff] %v2759_v39  ;;  %v2762_v38 = vld [vmem:[#allocation11 + $0x80] sm:$0xff] }
 0x198   :  { %v507_v40 = vrot.slane %v505_v36, 1  ;;  %v508_v47 = vrot.slane %v505_v36, 2  ;;  %v509_v51 = vrot.slane %v505_v36, 3  ;;  %521 = vst [vmem:[#allocation12 + $0x1] sm:$0x1] %v505_v36  ;;  %553 = vmatmul.f32.vlgmr.msra.gmra.mxu0 %v2636_v59  ;;  %573 = vmatmul.f32.vlgmr.msra.gmra.mxu1 %v2636_v59  ;;  %v510_v43 = vrot.slane %v505_v36, 4 }
 0x199   :  { %593 = vmatmul.f32.vlgmr.msra.gmra.mxu2 %v2636_v59  ;;  %613 = vmatmul.f32.vlgmr.msra.gmra.mxu3 %v2636_v59  ;;  %v511_v63 = vrot.slane %v505_v36, 5  ;;  %v512_v35 = vrot.slane %v505_v36, 6  ;;  %v513_v4 = vrot.slane %v505_v36, 7  ;;  %3311 = vst [vmem:[#allocation25_spill] sm:$0xff] %v2762_v38  ;;  %v2769_v36 = vld [vmem:[#allocation11 + $0x98] sm:$0xff] }
 0x19a   :  { %522 = vst [vmem:[#allocation12 + $0x9] sm:$0x1] %v507_v40  ;;  %909 = vmatpush.msra.mxu0 %v2642_v34  ;;  %929 = vmatpush.msra.mxu1 %v2645_v46  ;;  %v2772_v40 = vld [vmem:[#allocation11 + $0x60] sm:$0xff] }
 0x19b   :  { %523 = vst [vmem:[#allocation12 + $0x11] sm:$0x1] %v508_v47  ;;  %949 = vmatpush.msra.mxu2 %v2648_v42  ;;  %969 = vmatpush.msra.mxu3 %v2651_v53  ;;  %v2779_v47 = vld [vmem:[#allocation11 + $0x78] sm:$0xff] }
 0x19c   :  { %524 = vst [vmem:[#allocation12 + $0x19] sm:$0x1] %v509_v51  ;;  %910 = vmatpush.msra.mxu0 %v2654_v6  ;;  %930 = vmatpush.msra.mxu1 %v2657_v7  ;;  %v2782_v51 = vld [vmem:[#allocation11 + $0x40] sm:$0xff] }
 0x19d   :  { %525 = vst [vmem:[#allocation12 + $0x21] sm:$0x1] %v510_v43  ;;  %950 = vmatpush.msra.mxu2 %v2660_v8  ;;  %970 = vmatpush.msra.mxu3 %v2663_v10 }
 0x19e   :  { %526 = vst [vmem:[#allocation12 + $0x29] sm:$0x1] %v511_v63  ;;  %911 = vmatpush.msra.mxu0 %v2666_v11  ;;  %931 = vmatpush.msra.mxu1 %v2669_v12 }
 0x19f   :  { %527 = vst [vmem:[#allocation12 + $0x31] sm:$0x1] %v512_v35  ;;  %951 = vmatpush.msra.mxu2 %v2672_v14  ;;  %971 = vmatpush.msra.mxu3 %v2675_v15 }
 0x1a0   :  { %528 = vst [vmem:[#allocation12 + $0x39] sm:$0x1] %v513_v4  ;;  %912 = vmatpush.msra.mxu0 %v2678_v16  ;;  %932 = vmatpush.msra.mxu1 %v2681_v18 }
 0x1a1   :  { %952 = vmatpush.msra.mxu2 %v2684_v19  ;;  %972 = vmatpush.msra.mxu3 %v2687_v20  ;;  %3313 = vst [vmem:[#allocation42_spill] sm:$0xff] %v2769_v36 }
 0x1a2   :  { %913 = vmatpush.msra.mxu0 %v2690_v31  ;;  %933 = vmatpush.msra.mxu1 %v2693_v32  ;;  %3314 = vst [vmem:[#allocation27_spill] sm:$0xff] %v2772_v40 }
 0x1a3   :  { %953 = vmatpush.msra.mxu2 %v2696_v33  ;;  %973 = vmatpush.msra.mxu3 %v2699_v1  ;;  %3316 = vst [vmem:[#allocation29_spill] sm:$0xff] %v2779_v47 }
 0x1a4   :  { %914 = vmatpush.msra.mxu0 %v2702_v50  ;;  %934 = vmatpush.msra.mxu1 %v2705_v0  ;;  %3317 = vst [vmem:[#allocation47_spill] sm:$0xff] %v2782_v51 }
 0x1a5   :  { %954 = vmatpush.msra.mxu2 %v2306_v37  ;;  %974 = vmatpush.msra.mxu3 %v2709_v52  ;;  %v2725_v37 = vld [vmem:[#allocation11 + $0x108] sm:$0xff] }
 0x1a6   :  { %915 = vmatpush.msra.mxu0 %v2712_v55  ;;  %935 = vmatpush.msra.mxu1 %v2715_v48 }
 0x1a7   :  { %955 = vmatpush.msra.mxu2 %v2318_v41  ;;  %975 = vmatpush.msra.mxu3 %v2719_v56  ;;  %v2735_v41 = vld [vmem:[#allocation11 + $0xe8] sm:$0xff] }
 0x1a8   :  { %916 = vmatpush.msra.mxu0 %v2722_v60  ;;  %936 = vmatpush.msra.mxu1 %v2725_v37 }
 0x1a9   :  { %956 = vmatpush.msra.mxu2 %v2330_v45  ;;  %976 = vmatpush.msra.mxu3 %v2729_v57  ;;  %v2745_v45 = vld [vmem:[#allocation11 + $0xc8] sm:$0xff] }
 0x1aa   :  { %917 = vmatpush.msra.mxu0 %v2732_v44  ;;  %937 = vmatpush.msra.mxu1 %v2735_v41  ;;  %3306 = vst [vmem:[#allocation46_spill] sm:$0xff] %v2745_v45 }
 0x1ab   :  { %957 = vmatpush.msra.mxu2 %v2342_v49  ;;  %977 = vmatpush.msra.mxu3 %v2739_v62  ;;  %v2755_v49 = vld [vmem:[#allocation11 + $0xa8] sm:$0xff] }
 0x1ac   :  { %918 = vmatpush.msra.mxu0 %v2742_v61  ;;  %938 = vmatpush.msra.mxu1 %v2745_v45  ;;  %3309 = vst [vmem:[#allocation37_spill] sm:$0xff] %v2755_v49 }
 0x1ad   :  { %958 = vmatpush.msra.mxu2 %v3277_v5  ;;  %978 = vmatpush.msra.mxu3 %v2749_v54  ;;  %v2765_v5 = vld [vmem:[#allocation11 + $0x88] sm:$0xff] }
 0x1ae   :  { %919 = vmatpush.msra.mxu0 %v2752_v58  ;;  %939 = vmatpush.msra.mxu1 %v2755_v49  ;;  %3312 = vst [vmem:[#allocation26_spill] sm:$0xff] %v2765_v5 }
 0x1af   :  { %959 = vmatpush.msra.mxu2 %v3281_v9  ;;  %979 = vmatpush.msra.mxu3 %v2759_v39  ;;  %v2775_v9 = vld [vmem:[#allocation11 + $0x68] sm:$0xff]  ;;  %v689_v39 = vpop.permute.xlu1 %688 }
 0x1b0   :  { %920 = vmatpush.msra.mxu0 %v2762_v38  ;;  %940 = vmatpush.msra.mxu1 %v2765_v5  ;;  %3315 = vst [vmem:[#allocation28_spill] sm:$0xff] %v2775_v9  ;;  %vm690_vm8 = vcmp.eq.s32.totalorder %v689_v39, 1 }
 0x1b1   :  { %960 = vmatpush.msra.mxu2 %v3285_v13  ;;  %980 = vmatpush.msra.mxu3 %v2769_v36  ;;  %v2785_v13 = vld [vmem:[#allocation11 + $0x48] sm:$0xff] }
 0x1b2   :  { %921 = vmatpush.msra.mxu0 %v2772_v40  ;;  %941 = vmatpush.msra.mxu1 %v2775_v9  ;;  %3318 = vst [vmem:[#allocation30_spill] sm:$0xff] %v2785_v13 }
 0x1b3   :  { %961 = vmatpush.msra.mxu2 %v3289_v17  ;;  %981 = vmatpush.msra.mxu3 %v2779_v47  ;;  %v533_v17 = vld [vmem:[#allocation6 + $0x40] sm:$0xff] }
 0x1b4   :  { %922 = vmatpush.msra.mxu0 %v2782_v51  ;;  %942 = vmatpush.msra.mxu1 %v2785_v13 }
 0x1b5   :  { %962 = vmatpush.msra.mxu2 %v3293_v21  ;;  %982 = vmatpush.msra.mxu3 %v3294_v22  ;;  %v534_v21 = vld [vmem:[#allocation6 + $0x48] sm:$0xff] }
 0x1b6   :  { %923 = vmatpush.msra.mxu0 %v3295_v23  ;;  %943 = vmatpush.msra.mxu1 %v3296_v24 }
 0x1b7   :  { %963 = vmatpush.msra.mxu2 %v3297_v25  ;;  %983 = vmatpush.msra.mxu3 %v3298_v26  ;;  %v536_v25 = vld [vmem:[#allocation6 + $0x58] sm:$0xff] }
 0x1b8   :  { %924 = vmatpush.msra.mxu0 %v3299_v27  ;;  %944 = vmatpush.msra.mxu1 %v3300_v28 }
 0x1b9   :  { %964 = vmatpush.msra.mxu2 %v3301_v29  ;;  %984 = vmatpush.msra.mxu3 %v3302_v30  ;;  %v535_v30 = vld [vmem:[#allocation6 + $0x50] sm:$0xff] }
 0x215   :  { %v554_v43 = vpop.f32.mrf.mxu0  ;;  %v574_v22 = vpop.f32.mrf.mxu1 }
 0x216   :  { %v617_v63 = vadd.f32 %v554_v43, %v533_v17  ;;  %v618_v23 = vadd.f32 %v574_v22, %v534_v21 }
 0x218   :  { %v1729_v35 = vmul.f32 -1.442695, %v617_v63  ;;  %v1730_v24 = vmul.f32 -1.442695, %v618_v23 }
 0x21a   :  { %1803 = vpow2.f32 %v1729_v35 }
 0x21b   :  { %1805 = vpow2.f32 %v1730_v24 }
 0x21c   :  { %v614_v26 = vpop.f32.mrf.mxu3  ;;  %v594_v51 = vpop.f32.mrf.mxu2 }
 0x21d   :  { %v620_v4 = vadd.f32 %v614_v26, %v536_v25  ;;  %v619_v43 = vadd.f32 %v594_v51, %v535_v30 }
 0x21f   :  { %v1731_v27 = vmul.f32 -1.442695, %v620_v4 }
 0x220   :  { %v1804_v2 = vpop.eup %1803 }
 0x221   :  { %v1806_v28 = vpop.eup %1805  ;;  %v624_v13 = vadd.f32 1.0, %v1804_v2  ;;  %1807 = vpow2.f32 %v1731_v27 }
 0x222   :  { %v643_v29 = vadd.f32 1.0, %v1806_v28 }
 0x223   :  { %1809 = vrcp.f32 %v624_v13  ;;  %v636_v25 = vand.u32 2147483648, %v624_v13  ;;  %v634_v2 = vand.u32 2147483647, %v624_v13  ;;  %vm630_vm2 = vweird.f32 %v624_v13 }
 0x224   :  { %1811 = vrcp.f32 %v643_v29  ;;  %v655_v4 = vand.u32 2147483648, %v643_v29  ;;  %v653_v28 = vand.u32 2147483647, %v643_v29  ;;  %vm649_vm4 = vweird.f32 %v643_v29 }
 0x225   :  { %vm635_vm5 = vcmp.eq.f32.partialorder %v634_v2, 8.507059e+37 }
 0x226   :  { %vm654_vm7 = vcmp.eq.f32.partialorder %v653_v28, 8.507059e+37 }
 0x227   :  { %v1808_v47 = vpop.eup %1807 }
 0x228   :  { %v663_v17 = vadd.f32 1.0, %v1808_v47  ;;  %v637_v47 = vor.u32 1.1754944e-38, %v636_v25 }
 0x229   :  { %v1810_v21 = vpop.eup %1809 }
 0x22a   :  { %v1812_v22 = vpop.eup %1811  ;;  %v626_v63 = vmul.f32 %v1810_v21, %v624_v13  ;;  %1813 = vrcp.f32 %v663_v17  ;;  %vm631_vm0 = vweird.f32 %v1810_v21  ;;  %vm669_vm10 = vweird.f32 %v663_v17 }
 0x22b   :  { %v645_v23 = vmul.f32 %v1812_v22, %v643_v29  ;;  %1815 = vtanh.f32 %v619_v43  ;;  %vm650_vm1 = vweird.f32 %v1812_v22  ;;  %vm632_vm3 = vmor %vm630_vm2, %vm631_vm0  ;;  %v675_v29 = vand.u32 2147483648, %v663_v17 }
 0x22c   :  { %v627_v35 = vsub.f32 1.0, %v626_v63  ;;  %vm651_vm6 = vmor %vm649_vm4, %vm650_vm1  ;;  %v656_v63 = vor.u32 1.1754944e-38, %v655_v4 }
 0x22d   :  { %v646_v24 = vsub.f32 1.0, %v645_v23 }
 0x22e   :  { %v628_v26 = vmul.f32 %v1810_v21, %v627_v35 }
 0x22f   :  { %v647_v27 = vmul.f32 %v1812_v22, %v646_v24 }
 0x230   :  { %v1814_v9 = vpop.eup %1813  ;;  %v629_v40 = vadd.f32 %v1810_v21, %v628_v26 }
 0x231   :  { %v665_v51 = vmul.f32 %v1814_v9, %v663_v17  ;;  %v648_v30 = vadd.f32 %v1812_v22, %v647_v27  ;;  %v1816_v43 = vpop.eup %1815  ;;  %vm670_vm9 = vweird.f32 %v1814_v9 }
 0x232   :  { %v633_v36 = vsel %vm632_vm3, %v1810_v21, %v629_v40  ;;  %vm671_vm11 = vmor %vm669_vm10, %vm670_vm9 }
 0x233   :  { %v638_v23 = vsel %vm635_vm5, %v637_v47, %v633_v36  ;;  %v666_v35 = vsub.f32 1.0, %v665_v51  ;;  %v652_v5 = vsel %vm651_vm6, %v1812_v22, %v648_v30  ;;  %v673_v36 = vand.u32 2147483647, %v663_v17  ;;  %v2834_v17 = vld [vmem:[#allocation11 + $0x150] sm:$0xff] }
 0x234   :  { %v680_v24 = vmul.f32 %v1816_v43, %v638_v23  ;;  %v657_v38 = vsel %vm654_vm7, %v656_v63, %v652_v5  ;;  %v676_v22 = vor.u32 1.1754944e-38, %v675_v29  ;;  %v2840_v51 = vld [vmem:[#allocation11 + $0x130] sm:$0xff]  ;;  %v3326_v29 = vld [vmem:[#allocation42_spill] sm:$0xff] }
 0x235   :  { %v667_v49 = vmul.f32 %v1814_v9, %v666_v35  ;;  %v679_v13 = vmul.f32 %v657_v38, %v2630_v3  ;;  %vm674_vm12 = vcmp.eq.f32.partialorder %v673_v36, 8.507059e+37  ;;  %v2846_v30 = vld [vmem:[#allocation11 + $0x110] sm:$0xff]  ;;  %v3327_v36 = vld [vmem:[#allocation27_spill] sm:$0xff] }
 0x236   :  { %v2852_v63 = vld [vmem:[#allocation11 + $0xf0] sm:$0xff] }
 0x237   :  { %v681_v25 = vadd.f32 %v680_v24, %v679_v13  ;;  %v668_v26 = vadd.f32 %v1814_v9, %v667_v49  ;;  %v2858_v43 = vld [vmem:[#allocation11 + $0xd0] sm:$0xff]  ;;  %v3322_v24 = vld [vmem:[#allocation24_spill] sm:$0xff] }
 0x238   :  { %3319 = vst [vmem:[#allocation31_spill] sm:$0xff] %v2858_v43  ;;  %v3320_v23 = vld [vmem:[#allocation37_spill] sm:$0xff] }
 0x239   :  { %1817 = vtanh.f32 %v681_v25  ;;  %v2801_v40 = vsel %vm690_vm8, %v681_v25, %v2630_v3  ;;  %v672_v21 = vsel %vm671_vm11, %v1814_v9, %v668_v26  ;;  %v2864_v35 = vld [vmem:[#allocation11 + $0xb0] sm:$0xff]  ;;  %v3324_v25 = vld [vmem:[#allocation26_spill] sm:$0xff] }
 0x23a   :  { %v677_v2 = vsel %vm674_vm12, %v676_v22, %v672_v21  ;;  %3321 = vst [vmem:[#allocation32_spill] sm:$0xff] %v2864_v35  ;;  %v3323_v13 = vld [vmem:[#allocation25_spill] sm:$0xff]  ;;  %v3328_v21 = vld [vmem:[#allocation28_spill] sm:$0xff] }
 0x23b   :  { %v2870_v26 = vld [vmem:[#allocation11 + $0x90] sm:$0xff] }
 0x23c   :  { %3325 = vst [vmem:[#allocation48_spill] sm:$0xff] %v2870_v26  ;;  %v2876_v22 = vld [vmem:[#allocation11 + $0x70] sm:$0xff] }
 0x23d   :  { %3329 = vst [vmem:[#allocation33_spill] sm:$0xff] %v2876_v22 }
 0x23f   :  { %v1818_v5 = vpop.eup %1817 }
 0x240   :  { %v683_v4 = vmul.f32 %v1818_v5, %v677_v2  ;;  %v3330_v5 = vld [vmem:[#allocation29_spill] sm:$0xff]  ;;  %v3331_v2 = vld [vmem:[#allocation47_spill] sm:$0xff] }
 0x242   :  { %v691_v38 = vsel %vm690_vm8, %v683_v4, 0.0  ;;  %v2806_v49 = vsel %vm690_vm8, %v683_v4, %v2636_v59  ;;  %v3332_v4 = vld [vmem:[#allocation30_spill] sm:$0xff] }
 0x243   :  { %v693_v27 = vrot.slane %v691_v38, 1  ;;  %v694_v28 = vrot.slane %v691_v38, 2  ;;  %v695_v47 = vrot.slane %v691_v38, 3  ;;  %707 = vst [vmem:[#allocation12 + $0x2] sm:$0x1] %v691_v38  ;;  %739 = vmatmul.f32.vlgmr.msrb.gmra.mxu0 %v2806_v49  ;;  %759 = vmatmul.f32.vlgmr.msrb.gmra.mxu1 %v2806_v49  ;;  %v696_v3 = vrot.slane %v691_v38, 4 }
 0x244   :  { %779 = vmatmul.f32.vlgmr.msrb.gmra.mxu2 %v2806_v49  ;;  %799 = vmatmul.f32.vlgmr.msrb.gmra.mxu3 %v2806_v49  ;;  %v697_v9 = vrot.slane %v691_v38, 5  ;;  %v698_v59 = vrot.slane %v691_v38, 6  ;;  %v699_v39 = vrot.slane %v691_v38, 7  ;;  %v2882_v38 = vld [vmem:[#allocation11 + $0x50] sm:$0xff] }
 0x245   :  { %708 = vst [vmem:[#allocation12 + $0xa] sm:$0x1] %v693_v27  ;;  %1095 = vmatpush.msrb.mxu0 %v2642_v34  ;;  %1115 = vmatpush.msrb.mxu1 %v2645_v46  ;;  %v2885_v27 = vld [vmem:[#allocation11 + $0x58] sm:$0xff] }
 0x246   :  { %709 = vst [vmem:[#allocation12 + $0x12] sm:$0x1] %v694_v28  ;;  %1135 = vmatpush.msrb.mxu2 %v2648_v42  ;;  %1155 = vmatpush.msrb.mxu3 %v2651_v53  ;;  %v2888_v28 = vld [vmem:[#allocation11 + $0x20] sm:$0xff] }
 0x247   :  { %710 = vst [vmem:[#allocation12 + $0x1a] sm:$0x1] %v695_v47  ;;  %1096 = vmatpush.msrb.mxu0 %v2654_v6  ;;  %1116 = vmatpush.msrb.mxu1 %v2657_v7  ;;  %v2891_v47 = vld [vmem:[#allocation11 + $0x28] sm:$0xff] }
 0x248   :  { %711 = vst [vmem:[#allocation12 + $0x22] sm:$0x1] %v696_v3  ;;  %1136 = vmatpush.msrb.mxu2 %v2660_v8  ;;  %1156 = vmatpush.msrb.mxu3 %v2663_v10  ;;  %v2894_v3 = vld [vmem:[#allocation11 + $0x30] sm:$0xff] }
 0x249   :  { %712 = vst [vmem:[#allocation12 + $0x2a] sm:$0x1] %v697_v9  ;;  %1097 = vmatpush.msrb.mxu0 %v2666_v11  ;;  %1117 = vmatpush.msrb.mxu1 %v2669_v12  ;;  %v2897_v9 = vld [vmem:[#allocation11 + $0x38] sm:$0xff] }
 0x24a   :  { %713 = vst [vmem:[#allocation12 + $0x32] sm:$0x1] %v698_v59  ;;  %1137 = vmatpush.msrb.mxu2 %v2672_v14  ;;  %1157 = vmatpush.msrb.mxu3 %v2675_v15  ;;  %v2900_v59 = vld [vmem:[#allocation11] sm:$0xff] }
 0x24b   :  { %714 = vst [vmem:[#allocation12 + $0x3a] sm:$0x1] %v699_v39  ;;  %1098 = vmatpush.msrb.mxu0 %v2678_v16  ;;  %1118 = vmatpush.msrb.mxu1 %v2681_v18  ;;  %v2903_v39 = vld [vmem:[#allocation11 + $0x8] sm:$0xff] }
 0x24c   :  { %1138 = vmatpush.msrb.mxu2 %v2684_v19  ;;  %1158 = vmatpush.msrb.mxu3 %v2687_v20  ;;  %3333 = vst [vmem:[#allocation34_spill] sm:$0xff] %v2882_v38 }
 0x24d   :  { %1099 = vmatpush.msrb.mxu0 %v2690_v31  ;;  %1119 = vmatpush.msrb.mxu1 %v2693_v32  ;;  %3334 = vst [vmem:[#allocation35_spill] sm:$0xff] %v2885_v27 }
 0x24e   :  { %1139 = vmatpush.msrb.mxu2 %v2696_v33  ;;  %1159 = vmatpush.msrb.mxu3 %v2699_v1  ;;  %3335 = vst [vmem:[#allocation49_spill] sm:$0xff] %v2888_v28 }
 0x24f   :  { %1100 = vmatpush.msrb.mxu0 %v2702_v50  ;;  %1120 = vmatpush.msrb.mxu1 %v2705_v0  ;;  %3336 = vst [vmem:[#allocation36_spill] sm:$0xff] %v2891_v47 }
 0x250   :  { %1140 = vmatpush.msrb.mxu2 %v2834_v17  ;;  %1160 = vmatpush.msrb.mxu3 %v2709_v52  ;;  %3337 = vst [vmem:[#allocation38_spill] sm:$0xff] %v2894_v3 }
 0x251   :  { %1101 = vmatpush.msrb.mxu0 %v2712_v55  ;;  %1121 = vmatpush.msrb.mxu1 %v2715_v48  ;;  %3338 = vst [vmem:[#allocation39_spill] sm:$0xff] %v2897_v9 }
 0x252   :  { %1141 = vmatpush.msrb.mxu2 %v2840_v51  ;;  %1161 = vmatpush.msrb.mxu3 %v2719_v56  ;;  %3339 = vst [vmem:[#allocation50_spill] sm:$0xff] %v2900_v59 }
 0x253   :  { %1102 = vmatpush.msrb.mxu0 %v2722_v60  ;;  %1122 = vmatpush.msrb.mxu1 %v2725_v37  ;;  %3340 = vst [vmem:[#allocation41_spill] sm:$0xff] %v2903_v39 }
 0x254   :  { %1142 = vmatpush.msrb.mxu2 %v2846_v30  ;;  %1162 = vmatpush.msrb.mxu3 %v2729_v57 }
 0x255   :  { %1103 = vmatpush.msrb.mxu0 %v2732_v44  ;;  %1123 = vmatpush.msrb.mxu1 %v2735_v41 }
 0x256   :  { %1143 = vmatpush.msrb.mxu2 %v2852_v63  ;;  %1163 = vmatpush.msrb.mxu3 %v2739_v62 }
 0x257   :  { %1104 = vmatpush.msrb.mxu0 %v2742_v61  ;;  %1124 = vmatpush.msrb.mxu1 %v2745_v45 }
 0x258   :  { %1144 = vmatpush.msrb.mxu2 %v2858_v43  ;;  %1164 = vmatpush.msrb.mxu3 %v2749_v54 }
 0x259   :  { %1105 = vmatpush.msrb.mxu0 %v2752_v58  ;;  %1125 = vmatpush.msrb.mxu1 %v3320_v23 }
 0x25a   :  { %1145 = vmatpush.msrb.mxu2 %v2864_v35  ;;  %1165 = vmatpush.msrb.mxu3 %v3322_v24 }
 0x25b   :  { %1106 = vmatpush.msrb.mxu0 %v3323_v13  ;;  %1126 = vmatpush.msrb.mxu1 %v3324_v25 }
 0x25c   :  { %1146 = vmatpush.msrb.mxu2 %v2870_v26  ;;  %1166 = vmatpush.msrb.mxu3 %v3326_v29 }
 0x25d   :  { %1107 = vmatpush.msrb.mxu0 %v3327_v36  ;;  %1127 = vmatpush.msrb.mxu1 %v3328_v21 }
 0x25e   :  { %1147 = vmatpush.msrb.mxu2 %v2876_v22  ;;  %1167 = vmatpush.msrb.mxu3 %v3330_v5  ;;  %v722_v22 = vld [vmem:[#allocation6 + $0x78] sm:$0xff] }
 0x25f   :  { %1108 = vmatpush.msrb.mxu0 %v3331_v2  ;;  %1128 = vmatpush.msrb.mxu1 %v3332_v4 }
 0x260   :  { %1148 = vmatpush.msrb.mxu2 %v2882_v38  ;;  %1168 = vmatpush.msrb.mxu3 %v2885_v27  ;;  %v720_v27 = vld [vmem:[#allocation6 + $0x68] sm:$0xff] }
 0x261   :  { %1109 = vmatpush.msrb.mxu0 %v2888_v28  ;;  %1129 = vmatpush.msrb.mxu1 %v2891_v47  ;;  %v2906_v28 = vld [vmem:[#allocation11 + $0x10] sm:$0xff]  ;;  %v2909_v47 = vld [vmem:[#allocation11 + $0x18] sm:$0xff] }
 0x262   :  { %1149 = vmatpush.msrb.mxu2 %v2894_v3  ;;  %1169 = vmatpush.msrb.mxu3 %v2897_v9  ;;  %3341 = vst [vmem:[#allocation43_spill] sm:$0xff] %v2906_v28  ;;  %v719_v3 = vld [vmem:[#allocation6 + $0x60] sm:$0xff] }
 0x263   :  { %1110 = vmatpush.msrb.mxu0 %v2900_v59  ;;  %1130 = vmatpush.msrb.mxu1 %v2903_v39  ;;  %3342 = vst [vmem:[#allocation44_spill] sm:$0xff] %v2909_v47 }
 0x264   :  { %1150 = vmatpush.msrb.mxu2 %v2906_v28  ;;  %1170 = vmatpush.msrb.mxu3 %v2909_v47  ;;  %v721_v47 = vld [vmem:[#allocation6 + $0x70] sm:$0xff] }
 0x2c0   :  { %v740_v38 = vpop.f32.mrf.mxu0  ;;  %v760_v9 = vpop.f32.mrf.mxu1 }
 0x2c1   :  { %v803_v4 = vadd.f32 %v740_v38, %v719_v3  ;;  %v804_v2 = vadd.f32 %v760_v9, %v720_v27 }
 0x2c3   :  { %v1733_v5 = vmul.f32 -1.442695, %v803_v4  ;;  %v1734_v59 = vmul.f32 -1.442695, %v804_v2 }
 0x2c5   :  { %1819 = vpow2.f32 %v1733_v5 }
 0x2c6   :  { %1821 = vpow2.f32 %v1734_v59 }
 0x2c7   :  { %v800_v39 = vpop.f32.mrf.mxu3  ;;  %v780_v13 = vpop.f32.mrf.mxu2 }
 0x2c8   :  { %v806_v21 = vadd.f32 %v800_v39, %v722_v22  ;;  %v805_v38 = vadd.f32 %v780_v13, %v721_v47 }
 0x2ca   :  { %v1735_v36 = vmul.f32 -1.442695, %v806_v21 }
 0x2cb   :  { %v1820_v29 = vpop.eup %1819 }
 0x2cc   :  { %v1822_v28 = vpop.eup %1821  ;;  %v810_v26 = vadd.f32 1.0, %v1820_v29  ;;  %1823 = vpow2.f32 %v1735_v36  ;;  %v1963_v29 = vld [vmem:[%s3122_s5] sm:$0xff] }
 0x2cd   :  { %v829_v25 = vadd.f32 1.0, %v1822_v28  ;;  %vm1740_vm13 = vcmp.gt.s32.totalorder %v1963_v29, 4  ;;  %v3343_v28 = vmov 0   ;;  %vm1744_vm1 = vcmp.gt.s32.totalorder %v1963_v29, 5  ;;  %v875_v29 = vpop.permute.xlu1 %874 }
 0x2ce   :  { %1825 = vrcp.f32 %v810_v26  ;;  %v820_v21 = vand.u32 2147483647, %v810_v26  ;;  %v822_v22 = vand.u32 2147483648, %v810_v26  ;;  %v1058_v59 = vsel %vm1740_vm13, 1, %v3343_v28 }
 0x2cf   :  { %1827 = vrcp.f32 %v829_v25  ;;  %v841_v39 = vand.u32 2147483648, %v829_v25  ;;  %1060 = vperm.xlu2 %1770, %v1058_v59   ;;  %vm816_vm0 = vweird.f32 %v810_v26  ;;  %vm835_vm2 = vweird.f32 %v829_v25 }
 0x2d0   :  { %vm821_vm5 = vcmp.eq.f32.partialorder %v820_v21, 8.507059e+37  ;;  %vm876_vm7 = vcmp.eq.s32.totalorder %v875_v29, 1  ;;  %v3352_v29 = vld [vmem:[#allocation25_spill] sm:$0xff] }
 0x2d1   :  { %v842_v54 = vor.u32 1.1754944e-38, %v841_v39 }
 0x2d2   :  { %v1824_v24 = vpop.eup %1823 }
 0x2d3   :  { %v849_v27 = vadd.f32 1.0, %v1824_v24  ;;  %v839_v24 = vand.u32 2147483647, %v829_v25 }
 0x2d4   :  { %v1826_v4 = vpop.eup %1825 }
 0x2d5   :  { %v1828_v2 = vpop.eup %1827  ;;  %v812_v5 = vmul.f32 %v1826_v4, %v810_v26  ;;  %1829 = vrcp.f32 %v849_v27  ;;  %vm817_vm14 = vweird.f32 %v1826_v4  ;;  %vm840_vm6 = vcmp.eq.f32.partialorder %v839_v24, 8.507059e+37 }
 0x2d6   :  { %v831_v3 = vmul.f32 %v1828_v2, %v829_v25  ;;  %1831 = vtanh.f32 %v805_v38  ;;  %vm836_vm15 = vweird.f32 %v1828_v2  ;;  %vm818_vm3 = vmor %vm816_vm0, %vm817_vm14  ;;  %v823_v38 = vor.u32 1.1754944e-38, %v822_v22 }
 0x2d7   :  { %v813_v9 = vsub.f32 1.0, %v812_v5  ;;  %vm837_vm4 = vmor %vm835_vm2, %vm836_vm15  ;;  %vm855_vm9 = vweird.f32 %v849_v27 }
 0x2d8   :  { %v832_v36 = vsub.f32 1.0, %v831_v3 }
 0x2d9   :  { %v814_v13 = vmul.f32 %v1826_v4, %v813_v9 }
 0x2da   :  { %v833_v47 = vmul.f32 %v1828_v2, %v832_v36  ;;  %v1244_v36 = vsel %vm1744_vm1, 1, %v3343_v28 }
 0x2db   :  { %v1830_v35 = vpop.eup %1829  ;;  %v815_v5 = vadd.f32 %v1826_v4, %v814_v13  ;;  %1246 = vperm.xlu2 %1770, %v1244_v36   ;;  %v3348_v36 = vld [vmem:[#allocation23_spill] sm:$0xff] }
 0x2dc   :  { %v834_v23 = vadd.f32 %v1828_v2, %v833_v47  ;;  %v851_v3 = vmul.f32 %v1830_v35, %v849_v27  ;;  %v1832_v58 = vpop.eup %1831  ;;  %vm856_vm8 = vweird.f32 %v1830_v35 }
 0x2dd   :  { %v819_v43 = vsel %vm818_vm3, %v1826_v4, %v815_v5  ;;  %v861_v4 = vand.u32 2147483648, %v849_v27  ;;  %vm857_vm10 = vmor %vm855_vm9, %vm856_vm8 }
 0x2de   :  { %v824_v9 = vsel %vm821_vm5, %v823_v38, %v819_v43  ;;  %v838_v45 = vsel %vm837_vm4, %v1828_v2, %v834_v23  ;;  %v852_v59 = vsub.f32 1.0, %v851_v3  ;;  %v859_v23 = vand.u32 2147483647, %v849_v27  ;;  %v3344_v38 = vld [vmem:[#allocation21_spill] sm:$0xff]  ;;  %v3345_v3 = vld [vmem:[#allocation46_spill] sm:$0xff] }
 0x2df   :  { %v843_v61 = vsel %vm840_vm6, %v842_v54, %v838_v45  ;;  %v866_v13 = vmul.f32 %v1832_v58, %v824_v9  ;;  %v862_v54 = vor.u32 1.1754944e-38, %v861_v4  ;;  %v3346_v9 = vld [vmem:[#allocation31_spill] sm:$0xff]  ;;  %v3355_v4 = vld [vmem:[#allocation42_spill] sm:$0xff] }
 0x2e0   :  { %v865_v26 = vmul.f32 %v843_v61, %v2801_v40  ;;  %v853_v25 = vmul.f32 %v1830_v35, %v852_v59  ;;  %vm860_vm11 = vcmp.eq.f32.partialorder %v859_v23, 8.507059e+37  ;;  %v3347_v59 = vld [vmem:[#allocation22_spill] sm:$0xff]  ;;  %v3356_v23 = vld [vmem:[#allocation27_spill] sm:$0xff] }
 0x2e2   :  { %v867_v22 = vadd.f32 %v866_v13, %v865_v26  ;;  %v854_v47 = vadd.f32 %v1830_v35, %v853_v25  ;;  %v3349_v13 = vld [vmem:[#allocation37_spill] sm:$0xff]  ;;  %v3350_v26 = vld [vmem:[#allocation32_spill] sm:$0xff] }
 0x2e3   :  { %v3351_v25 = vld [vmem:[#allocation24_spill] sm:$0xff] }
 0x2e4   :  { %1833 = vtanh.f32 %v867_v22  ;;  %v2920_v43 = vsel %vm876_vm7, %v867_v22, %v2801_v40  ;;  %v858_v45 = vsel %vm857_vm10, %v1830_v35, %v854_v47  ;;  %v3353_v22 = vld [vmem:[#allocation26_spill] sm:$0xff]  ;;  %v3354_v47 = vld [vmem:[#allocation48_spill] sm:$0xff] }
 0x2e5   :  { %v863_v58 = vsel %vm860_vm11, %v862_v54, %v858_v45  ;;  %v3357_v45 = vld [vmem:[#allocation28_spill] sm:$0xff]  ;;  %v3358_v54 = vld [vmem:[#allocation33_spill] sm:$0xff] }
 0x2ea   :  { %v1834_v61 = vpop.eup %1833 }
 0x2eb   :  { %v869_v2 = vmul.f32 %v1834_v61, %v863_v58  ;;  %v3359_v61 = vld [vmem:[#allocation29_spill] sm:$0xff]  ;;  %v3360_v58 = vld [vmem:[#allocation47_spill] sm:$0xff] }
 0x2ed   :  { %v877_v21 = vsel %vm876_vm7, %v869_v2, 0.0  ;;  %v2925_v28 = vsel %vm876_vm7, %v869_v2, %v2806_v49  ;;  %v3361_v2 = vld [vmem:[#allocation30_spill] sm:$0xff] }
 0x2ee   :  { %v879_v39 = vrot.slane %v877_v21, 1  ;;  %v880_v24 = vrot.slane %v877_v21, 2  ;;  %v881_v5 = vrot.slane %v877_v21, 3  ;;  %893 = vst [vmem:[#allocation12 + $0x3] sm:$0x1] %v877_v21  ;;  %925 = vmatmul.f32.vlgmr.msra.gmra.mxu0 %v2925_v28  ;;  %945 = vmatmul.f32.vlgmr.msra.gmra.mxu1 %v2925_v28  ;;  %v882_v40 = vrot.slane %v877_v21, 4 }
 0x2ef   :  { %965 = vmatmul.f32.vlgmr.msra.gmra.mxu2 %v2925_v28  ;;  %985 = vmatmul.f32.vlgmr.msra.gmra.mxu3 %v2925_v28  ;;  %v883_v35 = vrot.slane %v877_v21, 5  ;;  %v884_v49 = vrot.slane %v877_v21, 6  ;;  %v885_v27 = vrot.slane %v877_v21, 7  ;;  %v3362_v21 = vld [vmem:[#allocation34_spill] sm:$0xff] }
 0x2f0   :  { %894 = vst [vmem:[#allocation12 + $0xb] sm:$0x1] %v879_v39  ;;  %1281 = vmatpush.msra.mxu0 %v2642_v34  ;;  %1301 = vmatpush.msra.mxu1 %v2645_v46  ;;  %v3363_v39 = vld [vmem:[#allocation35_spill] sm:$0xff] }
 0x2f1   :  { %895 = vst [vmem:[#allocation12 + $0x13] sm:$0x1] %v880_v24  ;;  %1321 = vmatpush.msra.mxu2 %v2648_v42  ;;  %1341 = vmatpush.msra.mxu3 %v2651_v53  ;;  %v3364_v24 = vld [vmem:[#allocation49_spill] sm:$0xff] }
 0x2f2   :  { %896 = vst [vmem:[#allocation12 + $0x1b] sm:$0x1] %v881_v5  ;;  %1282 = vmatpush.msra.mxu0 %v2654_v6  ;;  %1302 = vmatpush.msra.mxu1 %v2657_v7  ;;  %v3365_v5 = vld [vmem:[#allocation36_spill] sm:$0xff] }
 0x2f3   :  { %897 = vst [vmem:[#allocation12 + $0x23] sm:$0x1] %v882_v40  ;;  %1322 = vmatpush.msra.mxu2 %v2660_v8  ;;  %1342 = vmatpush.msra.mxu3 %v2663_v10  ;;  %v3366_v40 = vld [vmem:[#allocation38_spill] sm:$0xff] }
 0x2f4   :  { %898 = vst [vmem:[#allocation12 + $0x2b] sm:$0x1] %v883_v35  ;;  %1283 = vmatpush.msra.mxu0 %v2666_v11  ;;  %1303 = vmatpush.msra.mxu1 %v2669_v12  ;;  %v3367_v35 = vld [vmem:[#allocation39_spill] sm:$0xff] }
 0x2f5   :  { %899 = vst [vmem:[#allocation12 + $0x33] sm:$0x1] %v884_v49  ;;  %1323 = vmatpush.msra.mxu2 %v2672_v14  ;;  %1343 = vmatpush.msra.mxu3 %v2675_v15  ;;  %v3368_v49 = vld [vmem:[#allocation50_spill] sm:$0xff] }
 0x2f6   :  { %900 = vst [vmem:[#allocation12 + $0x3b] sm:$0x1] %v885_v27  ;;  %1284 = vmatpush.msra.mxu0 %v2678_v16  ;;  %1304 = vmatpush.msra.mxu1 %v2681_v18  ;;  %v3369_v27 = vld [vmem:[#allocation41_spill] sm:$0xff] }
 0x2f7   :  { %1324 = vmatpush.msra.mxu2 %v2684_v19  ;;  %1344 = vmatpush.msra.mxu3 %v2687_v20 }
 0x2f8   :  { %1285 = vmatpush.msra.mxu0 %v2690_v31  ;;  %1305 = vmatpush.msra.mxu1 %v2693_v32 }
 0x2f9   :  { %1325 = vmatpush.msra.mxu2 %v2696_v33  ;;  %1345 = vmatpush.msra.mxu3 %v2699_v1 }
 0x2fa   :  { %1286 = vmatpush.msra.mxu0 %v2702_v50  ;;  %1306 = vmatpush.msra.mxu1 %v2705_v0 }
 0x2fb   :  { %1326 = vmatpush.msra.mxu2 %v2834_v17  ;;  %1346 = vmatpush.msra.mxu3 %v2709_v52 }
 0x2fc   :  { %1287 = vmatpush.msra.mxu0 %v2712_v55  ;;  %1307 = vmatpush.msra.mxu1 %v2715_v48 }
 0x2fd   :  { %1327 = vmatpush.msra.mxu2 %v2840_v51  ;;  %1347 = vmatpush.msra.mxu3 %v2719_v56 }
 0x2fe   :  { %1288 = vmatpush.msra.mxu0 %v2722_v60  ;;  %1308 = vmatpush.msra.mxu1 %v2725_v37 }
 0x2ff   :  { %1328 = vmatpush.msra.mxu2 %v2846_v30  ;;  %1348 = vmatpush.msra.mxu3 %v2729_v57 }
 0x300   :  { %1289 = vmatpush.msra.mxu0 %v2732_v44  ;;  %1309 = vmatpush.msra.mxu1 %v2735_v41 }
 0x301   :  { %1329 = vmatpush.msra.mxu2 %v2852_v63  ;;  %1349 = vmatpush.msra.mxu3 %v2739_v62 }
 0x302   :  { %1290 = vmatpush.msra.mxu0 %v3344_v38  ;;  %1310 = vmatpush.msra.mxu1 %v3345_v3 }
 0x303   :  { %1330 = vmatpush.msra.mxu2 %v3346_v9  ;;  %1350 = vmatpush.msra.mxu3 %v3347_v59 }
 0x304   :  { %1291 = vmatpush.msra.mxu0 %v3348_v36  ;;  %1311 = vmatpush.msra.mxu1 %v3349_v13 }
 0x305   :  { %1331 = vmatpush.msra.mxu2 %v3350_v26  ;;  %1351 = vmatpush.msra.mxu3 %v3351_v25 }
 0x306   :  { %1292 = vmatpush.msra.mxu0 %v3352_v29  ;;  %1312 = vmatpush.msra.mxu1 %v3353_v22 }
 0x307   :  { %1332 = vmatpush.msra.mxu2 %v3354_v47  ;;  %1352 = vmatpush.msra.mxu3 %v3355_v4 }
 0x308   :  { %1293 = vmatpush.msra.mxu0 %v3356_v23  ;;  %1313 = vmatpush.msra.mxu1 %v3357_v45 }
 0x309   :  { %1333 = vmatpush.msra.mxu2 %v3358_v54  ;;  %1353 = vmatpush.msra.mxu3 %v3359_v61  ;;  %v3370_v61 = vld [vmem:[#allocation43_spill] sm:$0xff] }
 0x30a   :  { %1294 = vmatpush.msra.mxu0 %v3360_v58  ;;  %1314 = vmatpush.msra.mxu1 %v3361_v2  ;;  %v3371_v58 = vld [vmem:[#allocation44_spill] sm:$0xff]  ;;  %v905_v2 = vld [vmem:[#allocation6 + $0x80] sm:$0xff] }
 0x30b   :  { %1334 = vmatpush.msra.mxu2 %v3362_v21  ;;  %1354 = vmatpush.msra.mxu3 %v3363_v39  ;;  %v906_v21 = vld [vmem:[#allocation6 + $0x88] sm:$0xff] }
 0x30c   :  { %1295 = vmatpush.msra.mxu0 %v3364_v24  ;;  %1315 = vmatpush.msra.mxu1 %v3365_v5 }
 0x30d   :  { %1335 = vmatpush.msra.mxu2 %v3366_v40  ;;  %1355 = vmatpush.msra.mxu3 %v3367_v35  ;;  %v908_v40 = vld [vmem:[#allocation6 + $0x98] sm:$0xff] }
 0x30e   :  { %1296 = vmatpush.msra.mxu0 %v3368_v49  ;;  %1316 = vmatpush.msra.mxu1 %v3369_v27 }
 0x30f   :  { %1336 = vmatpush.msra.mxu2 %v3370_v61  ;;  %1356 = vmatpush.msra.mxu3 %v3371_v58  ;;  %v907_v58 = vld [vmem:[#allocation6 + $0x90] sm:$0xff] }
 0x329   :  { %v1061_v59 = vpop.permute.xlu2 %1060 }
 0x32a   :  { %vm1062_vm4 = vcmp.eq.s32.totalorder %v1061_v59, 1 }
 0x36b   :  { %v926_v54 = vpop.f32.mrf.mxu0  ;;  %v946_v39 = vpop.f32.mrf.mxu1 }
 0x36c   :  { %v989_v45 = vadd.f32 %v926_v54, %v905_v2  ;;  %v990_v24 = vadd.f32 %v946_v39, %v906_v21 }
 0x36e   :  { %v1737_v23 = vmul.f32 -1.442695, %v989_v45  ;;  %v1738_v5 = vmul.f32 -1.442695, %v990_v24 }
 0x370   :  { %1835 = vpow2.f32 %v1737_v23 }
 0x371   :  { %1837 = vpow2.f32 %v1738_v5 }
 0x372   :  { %v986_v35 = vpop.f32.mrf.mxu3  ;;  %v966_v29 = vpop.f32.mrf.mxu2 }
 0x373   :  { %v992_v4 = vadd.f32 %v986_v35, %v908_v40  ;;  %v991_v45 = vadd.f32 %v966_v29, %v907_v58 }
 0x375   :  { %v1739_v49 = vmul.f32 -1.442695, %v992_v4 }
 0x376   :  { %v1836_v47 = vpop.eup %1835 }
 0x377   :  { %v1838_v27 = vpop.eup %1837  ;;  %v996_v22 = vadd.f32 1.0, %v1836_v47  ;;  %1839 = vpow2.f32 %v1739_v49 }
 0x378   :  { %v1015_v61 = vadd.f32 1.0, %v1838_v27 }
 0x379   :  { %1841 = vrcp.f32 %v996_v22  ;;  %v1008_v4 = vand.u32 2147483648, %v996_v22  ;;  %v1006_v47 = vand.u32 2147483647, %v996_v22  ;;  %vm1002_vm14 = vweird.f32 %v996_v22 }
 0x37a   :  { %1843 = vrcp.f32 %v1015_v61  ;;  %v1027_v35 = vand.u32 2147483648, %v1015_v61  ;;  %v1025_v27 = vand.u32 2147483647, %v1015_v61  ;;  %vm1021_vm0 = vweird.f32 %v1015_v61 }
 0x37b   :  { %vm1007_vm1 = vcmp.eq.f32.partialorder %v1006_v47, 8.507059e+37 }
 0x37c   :  { %vm1026_vm3 = vcmp.eq.f32.partialorder %v1025_v27, 8.507059e+37 }
 0x37d   :  { %v1840_v25 = vpop.eup %1839 }
 0x37e   :  { %v1035_v54 = vadd.f32 1.0, %v1840_v25  ;;  %v1009_v25 = vor.u32 1.1754944e-38, %v1008_v4 }
 0x37f   :  { %v1842_v2 = vpop.eup %1841 }
 0x380   :  { %v1844_v21 = vpop.eup %1843  ;;  %v998_v23 = vmul.f32 %v1842_v2, %v996_v22  ;;  %1845 = vrcp.f32 %v1035_v54  ;;  %vm1003_vm12 = vweird.f32 %v1842_v2  ;;  %vm1041_vm6 = vweird.f32 %v1035_v54 }
 0x381   :  { %v1017_v39 = vmul.f32 %v1844_v21, %v1015_v61  ;;  %1847 = vtanh.f32 %v991_v45  ;;  %vm1022_vm13 = vweird.f32 %v1844_v21  ;;  %vm1004_vm15 = vmor %vm1002_vm14, %vm1003_vm12  ;;  %v1047_v61 = vand.u32 2147483648, %v1035_v54 }
 0x382   :  { %v999_v24 = vsub.f32 1.0, %v998_v23  ;;  %vm1023_vm2 = vmor %vm1021_vm0, %vm1022_vm13  ;;  %v1028_v23 = vor.u32 1.1754944e-38, %v1027_v35 }
 0x383   :  { %v1018_v5 = vsub.f32 1.0, %v1017_v39 }
 0x384   :  { %v1000_v40 = vmul.f32 %v1842_v2, %v999_v24 }
 0x385   :  { %v1019_v49 = vmul.f32 %v1844_v21, %v1018_v5 }
 0x386   :  { %v1846_v26 = vpop.eup %1845  ;;  %v1001_v13 = vadd.f32 %v1842_v2, %v1000_v40 }
 0x387   :  { %v1037_v29 = vmul.f32 %v1846_v26, %v1035_v54  ;;  %v1020_v58 = vadd.f32 %v1844_v21, %v1019_v49  ;;  %v1848_v45 = vpop.eup %1847  ;;  %vm1042_vm5 = vweird.f32 %v1846_v26 }
 0x388   :  { %v1005_v36 = vsel %vm1004_vm15, %v1842_v2, %v1001_v13  ;;  %vm1043_vm7 = vmor %vm1041_vm6, %vm1042_vm5 }
 0x389   :  { %v1010_v39 = vsel %vm1007_vm1, %v1009_v25, %v1005_v36  ;;  %v1038_v24 = vsub.f32 1.0, %v1037_v29  ;;  %v1024_v9 = vsel %vm1023_vm2, %v1844_v21, %v1020_v58  ;;  %v1045_v36 = vand.u32 2147483647, %v1035_v54  ;;  %v1094_v54 = vld [vmem:[#allocation6 + $0xb8] sm:$0xff] }
 0x38a   :  { %v1052_v5 = vmul.f32 %v1848_v45, %v1010_v39  ;;  %v1029_v3 = vsel %vm1026_vm3, %v1028_v23, %v1024_v9  ;;  %v1048_v21 = vor.u32 1.1754944e-38, %v1047_v61 }
 0x38b   :  { %v1039_v38 = vmul.f32 %v1846_v26, %v1038_v24  ;;  %v1051_v22 = vmul.f32 %v1029_v3, %v2920_v43  ;;  %vm1046_vm8 = vcmp.eq.f32.partialorder %v1045_v36, 8.507059e+37 }
 0x38d   :  { %v1053_v4 = vadd.f32 %v1052_v5, %v1051_v22  ;;  %v1040_v40 = vadd.f32 %v1846_v26, %v1039_v38  ;;  %v1093_v22 = vld [vmem:[#allocation6 + $0xb0] sm:$0xff] }
 0x38f   :  { %1849 = vtanh.f32 %v1053_v4  ;;  %v2998_v13 = vsel %vm1062_vm4, %v1053_v4, %v2920_v43  ;;  %v1044_v2 = vsel %vm1043_vm7, %v1846_v26, %v1040_v40 }
 0x390   :  { %v1049_v47 = vsel %vm1046_vm8, %v1048_v21, %v1044_v2 }
 0x395   :  { %v1850_v9 = vpop.eup %1849 }
 0x396   :  { %v1055_v35 = vmul.f32 %v1850_v9, %v1049_v47 }
 0x398   :  { %v1063_v3 = vsel %vm1062_vm4, %v1055_v35, 0.0  ;;  %v3003_v38 = vsel %vm1062_vm4, %v1055_v35, %v2925_v28 }
 0x399   :  { %v1065_v49 = vrot.slane %v1063_v3, 1  ;;  %v1066_v27 = vrot.slane %v1063_v3, 2  ;;  %v1067_v25 = vrot.slane %v1063_v3, 3  ;;  %1079 = vst [vmem:[#allocation12 + $0x4] sm:$0x1] %v1063_v3  ;;  %1111 = vmatmul.f32.vlgmr.msrb.gmra.mxu0 %v3003_v38  ;;  %1131 = vmatmul.f32.vlgmr.msrb.gmra.mxu1 %v3003_v38  ;;  %v1068_v43 = vrot.slane %v1063_v3, 4 }
 0x39a   :  { %1151 = vmatmul.f32.vlgmr.msrb.gmra.mxu2 %v3003_v38  ;;  %1171 = vmatmul.f32.vlgmr.msrb.gmra.mxu3 %v3003_v38  ;;  %v1069_v26 = vrot.slane %v1063_v3, 5  ;;  %v1070_v28 = vrot.slane %v1063_v3, 6  ;;  %v1071_v59 = vrot.slane %v1063_v3, 7 }
 0x39b   :  { %1080 = vst [vmem:[#allocation12 + $0xc] sm:$0x1] %v1065_v49  ;;  %1467 = vmatpush.msrb.mxu0 %v2642_v34  ;;  %1487 = vmatpush.msrb.mxu1 %v2645_v46  ;;  %v3372_v34 = vld [vmem:[#allocation21_spill] sm:$0xff]  ;;  %v3373_v46 = vld [vmem:[#allocation46_spill] sm:$0xff] }
 0x39c   :  { %1081 = vst [vmem:[#allocation12 + $0x14] sm:$0x1] %v1066_v27  ;;  %1507 = vmatpush.msrb.mxu2 %v2648_v42  ;;  %1527 = vmatpush.msrb.mxu3 %v2651_v53  ;;  %v3374_v42 = vld [vmem:[#allocation31_spill] sm:$0xff]  ;;  %v3375_v53 = vld [vmem:[#allocation22_spill] sm:$0xff] }
 0x39d   :  { %1082 = vst [vmem:[#allocation12 + $0x1c] sm:$0x1] %v1067_v25  ;;  %1468 = vmatpush.msrb.mxu0 %v2654_v6  ;;  %1488 = vmatpush.msrb.mxu1 %v2657_v7  ;;  %v3376_v6 = vld [vmem:[#allocation23_spill] sm:$0xff]  ;;  %v3377_v7 = vld [vmem:[#allocation37_spill] sm:$0xff] }
 0x39e   :  { %1083 = vst [vmem:[#allocation12 + $0x24] sm:$0x1] %v1068_v43  ;;  %1508 = vmatpush.msrb.mxu2 %v2660_v8  ;;  %1528 = vmatpush.msrb.mxu3 %v2663_v10  ;;  %v3378_v8 = vld [vmem:[#allocation32_spill] sm:$0xff] }
 0x39f   :  { %1084 = vst [vmem:[#allocation12 + $0x2c] sm:$0x1] %v1069_v26  ;;  %1469 = vmatpush.msrb.mxu0 %v2666_v11  ;;  %1489 = vmatpush.msrb.mxu1 %v2669_v12  ;;  %v3379_v10 = vld [vmem:[#allocation24_spill] sm:$0xff]  ;;  %v3380_v11 = vld [vmem:[#allocation25_spill] sm:$0xff]  ;;  %v3381_v12 = vld [vmem:[#allocation26_spill] sm:$0xff] }
 0x3a0   :  { %1085 = vst [vmem:[#allocation12 + $0x34] sm:$0x1] %v1070_v28  ;;  %1509 = vmatpush.msrb.mxu2 %v2672_v14  ;;  %1529 = vmatpush.msrb.mxu3 %v2675_v15  ;;  %v3382_v14 = vld [vmem:[#allocation48_spill] sm:$0xff]  ;;  %v3383_v15 = vld [vmem:[#allocation42_spill] sm:$0xff] }
 0x3a1   :  { %1086 = vst [vmem:[#allocation12 + $0x3c] sm:$0x1] %v1071_v59  ;;  %1470 = vmatpush.msrb.mxu0 %v2678_v16  ;;  %1490 = vmatpush.msrb.mxu1 %v2681_v18  ;;  %v3384_v16 = vld [vmem:[#allocation27_spill] sm:$0xff]  ;;  %v3385_v18 = vld [vmem:[#allocation28_spill] sm:$0xff] }
 0x3a2   :  { %1510 = vmatpush.msrb.mxu2 %v2684_v19  ;;  %1530 = vmatpush.msrb.mxu3 %v2687_v20  ;;  %v3386_v19 = vld [vmem:[#allocation33_spill] sm:$0xff] }
 0x3a3   :  { %1471 = vmatpush.msrb.mxu0 %v2690_v31  ;;  %1491 = vmatpush.msrb.mxu1 %v2693_v32  ;;  %v3387_v20 = vld [vmem:[#allocation29_spill] sm:$0xff]  ;;  %v3388_v31 = vld [vmem:[#allocation47_spill] sm:$0xff]  ;;  %v3389_v32 = vld [vmem:[#allocation30_spill] sm:$0xff] }
 0x3a4   :  { %1511 = vmatpush.msrb.mxu2 %v2696_v33  ;;  %1531 = vmatpush.msrb.mxu3 %v2699_v1  ;;  %v3390_v33 = vld [vmem:[#allocation34_spill] sm:$0xff]  ;;  %v3391_v1 = vld [vmem:[#allocation35_spill] sm:$0xff] }
 0x3a5   :  { %1472 = vmatpush.msrb.mxu0 %v2702_v50  ;;  %1492 = vmatpush.msrb.mxu1 %v2705_v0  ;;  %v3392_v50 = vld [vmem:[#allocation49_spill] sm:$0xff]  ;;  %v3393_v0 = vld [vmem:[#allocation36_spill] sm:$0xff] }
 0x3a6   :  { %1512 = vmatpush.msrb.mxu2 %v2834_v17  ;;  %1532 = vmatpush.msrb.mxu3 %v2709_v52  ;;  %v3394_v52 = vld [vmem:[#allocation38_spill] sm:$0xff] }
 0x3a7   :  { %1473 = vmatpush.msrb.mxu0 %v2712_v55  ;;  %1493 = vmatpush.msrb.mxu1 %v2715_v48  ;;  %v3395_v55 = vld [vmem:[#allocation39_spill] sm:$0xff]  ;;  %v3396_v48 = vld [vmem:[#allocation50_spill] sm:$0xff] }
 0x3a8   :  { %1513 = vmatpush.msrb.mxu2 %v2840_v51  ;;  %1533 = vmatpush.msrb.mxu3 %v2719_v56  ;;  %v3397_v56 = vld [vmem:[#allocation41_spill] sm:$0xff] }
 0x3a9   :  { %1474 = vmatpush.msrb.mxu0 %v2722_v60  ;;  %1494 = vmatpush.msrb.mxu1 %v2725_v37  ;;  %v3398_v60 = vld [vmem:[#allocation43_spill] sm:$0xff]  ;;  %v3399_v37 = vld [vmem:[#allocation44_spill] sm:$0xff] }
 0x3aa   :  { %1514 = vmatpush.msrb.mxu2 %v2846_v30  ;;  %1534 = vmatpush.msrb.mxu3 %v2729_v57  ;;  %v1091_v57 = vld [vmem:[#allocation6 + $0xa0] sm:$0xff] }
 0x3ab   :  { %1475 = vmatpush.msrb.mxu0 %v2732_v44  ;;  %1495 = vmatpush.msrb.mxu1 %v2735_v41  ;;  %v1092_v44 = vld [vmem:[#allocation6 + $0xa8] sm:$0xff] }
 0x3ac   :  { %1515 = vmatpush.msrb.mxu2 %v2852_v63  ;;  %1535 = vmatpush.msrb.mxu3 %v2739_v62 }
 0x3ad   :  { %1476 = vmatpush.msrb.mxu0 %v3372_v34  ;;  %1496 = vmatpush.msrb.mxu1 %v3373_v46 }
 0x3ae   :  { %1516 = vmatpush.msrb.mxu2 %v3374_v42  ;;  %1536 = vmatpush.msrb.mxu3 %v3375_v53 }
 0x3af   :  { %1477 = vmatpush.msrb.mxu0 %v3376_v6  ;;  %1497 = vmatpush.msrb.mxu1 %v3377_v7 }
 0x3b0   :  { %1517 = vmatpush.msrb.mxu2 %v3378_v8  ;;  %1537 = vmatpush.msrb.mxu3 %v3379_v10 }
 0x3b1   :  { %1478 = vmatpush.msrb.mxu0 %v3380_v11  ;;  %1498 = vmatpush.msrb.mxu1 %v3381_v12 }
 0x3b2   :  { %1518 = vmatpush.msrb.mxu2 %v3382_v14  ;;  %1538 = vmatpush.msrb.mxu3 %v3383_v15 }
 0x3b3   :  { %1479 = vmatpush.msrb.mxu0 %v3384_v16  ;;  %1499 = vmatpush.msrb.mxu1 %v3385_v18  ;;  %v1247_v16 = vpop.permute.xlu2 %1246 }
 0x3b4   :  { %1519 = vmatpush.msrb.mxu2 %v3386_v19  ;;  %1539 = vmatpush.msrb.mxu3 %v3387_v20  ;;  %vm1248_vm1 = vcmp.eq.s32.totalorder %v1247_v16, 1 }
 0x3b5   :  { %1480 = vmatpush.msrb.mxu0 %v3388_v31  ;;  %1500 = vmatpush.msrb.mxu1 %v3389_v32 }
 0x3b6   :  { %1520 = vmatpush.msrb.mxu2 %v3390_v33  ;;  %1540 = vmatpush.msrb.mxu3 %v3391_v1 }
 0x3b7   :  { %1481 = vmatpush.msrb.mxu0 %v3392_v50  ;;  %1501 = vmatpush.msrb.mxu1 %v3393_v0 }
 0x3b8   :  { %1521 = vmatpush.msrb.mxu2 %v3394_v52  ;;  %1541 = vmatpush.msrb.mxu3 %v3395_v55 }
 0x3b9   :  { %1482 = vmatpush.msrb.mxu0 %v3396_v48  ;;  %1502 = vmatpush.msrb.mxu1 %v3397_v56 }
 0x3ba   :  { %1522 = vmatpush.msrb.mxu2 %v3398_v60  ;;  %1542 = vmatpush.msrb.mxu3 %v3399_v37 }
 0x416   :  { %v1112_v41 = vpop.f32.mrf.mxu0  ;;  %v1132_v62 = vpop.f32.mrf.mxu1 }
 0x417   :  { %v1175_v17 = vadd.f32 %v1112_v41, %v1091_v57  ;;  %v1176_v51 = vadd.f32 %v1132_v62, %v1092_v44 }
 0x419   :  { %v1741_v30 = vmul.f32 -1.442695, %v1175_v17  ;;  %v1742_v63 = vmul.f32 -1.442695, %v1176_v51  ;;  %v1278_v51 = vld [vmem:[#allocation6 + $0xc8] sm:$0xff] }
 0x41b   :  { %1851 = vpow2.f32 %v1741_v30 }
 0x41c   :  { %1853 = vpow2.f32 %v1742_v63 }
 0x41d   :  { %v1172_v29 = vpop.f32.mrf.mxu3  ;;  %v1152_v4 = vpop.f32.mrf.mxu2 }
 0x41e   :  { %v1178_v58 = vadd.f32 %v1172_v29, %v1094_v54  ;;  %v1177_v2 = vadd.f32 %v1152_v4, %v1093_v22 }
 0x420   :  { %v1743_v23 = vmul.f32 -1.442695, %v1178_v58 }
 0x421   :  { %v1852_v45 = vpop.eup %1851 }
 0x422   :  { %v1854_v39 = vpop.eup %1853  ;;  %v1182_v24 = vadd.f32 1.0, %v1852_v45  ;;  %1855 = vpow2.f32 %v1743_v23  ;;  %v1280_v45 = vld [vmem:[#allocation6 + $0xd8] sm:$0xff] }
 0x423   :  { %v1201_v5 = vadd.f32 1.0, %v1854_v39 }
 0x424   :  { %1857 = vrcp.f32 %v1182_v24  ;;  %v1194_v49 = vand.u32 2147483648, %v1182_v24  ;;  %v1192_v43 = vand.u32 2147483647, %v1182_v24  ;;  %vm1188_vm11 = vweird.f32 %v1182_v24 }
 0x425   :  { %1859 = vrcp.f32 %v1201_v5  ;;  %v1213_v27 = vand.u32 2147483648, %v1201_v5  ;;  %v1211_v28 = vand.u32 2147483647, %v1201_v5  ;;  %vm1207_vm12 = vweird.f32 %v1201_v5 }
 0x426   :  { %v1195_v46 = vor.u32 1.1754944e-38, %v1194_v49  ;;  %vm1193_vm15 = vcmp.eq.f32.partialorder %v1192_v43, 8.507059e+37 }
 0x427   :  { %v1214_v6 = vor.u32 1.1754944e-38, %v1213_v27  ;;  %vm1212_vm0 = vcmp.eq.f32.partialorder %v1211_v28, 8.507059e+37 }
 0x428   :  { %v1856_v40 = vpop.eup %1855 }
 0x429   :  { %v1221_v61 = vadd.f32 1.0, %v1856_v40 }
 0x42a   :  { %v1858_v36 = vpop.eup %1857 }
 0x42b   :  { %v1860_v21 = vpop.eup %1859  ;;  %v1184_v9 = vmul.f32 %v1858_v36, %v1182_v24  ;;  %1861 = vrcp.f32 %v1221_v61  ;;  %vm1189_vm9 = vweird.f32 %v1858_v36  ;;  %v1233_v32 = vand.u32 2147483648, %v1221_v61 }
 0x42c   :  { %v1203_v47 = vmul.f32 %v1860_v21, %v1201_v5  ;;  %1863 = vtanh.f32 %v1177_v2  ;;  %vm1208_vm10 = vweird.f32 %v1860_v21  ;;  %vm1190_vm13 = vmor %vm1188_vm11, %vm1189_vm9  ;;  %vm1227_vm3 = vweird.f32 %v1221_v61 }
 0x42d   :  { %v1185_v35 = vsub.f32 1.0, %v1184_v9  ;;  %vm1209_vm14 = vmor %vm1207_vm12, %vm1208_vm10  ;;  %v1231_v1 = vand.u32 2147483647, %v1221_v61  ;;  %v1234_v0 = vor.u32 1.1754944e-38, %v1233_v32 }
 0x42e   :  { %v1204_v3 = vsub.f32 1.0, %v1203_v47 }
 0x42f   :  { %v1186_v25 = vmul.f32 %v1858_v36, %v1185_v35  ;;  %vm1232_vm5 = vcmp.eq.f32.partialorder %v1231_v1, 8.507059e+37 }
 0x430   :  { %v1205_v26 = vmul.f32 %v1860_v21, %v1204_v3 }
 0x431   :  { %v1862_v59 = vpop.eup %1861  ;;  %v1187_v34 = vadd.f32 %v1858_v36, %v1186_v25 }
 0x432   :  { %v1206_v42 = vadd.f32 %v1860_v21, %v1205_v26  ;;  %v1223_v53 = vmul.f32 %v1862_v59, %v1221_v61  ;;  %v1864_v8 = vpop.eup %1863  ;;  %vm1228_vm2 = vweird.f32 %v1862_v59 }
 0x433   :  { %v1191_v7 = vsel %vm1190_vm13, %v1858_v36, %v1187_v34  ;;  %vm1229_vm4 = vmor %vm1227_vm3, %vm1228_vm2  ;;  %v1279_v36 = vld [vmem:[#allocation6 + $0xd0] sm:$0xff] }
 0x434   :  { %v1196_v10 = vsel %vm1193_vm15, %v1195_v46, %v1191_v7  ;;  %v1210_v11 = vsel %vm1209_vm14, %v1860_v21, %v1206_v42  ;;  %v1224_v12 = vsub.f32 1.0, %v1223_v53 }
 0x435   :  { %v1215_v14 = vsel %vm1212_vm0, %v1214_v6, %v1210_v11  ;;  %v1238_v15 = vmul.f32 %v1864_v8, %v1196_v10 }
 0x436   :  { %v1237_v18 = vmul.f32 %v1215_v14, %v2998_v13  ;;  %v1225_v19 = vmul.f32 %v1862_v59, %v1224_v12 }
 0x438   :  { %v1239_v20 = vadd.f32 %v1238_v15, %v1237_v18  ;;  %v1226_v31 = vadd.f32 %v1862_v59, %v1225_v19 }
 0x43a   :  { %1865 = vtanh.f32 %v1239_v20  ;;  %v3076_v33 = vsel %vm1248_vm1, %v1239_v20, %v2998_v13  ;;  %v1230_v50 = vsel %vm1229_vm4, %v1862_v59, %v1226_v31  ;;  %v1433_v31 = vpop.permute.xlu0 %1432 }
 0x43b   :  { %v1235_v55 = vsel %vm1232_vm5, %v1234_v0, %v1230_v50  ;;  %vm1434_vm14 = vcmp.eq.s32.totalorder %v1433_v31, 1 }
 0x440   :  { %v1866_v52 = vpop.eup %1865 }
 0x441   :  { %v1241_v48 = vmul.f32 %v1866_v52, %v1235_v55 }
 0x443   :  { %v1249_v56 = vsel %vm1248_vm1, %v1241_v48, 0.0  ;;  %v3081_v60 = vsel %vm1248_vm1, %v1241_v48, %v3003_v38  ;;  %v1277_v38 = vld [vmem:[#allocation6 + $0xc0] sm:$0xff] }
 0x444   :  { %v1251_v37 = vrot.slane %v1249_v56, 1  ;;  %v1252_v57 = vrot.slane %v1249_v56, 2  ;;  %v1253_v44 = vrot.slane %v1249_v56, 3  ;;  %1265 = vst [vmem:[#allocation12 + $0x5] sm:$0x1] %v1249_v56  ;;  %1297 = vmatmul.f32.vlgmr.msra.gmra.mxu0 %v3081_v60  ;;  %1317 = vmatmul.f32.vlgmr.msra.gmra.mxu1 %v3081_v60  ;;  %v1254_v13 = vrot.slane %v1249_v56, 4 }
 0x445   :  { %1337 = vmatmul.f32.vlgmr.msra.gmra.mxu2 %v3081_v60  ;;  %1357 = vmatmul.f32.vlgmr.msra.gmra.mxu3 %v3081_v60  ;;  %v1255_v41 = vrot.slane %v1249_v56, 5  ;;  %v1256_v62 = vrot.slane %v1249_v56, 6  ;;  %v1257_v17 = vrot.slane %v1249_v56, 7 }
 0x446   :  { %1266 = vst [vmem:[#allocation12 + $0xd] sm:$0x1] %v1251_v37 }
 0x447   :  { %1267 = vst [vmem:[#allocation12 + $0x15] sm:$0x1] %v1252_v57 }
 0x448   :  { %1268 = vst [vmem:[#allocation12 + $0x1d] sm:$0x1] %v1253_v44 }
 0x449   :  { %1269 = vst [vmem:[#allocation12 + $0x25] sm:$0x1] %v1254_v13 }
 0x44a   :  { %1270 = vst [vmem:[#allocation12 + $0x2d] sm:$0x1] %v1255_v41 }
 0x44b   :  { %1271 = vst [vmem:[#allocation12 + $0x35] sm:$0x1] %v1256_v62 }
 0x44c   :  { %1272 = vst [vmem:[#allocation12 + $0x3d] sm:$0x1] %v1257_v17 }
 0x4c1   :  { %v1298_v30 = vpop.f32.mrf.mxu0  ;;  %v1318_v63 = vpop.f32.mrf.mxu1 }
 0x4c2   :  { %v1361_v54 = vadd.f32 %v1298_v30, %v1277_v38  ;;  %v1362_v29 = vadd.f32 %v1318_v63, %v1278_v51 }
 0x4c4   :  { %v1745_v58 = vmul.f32 -1.442695, %v1361_v54  ;;  %v1746_v23 = vmul.f32 -1.442695, %v1362_v29  ;;  %v1464_v29 = vld [vmem:[#allocation6 + $0xe8] sm:$0xff] }
 0x4c6   :  { %1867 = vpow2.f32 %v1745_v58 }
 0x4c7   :  { %1869 = vpow2.f32 %v1746_v23 }
 0x4c8   :  { %v1358_v39 = vpop.f32.mrf.mxu3  ;;  %v1338_v2 = vpop.f32.mrf.mxu2 }
 0x4c9   :  { %v1364_v24 = vadd.f32 %v1358_v39, %v1280_v45  ;;  %v1363_v35 = vadd.f32 %v1338_v2, %v1279_v36 }
 0x4cb   :  { %v1747_v5 = vmul.f32 -1.442695, %v1364_v24 }
 0x4cc   :  { %v1868_v22 = vpop.eup %1867 }
 0x4cd   :  { %v1870_v4 = vpop.eup %1869  ;;  %v1368_v40 = vadd.f32 1.0, %v1868_v22  ;;  %1871 = vpow2.f32 %v1747_v5  ;;  %v1466_v22 = vld [vmem:[#allocation6 + $0xf8] sm:$0xff] }
 0x4ce   :  { %v1387_v61 = vadd.f32 1.0, %v1870_v4 }
 0x4cf   :  { %1873 = vrcp.f32 %v1368_v40  ;;  %v1380_v26 = vand.u32 2147483648, %v1368_v40  ;;  %v1378_v34 = vand.u32 2147483647, %v1368_v40  ;;  %vm1374_vm8 = vweird.f32 %v1368_v40 }
 0x4d0   :  { %1875 = vrcp.f32 %v1387_v61  ;;  %v1399_v28 = vand.u32 2147483648, %v1387_v61  ;;  %v1397_v42 = vand.u32 2147483647, %v1387_v61  ;;  %vm1393_vm9 = vweird.f32 %v1387_v61 }
 0x4d1   :  { %v1381_v7 = vor.u32 1.1754944e-38, %v1380_v26  ;;  %vm1379_vm12 = vcmp.eq.f32.partialorder %v1378_v34, 8.507059e+37 }
 0x4d2   :  { %v1400_v11 = vor.u32 1.1754944e-38, %v1399_v28  ;;  %vm1398_vm13 = vcmp.eq.f32.partialorder %v1397_v42, 8.507059e+37 }
 0x4d3   :  { %v1872_v21 = vpop.eup %1871 }
 0x4d4   :  { %v1407_v9 = vadd.f32 1.0, %v1872_v21 }
 0x4d5   :  { %v1874_v47 = vpop.eup %1873 }
 0x4d6   :  { %v1876_v3 = vpop.eup %1875  ;;  %v1370_v49 = vmul.f32 %v1874_v47, %v1368_v40  ;;  %1877 = vrcp.f32 %v1407_v9  ;;  %vm1375_vm6 = vweird.f32 %v1874_v47  ;;  %v1419_v52 = vand.u32 2147483648, %v1407_v9 }
 0x4d7   :  { %v1389_v27 = vmul.f32 %v1876_v3, %v1387_v61  ;;  %1879 = vtanh.f32 %v1363_v35  ;;  %vm1394_vm7 = vweird.f32 %v1876_v3  ;;  %vm1376_vm10 = vmor %vm1374_vm8, %vm1375_vm6  ;;  %vm1413_vm0 = vweird.f32 %v1407_v9 }
 0x4d8   :  { %v1371_v25 = vsub.f32 1.0, %v1370_v49  ;;  %vm1395_vm11 = vmor %vm1393_vm9, %vm1394_vm7  ;;  %v1417_v48 = vand.u32 2147483647, %v1407_v9  ;;  %v1420_v37 = vor.u32 1.1754944e-38, %v1419_v52 }
 0x4d9   :  { %v1390_v43 = vsub.f32 1.0, %v1389_v27 }
 0x4da   :  { %v1372_v59 = vmul.f32 %v1874_v47, %v1371_v25  ;;  %vm1418_vm2 = vcmp.eq.f32.partialorder %v1417_v48, 8.507059e+37 }
 0x4db   :  { %v1391_v46 = vmul.f32 %v1876_v3, %v1390_v43 }
 0x4dc   :  { %v1878_v53 = vpop.eup %1877  ;;  %v1373_v6 = vadd.f32 %v1874_v47, %v1372_v59 }
 0x4dd   :  { %v1392_v8 = vadd.f32 %v1876_v3, %v1391_v46  ;;  %v1409_v10 = vmul.f32 %v1878_v53, %v1407_v9  ;;  %v1880_v14 = vpop.eup %1879  ;;  %vm1414_vm15 = vweird.f32 %v1878_v53 }
 0x4de   :  { %v1377_v12 = vsel %vm1376_vm10, %v1874_v47, %v1373_v6  ;;  %vm1415_vm1 = vmor %vm1413_vm0, %vm1414_vm15  ;;  %v1465_v47 = vld [vmem:[#allocation6 + $0xf0] sm:$0xff] }
 0x4df   :  { %v1382_v15 = vsel %vm1379_vm12, %v1381_v7, %v1377_v12  ;;  %v1396_v16 = vsel %vm1395_vm11, %v1876_v3, %v1392_v8  ;;  %v1410_v18 = vsub.f32 1.0, %v1409_v10 }
 0x4e0   :  { %v1401_v19 = vsel %vm1398_vm13, %v1400_v11, %v1396_v16  ;;  %v1424_v20 = vmul.f32 %v1880_v14, %v1382_v15 }
 0x4e1   :  { %v1423_v32 = vmul.f32 %v1401_v19, %v3076_v33  ;;  %v1411_v1 = vmul.f32 %v1878_v53, %v1410_v18 }
 0x4e3   :  { %v1425_v50 = vadd.f32 %v1424_v20, %v1423_v32  ;;  %v1412_v0 = vadd.f32 %v1878_v53, %v1411_v1 }
 0x4e5   :  { %1881 = vtanh.f32 %v1425_v50  ;;  %v3090_v55 = vsel %vm1434_vm14, %v1425_v50, %v3076_v33  ;;  %v1416_v56 = vsel %vm1415_vm1, %v1878_v53, %v1412_v0  ;;  %v1619_v0 = vpop.permute.xlu1 %1618 }
 0x4e6   :  { %v1421_v44 = vsel %vm1418_vm2, %v1420_v37, %v1416_v56  ;;  %vm1620_vm11 = vcmp.eq.s32.totalorder %v1619_v0, 1 }
 0x4eb   :  { %v1882_v57 = vpop.eup %1881 }
 0x4ec   :  { %v1427_v13 = vmul.f32 %v1882_v57, %v1421_v44 }
 0x4ee   :  { %v1435_v41 = vsel %vm1434_vm14, %v1427_v13, 0.0  ;;  %v3095_v62 = vsel %vm1434_vm14, %v1427_v13, %v3081_v60  ;;  %v1463_v60 = vld [vmem:[#allocation6 + $0xe0] sm:$0xff] }
 0x4ef   :  { %v1437_v17 = vrot.slane %v1435_v41, 1  ;;  %v1438_v38 = vrot.slane %v1435_v41, 2  ;;  %v1439_v51 = vrot.slane %v1435_v41, 3  ;;  %1451 = vst [vmem:[#allocation12 + $0x6] sm:$0x1] %v1435_v41  ;;  %1483 = vmatmul.f32.vlgmr.msrb.gmra.mxu0 %v3095_v62  ;;  %1503 = vmatmul.f32.vlgmr.msrb.gmra.mxu1 %v3095_v62  ;;  %v1440_v33 = vrot.slane %v1435_v41, 4 }
 0x4f0   :  { %1523 = vmatmul.f32.vlgmr.msrb.gmra.mxu2 %v3095_v62  ;;  %1543 = vmatmul.f32.vlgmr.msrb.gmra.mxu3 %v3095_v62  ;;  %v1441_v30 = vrot.slane %v1435_v41, 5  ;;  %v1442_v63 = vrot.slane %v1435_v41, 6  ;;  %v1443_v54 = vrot.slane %v1435_v41, 7 }
 0x4f1   :  { %1452 = vst [vmem:[#allocation12 + $0xe] sm:$0x1] %v1437_v17 }
 0x4f2   :  { %1453 = vst [vmem:[#allocation12 + $0x16] sm:$0x1] %v1438_v38 }
 0x4f3   :  { %1454 = vst [vmem:[#allocation12 + $0x1e] sm:$0x1] %v1439_v51 }
 0x4f4   :  { %1455 = vst [vmem:[#allocation12 + $0x26] sm:$0x1] %v1440_v33 }
 0x4f5   :  { %1456 = vst [vmem:[#allocation12 + $0x2e] sm:$0x1] %v1441_v30 }
 0x4f6   :  { %1457 = vst [vmem:[#allocation12 + $0x36] sm:$0x1] %v1442_v63 }
 0x4f7   :  { %1458 = vst [vmem:[#allocation12 + $0x3e] sm:$0x1] %v1443_v54 }
 0x56c   :  { %v1484_v58 = vpop.f32.mrf.mxu0  ;;  %v1504_v23 = vpop.f32.mrf.mxu1 }
 0x56d   :  { %v1547_v45 = vadd.f32 %v1484_v58, %v1463_v60  ;;  %v1548_v39 = vadd.f32 %v1504_v23, %v1464_v29 }
 0x56f   :  { %v1749_v24 = vmul.f32 -1.442695, %v1547_v45  ;;  %v1750_v5 = vmul.f32 -1.442695, %v1548_v39 }
 0x571   :  { %1883 = vpow2.f32 %v1749_v24 }
 0x572   :  { %1885 = vpow2.f32 %v1750_v5 }
 0x573   :  { %v1544_v4 = vpop.f32.mrf.mxu3  ;;  %v1524_v35 = vpop.f32.mrf.mxu2 }
 0x574   :  { %v1550_v40 = vadd.f32 %v1544_v4, %v1466_v22  ;;  %v1549_v25 = vadd.f32 %v1524_v35, %v1465_v47 }
 0x576   :  { %v1751_v61 = vmul.f32 -1.442695, %v1550_v40 }
 0x577   :  { %v1884_v36 = vpop.eup %1883 }
 0x578   :  { %v1886_v2 = vpop.eup %1885  ;;  %v1554_v21 = vadd.f32 1.0, %v1884_v36  ;;  %1887 = vpow2.f32 %v1751_v61 }
 0x579   :  { %v1573_v9 = vadd.f32 1.0, %v1886_v2 }
 0x57a   :  { %1889 = vrcp.f32 %v1554_v21  ;;  %v1566_v46 = vand.u32 2147483648, %v1554_v21  ;;  %v1564_v6 = vand.u32 2147483647, %v1554_v21  ;;  %vm1560_vm5 = vweird.f32 %v1554_v21 }
 0x57b   :  { %1891 = vrcp.f32 %v1573_v9  ;;  %v1585_v42 = vand.u32 2147483648, %v1573_v9  ;;  %v1583_v8 = vand.u32 2147483647, %v1573_v9  ;;  %vm1579_vm6 = vweird.f32 %v1573_v9 }
 0x57c   :  { %v1567_v12 = vor.u32 1.1754944e-38, %v1566_v46  ;;  %vm1565_vm9 = vcmp.eq.f32.partialorder %v1564_v6, 8.507059e+37 }
 0x57d   :  { %v1586_v16 = vor.u32 1.1754944e-38, %v1585_v42  ;;  %vm1584_vm10 = vcmp.eq.f32.partialorder %v1583_v8, 8.507059e+37 }
 0x57e   :  { %v1888_v3 = vpop.eup %1887 }
 0x57f   :  { %v1593_v49 = vadd.f32 1.0, %v1888_v3 }
 0x580   :  { %v1890_v27 = vpop.eup %1889 }
 0x581   :  { %v1892_v43 = vpop.eup %1891  ;;  %v1556_v26 = vmul.f32 %v1890_v27, %v1554_v21  ;;  %1893 = vrcp.f32 %v1593_v49  ;;  %vm1561_vm3 = vweird.f32 %v1890_v27  ;;  %v1605_v44 = vand.u32 2147483648, %v1593_v49 }
 0x582   :  { %v1575_v28 = vmul.f32 %v1892_v43, %v1573_v9  ;;  %1895 = vtanh.f32 %v1549_v25  ;;  %vm1580_vm4 = vweird.f32 %v1892_v43  ;;  %vm1562_vm7 = vmor %vm1560_vm5, %vm1561_vm3  ;;  %vm1599_vm13 = vweird.f32 %v1593_v49 }
 0x583   :  { %v1557_v59 = vsub.f32 1.0, %v1556_v26  ;;  %vm1581_vm8 = vmor %vm1579_vm6, %vm1580_vm4  ;;  %v1603_v13 = vand.u32 2147483647, %v1593_v49  ;;  %v1606_v17 = vor.u32 1.1754944e-38, %v1605_v44 }
 0x584   :  { %v1576_v34 = vsub.f32 1.0, %v1575_v28 }
 0x585   :  { %v1558_v53 = vmul.f32 %v1890_v27, %v1557_v59  ;;  %vm1604_vm15 = vcmp.eq.f32.partialorder %v1603_v13, 8.507059e+37 }
 0x586   :  { %v1577_v7 = vmul.f32 %v1892_v43, %v1576_v34 }
 0x587   :  { %v1894_v10 = vpop.eup %1893  ;;  %v1559_v11 = vadd.f32 %v1890_v27, %v1558_v53 }
 0x588   :  { %v1578_v14 = vadd.f32 %v1892_v43, %v1577_v7  ;;  %v1595_v15 = vmul.f32 %v1894_v10, %v1593_v49  ;;  %v1896_v19 = vpop.eup %1895  ;;  %vm1600_vm12 = vweird.f32 %v1894_v10 }
 0x589   :  { %v1563_v18 = vsel %vm1562_vm7, %v1890_v27, %v1559_v11  ;;  %vm1601_vm14 = vmor %vm1599_vm13, %vm1600_vm12 }
 0x58a   :  { %v1568_v20 = vsel %vm1565_vm9, %v1567_v12, %v1563_v18  ;;  %v1582_v31 = vsel %vm1581_vm8, %v1892_v43, %v1578_v14  ;;  %v1596_v32 = vsub.f32 1.0, %v1595_v15 }
 0x58b   :  { %v1587_v1 = vsel %vm1584_vm10, %v1586_v16, %v1582_v31  ;;  %v1610_v50 = vmul.f32 %v1896_v19, %v1568_v20 }
 0x58c   :  { %v1609_v52 = vmul.f32 %v1587_v1, %v3090_v55  ;;  %v1597_v48 = vmul.f32 %v1894_v10, %v1596_v32 }
 0x58e   :  { %v1611_v56 = vadd.f32 %v1610_v50, %v1609_v52  ;;  %v1598_v37 = vadd.f32 %v1894_v10, %v1597_v48 }
 0x590   :  { %1897 = vtanh.f32 %v1611_v56  ;;  %v1646_v57 = vsel %vm1620_vm11, %v1611_v56, %v3090_v55  ;;  %v1602_v41 = vsel %vm1601_vm14, %v1894_v10, %v1598_v37 }
 0x591   :  { %1648 = vst [vmem:[#allocation3] sm:$0xff] %v1646_v57  ;;  %v1607_v51 = vsel %vm1604_vm15, %v1606_v17, %v1602_v41 }
 0x596   :  { %v1898_v38 = vpop.eup %1897 }
 0x597   :  { %v1613_v33 = vmul.f32 %v1898_v38, %v1607_v51 }
 0x599   :  { %v1621_v30 = vsel %vm1620_vm11, %v1613_v33, 0.0  ;;  %v1645_v63 = vsel %vm1620_vm11, %v1613_v33, %v3095_v62 }
 0x59a   :  { %v1623_v54 = vrot.slane %v1621_v30, 1  ;;  %v1624_v60 = vrot.slane %v1621_v30, 2  ;;  %v1625_v29 = vrot.slane %v1621_v30, 3  ;;  %1637 = vst [vmem:[#allocation12 + $0x7] sm:$0x1] %v1621_v30  ;;  %v1626_v55 = vrot.slane %v1621_v30, 4 }
 0x59b   :  { %1647 = vst [vmem:[#allocation2] sm:$0xff] %v1645_v63  ;;  %v1627_v58 = vrot.slane %v1621_v30, 5  ;;  %v1628_v23 = vrot.slane %v1621_v30, 6  ;;  %v1629_v45 = vrot.slane %v1621_v30, 7 }
 0x59c   :  { %1638 = vst [vmem:[#allocation12 + $0xf] sm:$0x1] %v1623_v54 }
 0x59d   :  { %1639 = vst [vmem:[#allocation12 + $0x17] sm:$0x1] %v1624_v60 }
 0x59e   :  { %1640 = vst [vmem:[#allocation12 + $0x1f] sm:$0x1] %v1625_v29 }
 0x59f   :  { %1641 = vst [vmem:[#allocation12 + $0x27] sm:$0x1] %v1626_v55 }
 0x5a0   :  { %1642 = vst [vmem:[#allocation12 + $0x2f] sm:$0x1] %v1627_v58 }
 0x5a1   :  { %1643 = vst [vmem:[#allocation12 + $0x37] sm:$0x1] %v1628_v23 }
 0x5a2   :  { %1644 = vst [vmem:[#allocation12 + $0x3f] sm:$0x1] %v1629_v45 }
 0x5a3 PF:  { %p1754_p1 = scmp.gt.s32.totalorder %s2200_s1, 0 }
 0x5a5   :  { %1652 = sbr.rel (%p1754_p1) target bundleno = 1459 (0x5b3), region = 45 }
 0x5aa   :  { %v2137_v62 = vmov 0.0  }
 0x5ab   :  { %1653 = vst [vmem:[#allocation12] sm:$0xff] %v2137_v62 }
 0x5ac   :  { %1654 = vst [vmem:[#allocation12 + $0x8] sm:$0xff] %v2137_v62 }
 0x5ad   :  { %1655 = vst [vmem:[#allocation12 + $0x10] sm:$0xff] %v2137_v62 }
 0x5ae   :  { %1656 = vst [vmem:[#allocation12 + $0x18] sm:$0xff] %v2137_v62 }
 0x5af   :  { %1657 = vst [vmem:[#allocation12 + $0x20] sm:$0xff] %v2137_v62 }
 0x5b0   :  { %1658 = vst [vmem:[#allocation12 + $0x28] sm:$0xff] %v2137_v62 }
 0x5b1   :  { %1659 = vst [vmem:[#allocation12 + $0x30] sm:$0xff] %v2137_v62 }
 0x5b2   :  { %1660 = vst [vmem:[#allocation12 + $0x38] sm:$0xff] %v2137_v62 }
 0x5b3 PF:  { %v1664_v39 = vld [vmem:[#allocation2] sm:$0xff]  ;;  %v1666_v24 = vld [vmem:[#allocation3] sm:$0xff]  ;;  %s1688_s29 = sshll.u32 %s3124_s7, 4  ;;  %s2138_s30 = smov [#allocation13]   ;;  %s1689_s29 = int_to_ptr.hbm [resolvable:$true] %s1688_s29 }
 0x5b4   :  { %1665 = vst [vmem:[#allocation13] sm:$0xff] %v1664_v39  ;;  %s1686_s9 = sshll.u32 %s2138_s30, 4  ;;  %s2139_s10 = smov [#allocation12]   ;;  %s1687_s9 = int_to_ptr.vmem [resolvable:$true] %s1686_s9 }
 0x5b5   :  { %1667 = vst [vmem:[#allocation15] sm:$0xff] %v1666_v24  ;;  %1691 = dma.vmem_to_hbm [thread:$0]  %s1687_s9, 128, %s1689_s29, [#allocation14]  }
 0x5b6   :  { %s1672_s11 = sshll.u32 %s2139_s10, 4  ;;  %s1674_s14 = sshll.u32 %s3123_s6, 4  ;;  %s1673_s11 = int_to_ptr.vmem [resolvable:$true] %s1672_s11  ;;  %s1675_s14 = int_to_ptr.hbm [resolvable:$true] %s1674_s14 }
 0x5b7   :  { %s2140_s0 = smov 128   ;;  %s2141_s15 = smov 8  }
 0x5b8   :  { %1680 = dma.vmem_to_hbm [thread:$0]  %s1673_s11, 1024, %s1675_s14, [#allocation8], %s2140_s0, %s2140_s0, %s2141_s15  }
 0x5b9   :  { %s1699_s17 = sshll.u32 %s3125_s8, 4  ;;  %s2142_s18 = smov [#allocation15]   ;;  %s1700_s17 = int_to_ptr.hbm [resolvable:$true] %s1699_s17 }
 0x5ba   :  { %s1697_s19 = sshll.u32 %s2142_s18, 4  ;;  %s1698_s19 = int_to_ptr.vmem [resolvable:$true] %s1697_s19 }
 0x5bb   :  { %1702 = dma.vmem_to_hbm [thread:$0]  %s1698_s19, 128, %s1700_s17, [#allocation14]  }
 0x5bc   :  { %2126 = dma.done.wait [#allocation8], 1024  }
 0x5bd   :  { %2127 = vsyncadd [#allocation8], 4294966272 }
 0x5be   :  { %2128 = dma.done.wait [#allocation14], 256  }
 0x5bf   :  { %2129 = vsyncadd [#allocation14], 4294967040 }
 0x5c0   :  { %1715 = vsyncpa [#allocation7], 1 }
 0x5c1   :  { %1716 = vsyncpa [#allocation10], 1 }
 0x5c2   :  { %1717 = vsyncpa [#allocation8], 1 }
 0x5c3   :  { %1718 = vsyncpa [#allocation14], 1 }

</bundles_post_ra>
